<compile_context>
chip_gen: v6e
topology: v6e:2x2x1
jax: 0.10.0
libtpu: 0.0.40
codegen_flags: <defaults>
</compile_context>

<pallas_src>
import functools
import math

import jax
import jax.numpy as jnp
from jax.experimental import pallas as pl
from jax.experimental.pallas import tpu as pltpu


def _layernorm(y, gamma, beta, eps=1e-5):
    mean = jnp.mean(y, axis=-1, keepdims=True)
    var = jnp.mean((y - mean) ** 2, axis=-1, keepdims=True)
    return (y - mean) * jax.lax.rsqrt(var + eps) * gamma + beta


def encoder_layer_kernel(
    x_q_ref, x_kv_ref, mask_ref,
    wqh_ref, bqh_ref, wkh_ref, bkh_ref, wvh_ref, bvh_ref,
    woh_ref, bo_ref,
    w1_ref, b1_ref, w2_ref, b2_ref,
    g1_ref, be1_ref, g2_ref, be2_ref,
    out_ref,
    k_sc, v_sc,
    *, num_heads,
):
    qi = pl.program_id(1)
    H = num_heads

    # ---- K/V projection: once per batch element, cached head-major in VMEM ----
    # Correct because the qi axis is "arbitrary": qi == 0 runs first for each b.
    @pl.when(qi == 0)
    def _():
        xkv = x_kv_ref[0]                                              # (S, D) bf16
        for h in range(H):                                             # static unroll
            k_sc[h] = (jnp.dot(xkv, wkh_ref[h],
                               preferred_element_type=jnp.float32)
                       + bkh_ref[h]).astype(jnp.bfloat16)
            v_sc[h] = (jnp.dot(xkv, wvh_ref[h],
                               preferred_element_type=jnp.float32)
                       + bvh_ref[h]).astype(jnp.bfloat16)

    # ---- Q projection, head-major directly off the MXU (scale folded in W_q) --
    x = x_q_ref[0]                                                     # (TQ, D) f32
    x_b = x.astype(jnp.bfloat16)
    q_heads = [
        (jnp.dot(x_b, wqh_ref[h], preferred_element_type=jnp.float32)
         + bqh_ref[h]).astype(jnp.bfloat16)
        for h in range(H)
    ]
    qh = jnp.stack(q_heads, axis=0)                                    # (H, TQ, d_k)

    # ---- Batched multi-head attention (heads on the leading batch dim) --------
    s = jnp.einsum("hqd,hkd->hqk", qh, k_sc[...],
                   preferred_element_type=jnp.float32)                 # (H, TQ, S)
    s = s + mask_ref[0][None, :, :]
    s = s - jnp.max(s, axis=-1, keepdims=True)
    p = jnp.exp(s)
    p = p * pl.reciprocal(jnp.sum(p, axis=-1, keepdims=True), approx=True)
    ctx = jnp.einsum("hqk,hkd->hqd", p.astype(jnp.bfloat16), v_sc[...],
                     preferred_element_type=jnp.float32)               # (H, TQ, d_k)
    ctx = ctx.astype(jnp.bfloat16)

    # ---- Output projection: per-head accumulate, no (H, TQ, D) temporary ------
    attn = jnp.dot(ctx[0], woh_ref[0], preferred_element_type=jnp.float32)
    for h in range(1, H):
        attn = attn + jnp.dot(ctx[h], woh_ref[h],
                              preferred_element_type=jnp.float32)
    attn = attn + bo_ref[...]                                          # (TQ, D)

    # ---- Residual + LayerNorm 1 (dropout = identity) ---------------------------
    y = _layernorm(x + attn, g1_ref[...], be1_ref[...])

    # ---- Position-wise feed-forward --------------------------------------------
    h1 = jnp.dot(y.astype(jnp.bfloat16), w1_ref[...],
                 preferred_element_type=jnp.float32) + b1_ref[...]
    h1 = jnp.maximum(h1, 0.0)
    ff = jnp.dot(h1.astype(jnp.bfloat16), w2_ref[...],
                 preferred_element_type=jnp.float32) + b2_ref[...]

    # ---- Residual + LayerNorm 2 -------------------------------------------------
    out_ref[0] = _layernorm(y + ff, g2_ref[...], be2_ref[...]).astype(out_ref.dtype)


def encoder_layer(x, mask, params, *, num_heads, q_tile=None):
    B, S, D = x.shape
    d_ff = params["w1"].shape[1]
    assert D % num_heads == 0
    H = num_heads
    d_k = D // H

    if q_tile is None:
        q_tile = 128
        try:  # larger query tiles help fill the 256-wide MXU of v6e / v7x
            kind = jax.devices()[0].device_kind.lower()
            if S >= 256 and ("v6" in kind or "v7" in kind):
                q_tile = 256
        except Exception:
            pass
    TQ = min(q_tile, S)
    assert S % TQ == 0, "seq length must be divisible by the query tile"
    NQ = S // TQ

    bf16 = jnp.bfloat16
    scale = 1.0 / math.sqrt(d_k)

    def split_w(w):   # (D, D) -> (H, D, d_k): head-major split of the output axis
        return jnp.transpose(w.reshape(D, H, d_k), (1, 0, 2))

    def split_b(b):   # (1, D) -> (H, 1, d_k)
        return jnp.transpose(b.reshape(1, H, d_k), (1, 0, 2))

    wq_h = split_w(params["wq"] * scale).astype(bf16)   # scale folded into Q path
    bq_h = split_b(params["bq"] * scale)
    wk_h = split_w(params["wk"]).astype(bf16)
    bk_h = split_b(params["bk"])
    wv_h = split_w(params["wv"]).astype(bf16)
    bv_h = split_b(params["bv"])
    wo_h = params["wo"].reshape(H, d_k, D).astype(bf16)  # per-head W_o slabs
    w1 = params["w1"].astype(bf16)
    w2 = params["w2"].astype(bf16)

    x_kv = x.astype(bf16)                # bf16 feed for the full-sequence K/V path
    mask_batched = mask.shape[0] != 1    # supports per-example (B,S,S) masks too

    kernel = functools.partial(encoder_layer_kernel, num_heads=H)

    flops = int(2 * B * S * (4 * D * D + 2 * S * D + 2 * D * d_ff))
    bytes_accessed = int(
        4 * B * S * D + 2 * B * S * D + 4 * B * S * D      # x f32 + x_kv bf16 + out
        + 2 * (4 * D * D + 2 * D * d_ff)                   # bf16 weights
        + 4 * mask.size)
    cost = pl.CostEstimate(flops=flops,
                           transcendentals=int(B * H * S * S),
                           bytes_accessed=bytes_accessed)

    # VMEM budget: single-buffered weights + double-buffered activation blocks +
    # K/V scratch + headroom for in-kernel temporaries (scores/probs/ctx/FFN).
    est = (
        2 * (4 * D * D + 2 * D * d_ff)                      # bf16 weights (1 buffer)
        + 4 * (3 * H * d_k + 6 * D + d_ff)                  # biases + LN params
        + 2 * (TQ * D * 4)                                  # x_q block (2 buffers)
        + 2 * (S * D * 2)                                   # x_kv block (2 buffers)
        + 2 * (TQ * S * 4)                                  # mask block (2 buffers)
        + 2 * (TQ * D * 4)                                  # out block (2 buffers)
        + 2 * (H * S * d_k * 2)                             # K/V head scratch
        + 3 * H * TQ * S * 4                                # scores / probs temps
        + 2 * H * TQ * d_k * 4 + TQ * d_ff * 4 + 4 * TQ * D * 4
    )
    vmem_limit = max(32 * 1024 * 1024, min(int(est * 1.5), 127 * 1024 * 1024))

    def run(single_buffer_weights):
        def wspec(shape):
            if len(shape) == 3:
                idx = lambda b, qi: (0, 0, 0)
            else:
                idx = lambda b, qi: (0, 0)
            if single_buffer_weights:
                # Grid-invariant operands: no second pipeline buffer.
                return pl.BlockSpec(shape, idx, pipeline_mode=pl.Buffered(1))
            return pl.BlockSpec(shape, idx)

        grid_spec = pltpu.PrefetchScalarGridSpec(
            num_scalar_prefetch=0,
            grid=(B, NQ),
            in_specs=[
                pl.BlockSpec((1, TQ, D), lambda b, qi: (b, qi, 0)),   # x (residual/Q)
                pl.BlockSpec((1, S, D), lambda b, qi: (b, 0, 0)),     # x_kv (bf16)
                pl.BlockSpec((1, TQ, S),
                             (lambda b, qi: (b, qi, 0)) if mask_batched
                             else (lambda b, qi: (0, qi, 0))),        # mask
                wspec((H, D, d_k)), wspec((H, 1, d_k)),               # W_q, b_q
                wspec((H, D, d_k)), wspec((H, 1, d_k)),               # W_k, b_k
                wspec((H, D, d_k)), wspec((H, 1, d_k)),               # W_v, b_v
                wspec((H, d_k, D)), wspec((1, D)),                    # W_o, b_o
                wspec((D, d_ff)), wspec((1, d_ff)),                   # fc1
                wspec((d_ff, D)), wspec((1, D)),                      # fc2
                wspec((1, D)), wspec((1, D)),                         # ln1 gamma/beta
                wspec((1, D)), wspec((1, D)),                         # ln2 gamma/beta
            ],
            out_specs=pl.BlockSpec((1, TQ, D), lambda b, qi: (b, qi, 0)),
            scratch_shapes=[
                pltpu.VMEM((H, S, d_k), jnp.bfloat16),                # cached K heads
                pltpu.VMEM((H, S, d_k), jnp.bfloat16),                # cached V heads
            ],
        )
        return pl.pallas_call(
            kernel,
            out_shape=jax.ShapeDtypeStruct((B, S, D), jnp.float32),
            grid_spec=grid_spec,
            compiler_params=pltpu.CompilerParams(
                dimension_semantics=("parallel", "arbitrary"),
                vmem_limit_bytes=vmem_limit,
            ),
            cost_estimate=cost,
        )(
            x, x_kv, mask,
            wq_h, bq_h, wk_h, bk_h, wv_h, bv_h,
            wo_h, params["bo"],
            w1, params["b1"], w2, params["b2"],
            params["g1"], params["be1"], params["g2"], params["be2"],
        )

    try:
        return run(single_buffer_weights=True)
    except Exception:
        # Fallback for environments where pipeline_mode=pl.Buffered(1) is not
        # accepted on input BlockSpecs: identical kernel, default buffering.
        return run(single_buffer_weights=False)


def reference_encoder_layer(x, mask, p, *, num_heads):
    B, S, D = x.shape
    d_k = D // num_heads

    def ln(y, g, b, eps=1e-5):
        m = y.mean(-1, keepdims=True)
        v = ((y - m) ** 2).mean(-1, keepdims=True)
        return (y - m) / jnp.sqrt(v + eps) * g + b

    q = x @ p["wq"] + p["bq"]
    k = x @ p["wk"] + p["bk"]
    v = x @ p["wv"] + p["bv"]
    q = q.reshape(B, S, num_heads, d_k).transpose(0, 2, 1, 3)
    k = k.reshape(B, S, num_heads, d_k).transpose(0, 2, 1, 3)
    v = v.reshape(B, S, num_heads, d_k).transpose(0, 2, 1, 3)
    s = jnp.einsum("bhqd,bhkd->bhqk", q, k) / math.sqrt(d_k) + mask[None]
    pr = jax.nn.softmax(s, axis=-1)
    o = jnp.einsum("bhqk,bhkd->bhqd", pr, v).transpose(0, 2, 1, 3).reshape(B, S, D)
    o = o @ p["wo"] + p["bo"]
    y = ln(x + o, p["g1"], p["be1"])
    ff = jnp.maximum(y @ p["w1"] + p["b1"], 0.0) @ p["w2"] + p["b2"]
    return ln(y + ff, p["g2"], p["be2"])


if __name__ == "__main__":
    B, S, D, H, D_FF = 2, 8, 32, 4, 64

    key = jax.random.PRNGKey(0)
    keys = jax.random.split(key, 8)

    x = jax.random.normal(keys[0], (B, S, D), dtype=jnp.float32)
    # Padding-style additive mask shared across batch: last 2 key positions masked.
    key_ids = jnp.arange(S)
    mask = jnp.broadcast_to(
        jnp.where(key_ids[None, None, :] >= S - 2, -1e9, 0.0).astype(jnp.float32),
        (1, S, S))

    def lin(k, fan_in, fan_out):
        return 0.02 * jax.random.normal(k, (fan_in, fan_out), dtype=jnp.float32)

    params = {
        "wq": lin(keys[1], D, D), "bq": jnp.zeros((1, D), jnp.float32),
        "wk": lin(keys[2], D, D), "bk": jnp.zeros((1, D), jnp.float32),
        "wv": lin(keys[3], D, D), "bv": jnp.zeros((1, D), jnp.float32),
        "wo": lin(keys[4], D, D), "bo": jnp.zeros((1, D), jnp.float32),
        "w1": lin(keys[5], D, D_FF), "b1": jnp.zeros((1, D_FF), jnp.float32),
        "w2": lin(keys[6], D_FF, D), "b2": jnp.zeros((1, D), jnp.float32),
        "g1": jnp.ones((1, D), jnp.float32), "be1": jnp.zeros((1, D), jnp.float32),
        "g2": jnp.ones((1, D), jnp.float32), "be2": jnp.zeros((1, D), jnp.float32),
    }

    # TODO(synk): dropout is identity (inference); training would need PRNG dropout.
    out = encoder_layer(x, mask, params, num_heads=H)
    out = jax.block_until_ready(out)

    ref = reference_encoder_layer(x, mask[0], params, num_heads=H)
    assert out.shape == (B, S, D)
    err = float(jnp.max(jnp.abs(out - ref)))
    # bf16 matmuls + approx reciprocal -> looser tolerance than the f32 reference.
    assert jnp.allclose(out, ref, atol=2e-2, rtol=2e-2), f"mismatch vs reference, max_err={err}"

    print("KERNEL_OK")
</pallas_src>

<mosaic_0001>
module attributes {stable_mosaic.version = 11 : i64} {
  func.func @encoder_layer_kernel(%arg0: i32, %arg1: i32, %arg2: memref<1x8x32xf32, #tpu.memory_space<vmem>>, %arg3: memref<1x8x32xbf16, #tpu.memory_space<vmem>>, %arg4: memref<1x8x8xf32, #tpu.memory_space<vmem>>, %arg5: memref<4x32x8xbf16, #tpu.memory_space<vmem>>, %arg6: memref<4x1x8xf32, #tpu.memory_space<vmem>>, %arg7: memref<4x32x8xbf16, #tpu.memory_space<vmem>>, %arg8: memref<4x1x8xf32, #tpu.memory_space<vmem>>, %arg9: memref<4x32x8xbf16, #tpu.memory_space<vmem>>, %arg10: memref<4x1x8xf32, #tpu.memory_space<vmem>>, %arg11: memref<4x8x32xbf16, #tpu.memory_space<vmem>>, %arg12: memref<1x32xf32, #tpu.memory_space<vmem>>, %arg13: memref<32x64xbf16, #tpu.memory_space<vmem>>, %arg14: memref<1x64xf32, #tpu.memory_space<vmem>>, %arg15: memref<64x32xbf16, #tpu.memory_space<vmem>>, %arg16: memref<1x32xf32, #tpu.memory_space<vmem>>, %arg17: memref<1x32xf32, #tpu.memory_space<vmem>>, %arg18: memref<1x32xf32, #tpu.memory_space<vmem>>, %arg19: memref<1x32xf32, #tpu.memory_space<vmem>>, %arg20: memref<1x32xf32, #tpu.memory_space<vmem>>, %arg21: memref<1x8x32xf32, #tpu.memory_space<vmem>>, %arg22: memref<4x8x8xbf16, #tpu.memory_space<vmem>>, %arg23: memref<4x8x8xbf16, #tpu.memory_space<vmem>>) attributes {dimension_semantics = [#tpu.dimension_semantics<parallel>, #tpu.dimension_semantics<arbitrary>], iteration_bounds = array<i64: 2, 1>, scalar_prefetch = 0 : i64, scratch_operands = 2 : i64, tpu.core_type = #tpu.core_type<tc>, window_params = [{transform_indices = @transform_0, window_bounds = array<i64: 1, 8, 32>}, {transform_indices = @transform_1, window_bounds = array<i64: 1, 8, 32>}, {transform_indices = @transform_2, window_bounds = array<i64: 1, 8, 8>}, {pipeline_mode = #tpu.pipeline_mode<synchronous>, transform_indices = @transform_3, window_bounds = array<i64: 4, 32, 8>}, {pipeline_mode = #tpu.pipeline_mode<synchronous>, transform_indices = @transform_4, window_bounds = array<i64: 4, 1, 8>}, {pipeline_mode = #tpu.pipeline_mode<synchronous>, transform_indices = @transform_5, window_bounds = array<i64: 4, 32, 8>}, {pipeline_mode = #tpu.pipeline_mode<synchronous>, transform_indices = @transform_6, window_bounds = array<i64: 4, 1, 8>}, {pipeline_mode = #tpu.pipeline_mode<synchronous>, transform_indices = @transform_7, window_bounds = array<i64: 4, 32, 8>}, {pipeline_mode = #tpu.pipeline_mode<synchronous>, transform_indices = @transform_8, window_bounds = array<i64: 4, 1, 8>}, {pipeline_mode = #tpu.pipeline_mode<synchronous>, transform_indices = @transform_9, window_bounds = array<i64: 4, 8, 32>}, {pipeline_mode = #tpu.pipeline_mode<synchronous>, transform_indices = @transform_10, window_bounds = array<i64: 1, 32>}, {pipeline_mode = #tpu.pipeline_mode<synchronous>, transform_indices = @transform_11, window_bounds = array<i64: 32, 64>}, {pipeline_mode = #tpu.pipeline_mode<synchronous>, transform_indices = @transform_12, window_bounds = array<i64: 1, 64>}, {pipeline_mode = #tpu.pipeline_mode<synchronous>, transform_indices = @transform_13, window_bounds = array<i64: 64, 32>}, {pipeline_mode = #tpu.pipeline_mode<synchronous>, transform_indices = @transform_14, window_bounds = array<i64: 1, 32>}, {pipeline_mode = #tpu.pipeline_mode<synchronous>, transform_indices = @transform_15, window_bounds = array<i64: 1, 32>}, {pipeline_mode = #tpu.pipeline_mode<synchronous>, transform_indices = @transform_16, window_bounds = array<i64: 1, 32>}, {pipeline_mode = #tpu.pipeline_mode<synchronous>, transform_indices = @transform_17, window_bounds = array<i64: 1, 32>}, {pipeline_mode = #tpu.pipeline_mode<synchronous>, transform_indices = @transform_18, window_bounds = array<i64: 1, 32>}, {transform_indices = @transform_19, window_bounds = array<i64: 1, 8, 32>}]} {
    %c0_i32 = arith.constant 0 : i32
    %0 = arith.cmpi eq, %arg1, %c0_i32 : i32
    %1 = arith.extui %0 : i1 to i32
    %c0_i32_0 = arith.constant 0 : i32
    %2 = arith.cmpi ne, %1, %c0_i32_0 : i32
    scf.if %2 {
      %c0_90 = arith.constant 0 : index
      %c0_91 = arith.constant 0 : index
      %c0_92 = arith.constant 0 : index
      %157 = vector.load %arg3[%c0_90, %c0_91, %c0_92] : memref<1x8x32xbf16, #tpu.memory_space<vmem>>, vector<1x8x32xbf16>
      %158 = vector.shape_cast %157 : vector<1x8x32xbf16> to vector<8x32xbf16>
      %c0_93 = arith.constant 0 : index
      %c0_94 = arith.constant 0 : index
      %c0_95 = arith.constant 0 : index
      %159 = vector.load %arg7[%c0_93, %c0_94, %c0_95] : memref<4x32x8xbf16, #tpu.memory_space<vmem>>, vector<1x32x8xbf16>
      %160 = vector.shape_cast %159 : vector<1x32x8xbf16> to vector<32x8xbf16>
      %cst_96 = arith.constant dense<0.000000e+00> : vector<8x8xf32>
      %161 = tpu.matmul %158, %160, %cst_96 {dimension_numbers = #tpu.dot_dimension_numbers<[1], [0], [0], [1], [0, 0, 1, 1], [], []>} : vector<8x32xbf16>, vector<32x8xbf16>, vector<8x8xf32> -> vector<8x8xf32>
      %c0_97 = arith.constant 0 : index
      %c0_98 = arith.constant 0 : index
      %c0_99 = arith.constant 0 : index
      %162 = vector.load %arg8[%c0_97, %c0_98, %c0_99] : memref<4x1x8xf32, #tpu.memory_space<vmem>>, vector<1x1x8xf32>
      %163 = vector.shape_cast %162 : vector<1x1x8xf32> to vector<1x8xf32>
      %164 = vector.broadcast %163 : vector<1x8xf32> to vector<8x8xf32>
      %165 = arith.addf %161, %164 : vector<8x8xf32>
      %166 = arith.truncf %165 : vector<8x8xf32> to vector<8x8xbf16>
      %c0_100 = arith.constant 0 : index
      %c0_101 = arith.constant 0 : index
      %c0_102 = arith.constant 0 : index
      %167 = vector.load %arg22[%c0_100, %c0_101, %c0_102] : memref<4x8x8xbf16, #tpu.memory_space<vmem>>, vector<1x8x8xbf16>
      %168 = vector.shape_cast %167 : vector<1x8x8xbf16> to vector<8x8xbf16>
      %169 = vector.shape_cast %166 : vector<8x8xbf16> to vector<1x8x8xbf16>
      tpu.vector_store %arg22[%c0_100, %c0_101, %c0_102], %169 {strides = array<i32>} : memref<4x8x8xbf16, #tpu.memory_space<vmem>>, vector<1x8x8xbf16>,
      %c0_103 = arith.constant 0 : index
      %c0_104 = arith.constant 0 : index
      %c0_105 = arith.constant 0 : index
      %170 = vector.load %arg9[%c0_103, %c0_104, %c0_105] : memref<4x32x8xbf16, #tpu.memory_space<vmem>>, vector<1x32x8xbf16>
      %171 = vector.shape_cast %170 : vector<1x32x8xbf16> to vector<32x8xbf16>
      %cst_106 = arith.constant dense<0.000000e+00> : vector<8x8xf32>
      %172 = tpu.matmul %158, %171, %cst_106 {dimension_numbers = #tpu.dot_dimension_numbers<[1], [0], [0], [1], [0, 0, 1, 1], [], []>} : vector<8x32xbf16>, vector<32x8xbf16>, vector<8x8xf32> -> vector<8x8xf32>
      %c0_107 = arith.constant 0 : index
      %c0_108 = arith.constant 0 : index
      %c0_109 = arith.constant 0 : index
      %173 = vector.load %arg10[%c0_107, %c0_108, %c0_109] : memref<4x1x8xf32, #tpu.memory_space<vmem>>, vector<1x1x8xf32>
      %174 = vector.shape_cast %173 : vector<1x1x8xf32> to vector<1x8xf32>
      %175 = vector.broadcast %174 : vector<1x8xf32> to vector<8x8xf32>
      %176 = arith.addf %172, %175 : vector<8x8xf32>
      %177 = arith.truncf %176 : vector<8x8xf32> to vector<8x8xbf16>
      %c0_110 = arith.constant 0 : index
      %c0_111 = arith.constant 0 : index
      %c0_112 = arith.constant 0 : index
      %178 = vector.load %arg23[%c0_110, %c0_111, %c0_112] : memref<4x8x8xbf16, #tpu.memory_space<vmem>>, vector<1x8x8xbf16>
      %179 = vector.shape_cast %178 : vector<1x8x8xbf16> to vector<8x8xbf16>
      %180 = vector.shape_cast %177 : vector<8x8xbf16> to vector<1x8x8xbf16>
      tpu.vector_store %arg23[%c0_110, %c0_111, %c0_112], %180 {strides = array<i32>} : memref<4x8x8xbf16, #tpu.memory_space<vmem>>, vector<1x8x8xbf16>,
      %c1_113 = arith.constant 1 : index
      %c0_114 = arith.constant 0 : index
      %c0_115 = arith.constant 0 : index
      %181 = vector.load %arg7[%c1_113, %c0_114, %c0_115] : memref<4x32x8xbf16, #tpu.memory_space<vmem>>, vector<1x32x8xbf16>
      %182 = vector.shape_cast %181 : vector<1x32x8xbf16> to vector<32x8xbf16>
      %cst_116 = arith.constant dense<0.000000e+00> : vector<8x8xf32>
      %183 = tpu.matmul %158, %182, %cst_116 {dimension_numbers = #tpu.dot_dimension_numbers<[1], [0], [0], [1], [0, 0, 1, 1], [], []>} : vector<8x32xbf16>, vector<32x8xbf16>, vector<8x8xf32> -> vector<8x8xf32>
      %c1_117 = arith.constant 1 : index
      %c0_118 = arith.constant 0 : index
      %c0_119 = arith.constant 0 : index
      %184 = vector.load %arg8[%c1_117, %c0_118, %c0_119] : memref<4x1x8xf32, #tpu.memory_space<vmem>>, vector<1x1x8xf32>
      %185 = vector.shape_cast %184 : vector<1x1x8xf32> to vector<1x8xf32>
      %186 = vector.broadcast %185 : vector<1x8xf32> to vector<8x8xf32>
      %187 = arith.addf %183, %186 : vector<8x8xf32>
      %188 = arith.truncf %187 : vector<8x8xf32> to vector<8x8xbf16>
      %c1_120 = arith.constant 1 : index
      %c0_121 = arith.constant 0 : index
      %c0_122 = arith.constant 0 : index
      %189 = vector.load %arg22[%c1_120, %c0_121, %c0_122] : memref<4x8x8xbf16, #tpu.memory_space<vmem>>, vector<1x8x8xbf16>
      %190 = vector.shape_cast %189 : vector<1x8x8xbf16> to vector<8x8xbf16>
      %191 = vector.shape_cast %188 : vector<8x8xbf16> to vector<1x8x8xbf16>
      tpu.vector_store %arg22[%c1_120, %c0_121, %c0_122], %191 {strides = array<i32>} : memref<4x8x8xbf16, #tpu.memory_space<vmem>>, vector<1x8x8xbf16>,
      %c1_123 = arith.constant 1 : index
      %c0_124 = arith.constant 0 : index
      %c0_125 = arith.constant 0 : index
      %192 = vector.load %arg9[%c1_123, %c0_124, %c0_125] : memref<4x32x8xbf16, #tpu.memory_space<vmem>>, vector<1x32x8xbf16>
      %193 = vector.shape_cast %192 : vector<1x32x8xbf16> to vector<32x8xbf16>
      %cst_126 = arith.constant dense<0.000000e+00> : vector<8x8xf32>
      %194 = tpu.matmul %158, %193, %cst_126 {dimension_numbers = #tpu.dot_dimension_numbers<[1], [0], [0], [1], [0, 0, 1, 1], [], []>} : vector<8x32xbf16>, vector<32x8xbf16>, vector<8x8xf32> -> vector<8x8xf32>
      %c1_127 = arith.constant 1 : index
      %c0_128 = arith.constant 0 : index
      %c0_129 = arith.constant 0 : index
      %195 = vector.load %arg10[%c1_127, %c0_128, %c0_129] : memref<4x1x8xf32, #tpu.memory_space<vmem>>, vector<1x1x8xf32>
      %196 = vector.shape_cast %195 : vector<1x1x8xf32> to vector<1x8xf32>
      %197 = vector.broadcast %196 : vector<1x8xf32> to vector<8x8xf32>
      %198 = arith.addf %194, %197 : vector<8x8xf32>
      %199 = arith.truncf %198 : vector<8x8xf32> to vector<8x8xbf16>
      %c1_130 = arith.constant 1 : index
      %c0_131 = arith.constant 0 : index
      %c0_132 = arith.constant 0 : index
      %200 = vector.load %arg23[%c1_130, %c0_131, %c0_132] : memref<4x8x8xbf16, #tpu.memory_space<vmem>>, vector<1x8x8xbf16>
      %201 = vector.shape_cast %200 : vector<1x8x8xbf16> to vector<8x8xbf16>
      %202 = vector.shape_cast %199 : vector<8x8xbf16> to vector<1x8x8xbf16>
      tpu.vector_store %arg23[%c1_130, %c0_131, %c0_132], %202 {strides = array<i32>} : memref<4x8x8xbf16, #tpu.memory_space<vmem>>, vector<1x8x8xbf16>,
      %c2_133 = arith.constant 2 : index
      %c0_134 = arith.constant 0 : index
      %c0_135 = arith.constant 0 : index
      %203 = vector.load %arg7[%c2_133, %c0_134, %c0_135] : memref<4x32x8xbf16, #tpu.memory_space<vmem>>, vector<1x32x8xbf16>
      %204 = vector.shape_cast %203 : vector<1x32x8xbf16> to vector<32x8xbf16>
      %cst_136 = arith.constant dense<0.000000e+00> : vector<8x8xf32>
      %205 = tpu.matmul %158, %204, %cst_136 {dimension_numbers = #tpu.dot_dimension_numbers<[1], [0], [0], [1], [0, 0, 1, 1], [], []>} : vector<8x32xbf16>, vector<32x8xbf16>, vector<8x8xf32> -> vector<8x8xf32>
      %c2_137 = arith.constant 2 : index
      %c0_138 = arith.constant 0 : index
      %c0_139 = arith.constant 0 : index
      %206 = vector.load %arg8[%c2_137, %c0_138, %c0_139] : memref<4x1x8xf32, #tpu.memory_space<vmem>>, vector<1x1x8xf32>
      %207 = vector.shape_cast %206 : vector<1x1x8xf32> to vector<1x8xf32>
      %208 = vector.broadcast %207 : vector<1x8xf32> to vector<8x8xf32>
      %209 = arith.addf %205, %208 : vector<8x8xf32>
      %210 = arith.truncf %209 : vector<8x8xf32> to vector<8x8xbf16>
      %c2_140 = arith.constant 2 : index
      %c0_141 = arith.constant 0 : index
      %c0_142 = arith.constant 0 : index
      %211 = vector.load %arg22[%c2_140, %c0_141, %c0_142] : memref<4x8x8xbf16, #tpu.memory_space<vmem>>, vector<1x8x8xbf16>
      %212 = vector.shape_cast %211 : vector<1x8x8xbf16> to vector<8x8xbf16>
      %213 = vector.shape_cast %210 : vector<8x8xbf16> to vector<1x8x8xbf16>
      tpu.vector_store %arg22[%c2_140, %c0_141, %c0_142], %213 {strides = array<i32>} : memref<4x8x8xbf16, #tpu.memory_space<vmem>>, vector<1x8x8xbf16>,
      %c2_143 = arith.constant 2 : index
      %c0_144 = arith.constant 0 : index
      %c0_145 = arith.constant 0 : index
      %214 = vector.load %arg9[%c2_143, %c0_144, %c0_145] : memref<4x32x8xbf16, #tpu.memory_space<vmem>>, vector<1x32x8xbf16>
      %215 = vector.shape_cast %214 : vector<1x32x8xbf16> to vector<32x8xbf16>
      %cst_146 = arith.constant dense<0.000000e+00> : vector<8x8xf32>
      %216 = tpu.matmul %158, %215, %cst_146 {dimension_numbers = #tpu.dot_dimension_numbers<[1], [0], [0], [1], [0, 0, 1, 1], [], []>} : vector<8x32xbf16>, vector<32x8xbf16>, vector<8x8xf32> -> vector<8x8xf32>
      %c2_147 = arith.constant 2 : index
      %c0_148 = arith.constant 0 : index
      %c0_149 = arith.constant 0 : index
      %217 = vector.load %arg10[%c2_147, %c0_148, %c0_149] : memref<4x1x8xf32, #tpu.memory_space<vmem>>, vector<1x1x8xf32>
      %218 = vector.shape_cast %217 : vector<1x1x8xf32> to vector<1x8xf32>
      %219 = vector.broadcast %218 : vector<1x8xf32> to vector<8x8xf32>
      %220 = arith.addf %216, %219 : vector<8x8xf32>
      %221 = arith.truncf %220 : vector<8x8xf32> to vector<8x8xbf16>
      %c2_150 = arith.constant 2 : index
      %c0_151 = arith.constant 0 : index
      %c0_152 = arith.constant 0 : index
      %222 = vector.load %arg23[%c2_150, %c0_151, %c0_152] : memref<4x8x8xbf16, #tpu.memory_space<vmem>>, vector<1x8x8xbf16>
      %223 = vector.shape_cast %222 : vector<1x8x8xbf16> to vector<8x8xbf16>
      %224 = vector.shape_cast %221 : vector<8x8xbf16> to vector<1x8x8xbf16>
      tpu.vector_store %arg23[%c2_150, %c0_151, %c0_152], %224 {strides = array<i32>} : memref<4x8x8xbf16, #tpu.memory_space<vmem>>, vector<1x8x8xbf16>,
      %c3_153 = arith.constant 3 : index
      %c0_154 = arith.constant 0 : index
      %c0_155 = arith.constant 0 : index
      %225 = vector.load %arg7[%c3_153, %c0_154, %c0_155] : memref<4x32x8xbf16, #tpu.memory_space<vmem>>, vector<1x32x8xbf16>
      %226 = vector.shape_cast %225 : vector<1x32x8xbf16> to vector<32x8xbf16>
      %cst_156 = arith.constant dense<0.000000e+00> : vector<8x8xf32>
      %227 = tpu.matmul %158, %226, %cst_156 {dimension_numbers = #tpu.dot_dimension_numbers<[1], [0], [0], [1], [0, 0, 1, 1], [], []>} : vector<8x32xbf16>, vector<32x8xbf16>, vector<8x8xf32> -> vector<8x8xf32>
      %c3_157 = arith.constant 3 : index
      %c0_158 = arith.constant 0 : index
      %c0_159 = arith.constant 0 : index
      %228 = vector.load %arg8[%c3_157, %c0_158, %c0_159] : memref<4x1x8xf32, #tpu.memory_space<vmem>>, vector<1x1x8xf32>
      %229 = vector.shape_cast %228 : vector<1x1x8xf32> to vector<1x8xf32>
      %230 = vector.broadcast %229 : vector<1x8xf32> to vector<8x8xf32>
      %231 = arith.addf %227, %230 : vector<8x8xf32>
      %232 = arith.truncf %231 : vector<8x8xf32> to vector<8x8xbf16>
      %c3_160 = arith.constant 3 : index
      %c0_161 = arith.constant 0 : index
      %c0_162 = arith.constant 0 : index
      %233 = vector.load %arg22[%c3_160, %c0_161, %c0_162] : memref<4x8x8xbf16, #tpu.memory_space<vmem>>, vector<1x8x8xbf16>
      %234 = vector.shape_cast %233 : vector<1x8x8xbf16> to vector<8x8xbf16>
      %235 = vector.shape_cast %232 : vector<8x8xbf16> to vector<1x8x8xbf16>
      tpu.vector_store %arg22[%c3_160, %c0_161, %c0_162], %235 {strides = array<i32>} : memref<4x8x8xbf16, #tpu.memory_space<vmem>>, vector<1x8x8xbf16>,
      %c3_163 = arith.constant 3 : index
      %c0_164 = arith.constant 0 : index
      %c0_165 = arith.constant 0 : index
      %236 = vector.load %arg9[%c3_163, %c0_164, %c0_165] : memref<4x32x8xbf16, #tpu.memory_space<vmem>>, vector<1x32x8xbf16>
      %237 = vector.shape_cast %236 : vector<1x32x8xbf16> to vector<32x8xbf16>
      %cst_166 = arith.constant dense<0.000000e+00> : vector<8x8xf32>
      %238 = tpu.matmul %158, %237, %cst_166 {dimension_numbers = #tpu.dot_dimension_numbers<[1], [0], [0], [1], [0, 0, 1, 1], [], []>} : vector<8x32xbf16>, vector<32x8xbf16>, vector<8x8xf32> -> vector<8x8xf32>
      %c3_167 = arith.constant 3 : index
      %c0_168 = arith.constant 0 : index
      %c0_169 = arith.constant 0 : index
      %239 = vector.load %arg10[%c3_167, %c0_168, %c0_169] : memref<4x1x8xf32, #tpu.memory_space<vmem>>, vector<1x1x8xf32>
      %240 = vector.shape_cast %239 : vector<1x1x8xf32> to vector<1x8xf32>
      %241 = vector.broadcast %240 : vector<1x8xf32> to vector<8x8xf32>
      %242 = arith.addf %238, %241 : vector<8x8xf32>
      %243 = arith.truncf %242 : vector<8x8xf32> to vector<8x8xbf16>
      %c3_170 = arith.constant 3 : index
      %c0_171 = arith.constant 0 : index
      %c0_172 = arith.constant 0 : index
      %244 = vector.load %arg23[%c3_170, %c0_171, %c0_172] : memref<4x8x8xbf16, #tpu.memory_space<vmem>>, vector<1x8x8xbf16>
      %245 = vector.shape_cast %244 : vector<1x8x8xbf16> to vector<8x8xbf16>
      %246 = vector.shape_cast %243 : vector<8x8xbf16> to vector<1x8x8xbf16>
      tpu.vector_store %arg23[%c3_170, %c0_171, %c0_172], %246 {strides = array<i32>} : memref<4x8x8xbf16, #tpu.memory_space<vmem>>, vector<1x8x8xbf16>,
    } else {
    }
    %c0 = arith.constant 0 : index
    %c0_1 = arith.constant 0 : index
    %c0_2 = arith.constant 0 : index
    %3 = vector.load %arg2[%c0, %c0_1, %c0_2] : memref<1x8x32xf32, #tpu.memory_space<vmem>>, vector<1x8x32xf32>
    %4 = vector.shape_cast %3 : vector<1x8x32xf32> to vector<8x32xf32>
    %5 = arith.truncf %4 : vector<8x32xf32> to vector<8x32xbf16>
    %c0_3 = arith.constant 0 : index
    %c0_4 = arith.constant 0 : index
    %c0_5 = arith.constant 0 : index
    %6 = vector.load %arg5[%c0_3, %c0_4, %c0_5] : memref<4x32x8xbf16, #tpu.memory_space<vmem>>, vector<1x32x8xbf16>
    %7 = vector.shape_cast %6 : vector<1x32x8xbf16> to vector<32x8xbf16>
    %cst = arith.constant dense<0.000000e+00> : vector<8x8xf32>
    %8 = tpu.matmul %5, %7, %cst {dimension_numbers = #tpu.dot_dimension_numbers<[1], [0], [0], [1], [0, 0, 1, 1], [], []>} : vector<8x32xbf16>, vector<32x8xbf16>, vector<8x8xf32> -> vector<8x8xf32>
    %c0_6 = arith.constant 0 : index
    %c0_7 = arith.constant 0 : index
    %c0_8 = arith.constant 0 : index
    %9 = vector.load %arg6[%c0_6, %c0_7, %c0_8] : memref<4x1x8xf32, #tpu.memory_space<vmem>>, vector<1x1x8xf32>
    %10 = vector.shape_cast %9 : vector<1x1x8xf32> to vector<1x8xf32>
    %11 = vector.broadcast %10 : vector<1x8xf32> to vector<8x8xf32>
    %12 = arith.addf %8, %11 : vector<8x8xf32>
    %13 = arith.truncf %12 : vector<8x8xf32> to vector<8x8xbf16>
    %c1 = arith.constant 1 : index
    %c0_9 = arith.constant 0 : index
    %c0_10 = arith.constant 0 : index
    %14 = vector.load %arg5[%c1, %c0_9, %c0_10] : memref<4x32x8xbf16, #tpu.memory_space<vmem>>, vector<1x32x8xbf16>
    %15 = vector.shape_cast %14 : vector<1x32x8xbf16> to vector<32x8xbf16>
    %cst_11 = arith.constant dense<0.000000e+00> : vector<8x8xf32>
    %16 = tpu.matmul %5, %15, %cst_11 {dimension_numbers = #tpu.dot_dimension_numbers<[1], [0], [0], [1], [0, 0, 1, 1], [], []>} : vector<8x32xbf16>, vector<32x8xbf16>, vector<8x8xf32> -> vector<8x8xf32>
    %c1_12 = arith.constant 1 : index
    %c0_13 = arith.constant 0 : index
    %c0_14 = arith.constant 0 : index
    %17 = vector.load %arg6[%c1_12, %c0_13, %c0_14] : memref<4x1x8xf32, #tpu.memory_space<vmem>>, vector<1x1x8xf32>
    %18 = vector.shape_cast %17 : vector<1x1x8xf32> to vector<1x8xf32>
    %19 = vector.broadcast %18 : vector<1x8xf32> to vector<8x8xf32>
    %20 = arith.addf %16, %19 : vector<8x8xf32>
    %21 = arith.truncf %20 : vector<8x8xf32> to vector<8x8xbf16>
    %c2 = arith.constant 2 : index
    %c0_15 = arith.constant 0 : index
    %c0_16 = arith.constant 0 : index
    %22 = vector.load %arg5[%c2, %c0_15, %c0_16] : memref<4x32x8xbf16, #tpu.memory_space<vmem>>, vector<1x32x8xbf16>
    %23 = vector.shape_cast %22 : vector<1x32x8xbf16> to vector<32x8xbf16>
    %cst_17 = arith.constant dense<0.000000e+00> : vector<8x8xf32>
    %24 = tpu.matmul %5, %23, %cst_17 {dimension_numbers = #tpu.dot_dimension_numbers<[1], [0], [0], [1], [0, 0, 1, 1], [], []>} : vector<8x32xbf16>, vector<32x8xbf16>, vector<8x8xf32> -> vector<8x8xf32>
    %c2_18 = arith.constant 2 : index
    %c0_19 = arith.constant 0 : index
    %c0_20 = arith.constant 0 : index
    %25 = vector.load %arg6[%c2_18, %c0_19, %c0_20] : memref<4x1x8xf32, #tpu.memory_space<vmem>>, vector<1x1x8xf32>
    %26 = vector.shape_cast %25 : vector<1x1x8xf32> to vector<1x8xf32>
    %27 = vector.broadcast %26 : vector<1x8xf32> to vector<8x8xf32>
    %28 = arith.addf %24, %27 : vector<8x8xf32>
    %29 = arith.truncf %28 : vector<8x8xf32> to vector<8x8xbf16>
    %c3 = arith.constant 3 : index
    %c0_21 = arith.constant 0 : index
    %c0_22 = arith.constant 0 : index
    %30 = vector.load %arg5[%c3, %c0_21, %c0_22] : memref<4x32x8xbf16, #tpu.memory_space<vmem>>, vector<1x32x8xbf16>
    %31 = vector.shape_cast %30 : vector<1x32x8xbf16> to vector<32x8xbf16>
    %cst_23 = arith.constant dense<0.000000e+00> : vector<8x8xf32>
    %32 = tpu.matmul %5, %31, %cst_23 {dimension_numbers = #tpu.dot_dimension_numbers<[1], [0], [0], [1], [0, 0, 1, 1], [], []>} : vector<8x32xbf16>, vector<32x8xbf16>, vector<8x8xf32> -> vector<8x8xf32>
    %c3_24 = arith.constant 3 : index
    %c0_25 = arith.constant 0 : index
    %c0_26 = arith.constant 0 : index
    %33 = vector.load %arg6[%c3_24, %c0_25, %c0_26] : memref<4x1x8xf32, #tpu.memory_space<vmem>>, vector<1x1x8xf32>
    %34 = vector.shape_cast %33 : vector<1x1x8xf32> to vector<1x8xf32>
    %35 = vector.broadcast %34 : vector<1x8xf32> to vector<8x8xf32>
    %36 = arith.addf %32, %35 : vector<8x8xf32>
    %37 = arith.truncf %36 : vector<8x8xf32> to vector<8x8xbf16>
    %38 = vector.shape_cast %13 : vector<8x8xbf16> to vector<1x8x8xbf16>
    %39 = vector.shape_cast %21 : vector<8x8xbf16> to vector<1x8x8xbf16>
    %40 = vector.shape_cast %29 : vector<8x8xbf16> to vector<1x8x8xbf16>
    %41 = vector.shape_cast %37 : vector<8x8xbf16> to vector<1x8x8xbf16>
    %42 = tpu.concatenate %38, %39, %40, %41 in 0 : vector<1x8x8xbf16>, vector<1x8x8xbf16>, vector<1x8x8xbf16>, vector<1x8x8xbf16> -> vector<4x8x8xbf16>
    %c0_27 = arith.constant 0 : index
    %c0_28 = arith.constant 0 : index
    %c0_29 = arith.constant 0 : index
    %43 = vector.load %arg22[%c0_27, %c0_28, %c0_29] : memref<4x8x8xbf16, #tpu.memory_space<vmem>>, vector<4x8x8xbf16>
    "tpu.trace_start"() <{level = 10 : i32, message = "hqd,hkd->hqk"}> : () -> ()
    %cst_30 = arith.constant dense<0.000000e+00> : vector<4x8x8xf32>
    %44 = tpu.matmul %42, %43, %cst_30 {dimension_numbers = #tpu.dot_dimension_numbers<[2], [2], [1], [1], [0, 0, 0, 1, 1, 1], [0], [0]>} : vector<4x8x8xbf16>, vector<4x8x8xbf16>, vector<4x8x8xf32> -> vector<4x8x8xf32>
    "tpu.trace_stop"() : () -> ()
    %c0_31 = arith.constant 0 : index
    %c0_32 = arith.constant 0 : index
    %c0_33 = arith.constant 0 : index
    %45 = vector.load %arg4[%c0_31, %c0_32, %c0_33] : memref<1x8x8xf32, #tpu.memory_space<vmem>>, vector<1x8x8xf32>
    %46 = vector.shape_cast %45 : vector<1x8x8xf32> to vector<8x8xf32>
    %47 = vector.shape_cast %46 : vector<8x8xf32> to vector<1x8x8xf32>
    %48 = vector.broadcast %47 : vector<1x8x8xf32> to vector<4x8x8xf32>
    %49 = arith.addf %44, %48 : vector<4x8x8xf32>
    %cst_34 = arith.constant dense<0xFF800000> : vector<4x8xf32>
    %50 = vector.multi_reduction <maximumf>, %49, %cst_34 [2] : vector<4x8x8xf32> to vector<4x8xf32>
    %51 = vector.shape_cast %50 : vector<4x8xf32> to vector<4x8x1xf32>
    %52 = vector.broadcast %51 : vector<4x8x1xf32> to vector<4x8x8xf32>
    %53 = arith.subf %49, %52 : vector<4x8x8xf32>
    %54 = math.exp %53 : vector<4x8x8xf32>
    %cst_35 = arith.constant dense<0.000000e+00> : vector<4x8xf32>
    %55 = vector.multi_reduction <add>, %54, %cst_35 [2] : vector<4x8x8xf32> to vector<4x8xf32>
    %56 = vector.shape_cast %55 : vector<4x8xf32> to vector<4x8x1xf32>
    %57 = tpu.reciprocal %56 {approx = true} : vector<4x8x1xf32> -> vector<4x8x1xf32>
    %58 = vector.broadcast %57 : vector<4x8x1xf32> to vector<4x8x8xf32>
    %59 = arith.mulf %54, %58 : vector<4x8x8xf32>
    %60 = arith.truncf %59 : vector<4x8x8xf32> to vector<4x8x8xbf16>
    %c0_36 = arith.constant 0 : index
    %c0_37 = arith.constant 0 : index
    %c0_38 = arith.constant 0 : index
    %61 = vector.load %arg23[%c0_36, %c0_37, %c0_38] : memref<4x8x8xbf16, #tpu.memory_space<vmem>>, vector<4x8x8xbf16>
    "tpu.trace_start"() <{level = 10 : i32, message = "hqk,hkd->hqd"}> : () -> ()
    %cst_39 = arith.constant dense<0.000000e+00> : vector<4x8x8xf32>
    %62 = tpu.matmul %60, %61, %cst_39 {dimension_numbers = #tpu.dot_dimension_numbers<[2], [1], [1], [2], [0, 0, 0, 1, 1, 2], [0], [0]>} : vector<4x8x8xbf16>, vector<4x8x8xbf16>, vector<4x8x8xf32> -> vector<4x8x8xf32>
    "tpu.trace_stop"() : () -> ()
    %63 = arith.truncf %62 : vector<4x8x8xf32> to vector<4x8x8xbf16>
    %64 = vector.extract_strided_slice %63 {offsets = [0, 0, 0], sizes = [1, 8, 8], strides = [1, 1, 1]} : vector<4x8x8xbf16> to vector<1x8x8xbf16>
    %65 = vector.shape_cast %64 : vector<1x8x8xbf16> to vector<8x8xbf16>
    %c0_40 = arith.constant 0 : index
    %c0_41 = arith.constant 0 : index
    %c0_42 = arith.constant 0 : index
    %66 = vector.load %arg11[%c0_40, %c0_41, %c0_42] : memref<4x8x32xbf16, #tpu.memory_space<vmem>>, vector<1x8x32xbf16>
    %67 = vector.shape_cast %66 : vector<1x8x32xbf16> to vector<8x32xbf16>
    %cst_43 = arith.constant dense<0.000000e+00> : vector<8x32xf32>
    %68 = tpu.matmul %65, %67, %cst_43 {dimension_numbers = #tpu.dot_dimension_numbers<[1], [0], [0], [1], [0, 0, 1, 1], [], []>} : vector<8x8xbf16>, vector<8x32xbf16>, vector<8x32xf32> -> vector<8x32xf32>
    %69 = vector.extract_strided_slice %63 {offsets = [1, 0, 0], sizes = [1, 8, 8], strides = [1, 1, 1]} : vector<4x8x8xbf16> to vector<1x8x8xbf16>
    %70 = vector.shape_cast %69 : vector<1x8x8xbf16> to vector<8x8xbf16>
    %c1_44 = arith.constant 1 : index
    %c0_45 = arith.constant 0 : index
    %c0_46 = arith.constant 0 : index
    %71 = vector.load %arg11[%c1_44, %c0_45, %c0_46] : memref<4x8x32xbf16, #tpu.memory_space<vmem>>, vector<1x8x32xbf16>
    %72 = vector.shape_cast %71 : vector<1x8x32xbf16> to vector<8x32xbf16>
    %cst_47 = arith.constant dense<0.000000e+00> : vector<8x32xf32>
    %73 = tpu.matmul %70, %72, %cst_47 {dimension_numbers = #tpu.dot_dimension_numbers<[1], [0], [0], [1], [0, 0, 1, 1], [], []>} : vector<8x8xbf16>, vector<8x32xbf16>, vector<8x32xf32> -> vector<8x32xf32>
    %74 = arith.addf %68, %73 : vector<8x32xf32>
    %75 = vector.extract_strided_slice %63 {offsets = [2, 0, 0], sizes = [1, 8, 8], strides = [1, 1, 1]} : vector<4x8x8xbf16> to vector<1x8x8xbf16>
    %76 = vector.shape_cast %75 : vector<1x8x8xbf16> to vector<8x8xbf16>
    %c2_48 = arith.constant 2 : index
    %c0_49 = arith.constant 0 : index
    %c0_50 = arith.constant 0 : index
    %77 = vector.load %arg11[%c2_48, %c0_49, %c0_50] : memref<4x8x32xbf16, #tpu.memory_space<vmem>>, vector<1x8x32xbf16>
    %78 = vector.shape_cast %77 : vector<1x8x32xbf16> to vector<8x32xbf16>
    %cst_51 = arith.constant dense<0.000000e+00> : vector<8x32xf32>
    %79 = tpu.matmul %76, %78, %cst_51 {dimension_numbers = #tpu.dot_dimension_numbers<[1], [0], [0], [1], [0, 0, 1, 1], [], []>} : vector<8x8xbf16>, vector<8x32xbf16>, vector<8x32xf32> -> vector<8x32xf32>
    %80 = arith.addf %74, %79 : vector<8x32xf32>
    %81 = vector.extract_strided_slice %63 {offsets = [3, 0, 0], sizes = [1, 8, 8], strides = [1, 1, 1]} : vector<4x8x8xbf16> to vector<1x8x8xbf16>
    %82 = vector.shape_cast %81 : vector<1x8x8xbf16> to vector<8x8xbf16>
    %c3_52 = arith.constant 3 : index
    %c0_53 = arith.constant 0 : index
    %c0_54 = arith.constant 0 : index
    %83 = vector.load %arg11[%c3_52, %c0_53, %c0_54] : memref<4x8x32xbf16, #tpu.memory_space<vmem>>, vector<1x8x32xbf16>
    %84 = vector.shape_cast %83 : vector<1x8x32xbf16> to vector<8x32xbf16>
    %cst_55 = arith.constant dense<0.000000e+00> : vector<8x32xf32>
    %85 = tpu.matmul %82, %84, %cst_55 {dimension_numbers = #tpu.dot_dimension_numbers<[1], [0], [0], [1], [0, 0, 1, 1], [], []>} : vector<8x8xbf16>, vector<8x32xbf16>, vector<8x32xf32> -> vector<8x32xf32>
    %86 = arith.addf %80, %85 : vector<8x32xf32>
    %c0_56 = arith.constant 0 : index
    %c0_57 = arith.constant 0 : index
    %87 = vector.load %arg12[%c0_56, %c0_57] : memref<1x32xf32, #tpu.memory_space<vmem>>, vector<1x32xf32>
    %88 = vector.broadcast %87 : vector<1x32xf32> to vector<8x32xf32>
    %89 = arith.addf %86, %88 : vector<8x32xf32>
    %90 = arith.addf %4, %89 : vector<8x32xf32>
    %c0_58 = arith.constant 0 : index
    %c0_59 = arith.constant 0 : index
    %91 = vector.load %arg17[%c0_58, %c0_59] : memref<1x32xf32, #tpu.memory_space<vmem>>, vector<1x32xf32>
    %c0_60 = arith.constant 0 : index
    %c0_61 = arith.constant 0 : index
    %92 = vector.load %arg18[%c0_60, %c0_61] : memref<1x32xf32, #tpu.memory_space<vmem>>, vector<1x32xf32>
    %cst_62 = arith.constant dense<0.000000e+00> : vector<8xf32>
    %93 = vector.multi_reduction <add>, %90, %cst_62 [1] : vector<8x32xf32> to vector<8xf32>
    %94 = vector.shape_cast %93 : vector<8xf32> to vector<8x1xf32>
    %cst_63 = arith.constant 3.200000e+01 : f32
    %95 = vector.broadcast %cst_63 : f32 to vector<8x1xf32>
    %96 = arith.divf %94, %95 : vector<8x1xf32>
    %97 = vector.broadcast %96 : vector<8x1xf32> to vector<8x32xf32>
    %98 = arith.subf %90, %97 : vector<8x32xf32>
    %99 = arith.mulf %98, %98 : vector<8x32xf32>
    %cst_64 = arith.constant dense<0.000000e+00> : vector<8xf32>
    %100 = vector.multi_reduction <add>, %99, %cst_64 [1] : vector<8x32xf32> to vector<8xf32>
    %101 = vector.shape_cast %100 : vector<8xf32> to vector<8x1xf32>
    %cst_65 = arith.constant 3.200000e+01 : f32
    %102 = vector.broadcast %cst_65 : f32 to vector<8x1xf32>
    %103 = arith.divf %101, %102 : vector<8x1xf32>
    %104 = vector.broadcast %96 : vector<8x1xf32> to vector<8x32xf32>
    %105 = arith.subf %90, %104 : vector<8x32xf32>
    %cst_66 = arith.constant 9.99999974E-6 : f32
    %106 = vector.broadcast %cst_66 : f32 to vector<8x1xf32>
    %107 = arith.addf %103, %106 : vector<8x1xf32>
    %108 = math.rsqrt %107 : vector<8x1xf32>
    %109 = vector.broadcast %108 : vector<8x1xf32> to vector<8x32xf32>
    %110 = arith.mulf %105, %109 : vector<8x32xf32>
    %111 = vector.broadcast %91 : vector<1x32xf32> to vector<8x32xf32>
    %112 = arith.mulf %110, %111 : vector<8x32xf32>
    %113 = vector.broadcast %92 : vector<1x32xf32> to vector<8x32xf32>
    %114 = arith.addf %112, %113 : vector<8x32xf32>
    %115 = arith.truncf %114 : vector<8x32xf32> to vector<8x32xbf16>
    %c0_67 = arith.constant 0 : index
    %c0_68 = arith.constant 0 : index
    %116 = vector.load %arg13[%c0_67, %c0_68] : memref<32x64xbf16, #tpu.memory_space<vmem>>, vector<32x64xbf16>
    %cst_69 = arith.constant dense<0.000000e+00> : vector<8x64xf32>
    %117 = tpu.matmul %115, %116, %cst_69 {dimension_numbers = #tpu.dot_dimension_numbers<[1], [0], [0], [1], [0, 0, 1, 1], [], []>} : vector<8x32xbf16>, vector<32x64xbf16>, vector<8x64xf32> -> vector<8x64xf32>
    %c0_70 = arith.constant 0 : index
    %c0_71 = arith.constant 0 : index
    %118 = vector.load %arg14[%c0_70, %c0_71] : memref<1x64xf32, #tpu.memory_space<vmem>>, vector<1x64xf32>
    %119 = vector.broadcast %118 : vector<1x64xf32> to vector<8x64xf32>
    %120 = arith.addf %117, %119 : vector<8x64xf32>
    %cst_72 = arith.constant 0.000000e+00 : f32
    %121 = vector.broadcast %cst_72 : f32 to vector<8x64xf32>
    %122 = arith.maximumf %120, %121 : vector<8x64xf32>
    %123 = arith.truncf %122 : vector<8x64xf32> to vector<8x64xbf16>
    %c0_73 = arith.constant 0 : index
    %c0_74 = arith.constant 0 : index
    %124 = vector.load %arg15[%c0_73, %c0_74] : memref<64x32xbf16, #tpu.memory_space<vmem>>, vector<64x32xbf16>
    %cst_75 = arith.constant dense<0.000000e+00> : vector<8x32xf32>
    %125 = tpu.matmul %123, %124, %cst_75 {dimension_numbers = #tpu.dot_dimension_numbers<[1], [0], [0], [1], [0, 0, 1, 1], [], []>} : vector<8x64xbf16>, vector<64x32xbf16>, vector<8x32xf32> -> vector<8x32xf32>
    %c0_76 = arith.constant 0 : index
    %c0_77 = arith.constant 0 : index
    %126 = vector.load %arg16[%c0_76, %c0_77] : memref<1x32xf32, #tpu.memory_space<vmem>>, vector<1x32xf32>
    %127 = vector.broadcast %126 : vector<1x32xf32> to vector<8x32xf32>
    %128 = arith.addf %125, %127 : vector<8x32xf32>
    %129 = arith.addf %114, %128 : vector<8x32xf32>
    %c0_78 = arith.constant 0 : index
    %c0_79 = arith.constant 0 : index
    %130 = vector.load %arg19[%c0_78, %c0_79] : memref<1x32xf32, #tpu.memory_space<vmem>>, vector<1x32xf32>
    %c0_80 = arith.constant 0 : index
    %c0_81 = arith.constant 0 : index
    %131 = vector.load %arg20[%c0_80, %c0_81] : memref<1x32xf32, #tpu.memory_space<vmem>>, vector<1x32xf32>
    %cst_82 = arith.constant dense<0.000000e+00> : vector<8xf32>
    %132 = vector.multi_reduction <add>, %129, %cst_82 [1] : vector<8x32xf32> to vector<8xf32>
    %133 = vector.shape_cast %132 : vector<8xf32> to vector<8x1xf32>
    %cst_83 = arith.constant 3.200000e+01 : f32
    %134 = vector.broadcast %cst_83 : f32 to vector<8x1xf32>
    %135 = arith.divf %133, %134 : vector<8x1xf32>
    %136 = vector.broadcast %135 : vector<8x1xf32> to vector<8x32xf32>
    %137 = arith.subf %129, %136 : vector<8x32xf32>
    %138 = arith.mulf %137, %137 : vector<8x32xf32>
    %cst_84 = arith.constant dense<0.000000e+00> : vector<8xf32>
    %139 = vector.multi_reduction <add>, %138, %cst_84 [1] : vector<8x32xf32> to vector<8xf32>
    %140 = vector.shape_cast %139 : vector<8xf32> to vector<8x1xf32>
    %cst_85 = arith.constant 3.200000e+01 : f32
    %141 = vector.broadcast %cst_85 : f32 to vector<8x1xf32>
    %142 = arith.divf %140, %141 : vector<8x1xf32>
    %143 = vector.broadcast %135 : vector<8x1xf32> to vector<8x32xf32>
    %144 = arith.subf %129, %143 : vector<8x32xf32>
    %cst_86 = arith.constant 9.99999974E-6 : f32
    %145 = vector.broadcast %cst_86 : f32 to vector<8x1xf32>
    %146 = arith.addf %142, %145 : vector<8x1xf32>
    %147 = math.rsqrt %146 : vector<8x1xf32>
    %148 = vector.broadcast %147 : vector<8x1xf32> to vector<8x32xf32>
    %149 = arith.mulf %144, %148 : vector<8x32xf32>
    %150 = vector.broadcast %130 : vector<1x32xf32> to vector<8x32xf32>
    %151 = arith.mulf %149, %150 : vector<8x32xf32>
    %152 = vector.broadcast %131 : vector<1x32xf32> to vector<8x32xf32>
    %153 = arith.addf %151, %152 : vector<8x32xf32>
    %c0_87 = arith.constant 0 : index
    %c0_88 = arith.constant 0 : index
    %c0_89 = arith.constant 0 : index
    %154 = vector.load %arg21[%c0_87, %c0_88, %c0_89] : memref<1x8x32xf32, #tpu.memory_space<vmem>>, vector<1x8x32xf32>
    %155 = vector.shape_cast %154 : vector<1x8x32xf32> to vector<8x32xf32>
    %156 = vector.shape_cast %153 : vector<8x32xf32> to vector<1x8x32xf32>
    tpu.vector_store %arg21[%c0_87, %c0_88, %c0_89], %156 {strides = array<i32>} : memref<1x8x32xf32, #tpu.memory_space<vmem>>, vector<1x8x32xf32>,
    return
  }
  func.func @transform_0(%arg0: i32, %arg1: i32) -> (i32, i32, i32) {
    %c0_i32 = arith.constant 0 : i32
    %c0_i32_0 = arith.constant 0 : i32
    return %arg0, %arg1, %c0_i32 : i32, i32, i32
  }
  func.func @transform_1(%arg0: i32, %arg1: i32) -> (i32, i32, i32) {
    %c0_i32 = arith.constant 0 : i32
    %c0_i32_0 = arith.constant 0 : i32
    %c0_i32_1 = arith.constant 0 : i32
    return %arg0, %c0_i32, %c0_i32_0 : i32, i32, i32
  }
  func.func @transform_2(%arg0: i32, %arg1: i32) -> (i32, i32, i32) {
    %c0_i32 = arith.constant 0 : i32
    %c0_i32_0 = arith.constant 0 : i32
    %c0_i32_1 = arith.constant 0 : i32
    return %c0_i32, %arg1, %c0_i32_0 : i32, i32, i32
  }
  func.func @transform_3(%arg0: i32, %arg1: i32) -> (i32, i32, i32) {
    %c0_i32 = arith.constant 0 : i32
    %c0_i32_0 = arith.constant 0 : i32
    %c0_i32_1 = arith.constant 0 : i32
    %c0_i32_2 = arith.constant 0 : i32
    return %c0_i32, %c0_i32_0, %c0_i32_1 : i32, i32, i32
  }
  func.func @transform_4(%arg0: i32, %arg1: i32) -> (i32, i32, i32) {
    %c0_i32 = arith.constant 0 : i32
    %c0_i32_0 = arith.constant 0 : i32
    %c0_i32_1 = arith.constant 0 : i32
    %c0_i32_2 = arith.constant 0 : i32
    return %c0_i32, %c0_i32_0, %c0_i32_1 : i32, i32, i32
  }
  func.func @transform_5(%arg0: i32, %arg1: i32) -> (i32, i32, i32) {
    %c0_i32 = arith.constant 0 : i32
    %c0_i32_0 = arith.constant 0 : i32
    %c0_i32_1 = arith.constant 0 : i32
    %c0_i32_2 = arith.constant 0 : i32
    return %c0_i32, %c0_i32_0, %c0_i32_1 : i32, i32, i32
  }
  func.func @transform_6(%arg0: i32, %arg1: i32) -> (i32, i32, i32) {
    %c0_i32 = arith.constant 0 : i32
    %c0_i32_0 = arith.constant 0 : i32
    %c0_i32_1 = arith.constant 0 : i32
    %c0_i32_2 = arith.constant 0 : i32
    return %c0_i32, %c0_i32_0, %c0_i32_1 : i32, i32, i32
  }
  func.func @transform_7(%arg0: i32, %arg1: i32) -> (i32, i32, i32) {
    %c0_i32 = arith.constant 0 : i32
    %c0_i32_0 = arith.constant 0 : i32
    %c0_i32_1 = arith.constant 0 : i32
    %c0_i32_2 = arith.constant 0 : i32
    return %c0_i32, %c0_i32_0, %c0_i32_1 : i32, i32, i32
  }
  func.func @transform_8(%arg0: i32, %arg1: i32) -> (i32, i32, i32) {
    %c0_i32 = arith.constant 0 : i32
    %c0_i32_0 = arith.constant 0 : i32
    %c0_i32_1 = arith.constant 0 : i32
    %c0_i32_2 = arith.constant 0 : i32
    return %c0_i32, %c0_i32_0, %c0_i32_1 : i32, i32, i32
  }
  func.func @transform_9(%arg0: i32, %arg1: i32) -> (i32, i32, i32) {
    %c0_i32 = arith.constant 0 : i32
    %c0_i32_0 = arith.constant 0 : i32
    %c0_i32_1 = arith.constant 0 : i32
    %c0_i32_2 = arith.constant 0 : i32
    return %c0_i32, %c0_i32_0, %c0_i32_1 : i32, i32, i32
  }
  func.func @transform_10(%arg0: i32, %arg1: i32) -> (i32, i32) {
    %c0_i32 = arith.constant 0 : i32
    %c0_i32_0 = arith.constant 0 : i32
    %c0_i32_1 = arith.constant 0 : i32
    return %c0_i32, %c0_i32_0 : i32, i32
  }
  func.func @transform_11(%arg0: i32, %arg1: i32) -> (i32, i32) {
    %c0_i32 = arith.constant 0 : i32
    %c0_i32_0 = arith.constant 0 : i32
    %c0_i32_1 = arith.constant 0 : i32
    return %c0_i32, %c0_i32_0 : i32, i32
  }
  func.func @transform_12(%arg0: i32, %arg1: i32) -> (i32, i32) {
    %c0_i32 = arith.constant 0 : i32
    %c0_i32_0 = arith.constant 0 : i32
    %c0_i32_1 = arith.constant 0 : i32
    return %c0_i32, %c0_i32_0 : i32, i32
  }
  func.func @transform_13(%arg0: i32, %arg1: i32) -> (i32, i32) {
    %c0_i32 = arith.constant 0 : i32
    %c0_i32_0 = arith.constant 0 : i32
    %c0_i32_1 = arith.constant 0 : i32
    return %c0_i32, %c0_i32_0 : i32, i32
  }
  func.func @transform_14(%arg0: i32, %arg1: i32) -> (i32, i32) {
    %c0_i32 = arith.constant 0 : i32
    %c0_i32_0 = arith.constant 0 : i32
    %c0_i32_1 = arith.constant 0 : i32
    return %c0_i32, %c0_i32_0 : i32, i32
  }
  func.func @transform_15(%arg0: i32, %arg1: i32) -> (i32, i32) {
    %c0_i32 = arith.constant 0 : i32
    %c0_i32_0 = arith.constant 0 : i32
    %c0_i32_1 = arith.constant 0 : i32
    return %c0_i32, %c0_i32_0 : i32, i32
  }
  func.func @transform_16(%arg0: i32, %arg1: i32) -> (i32, i32) {
    %c0_i32 = arith.constant 0 : i32
    %c0_i32_0 = arith.constant 0 : i32
    %c0_i32_1 = arith.constant 0 : i32
    return %c0_i32, %c0_i32_0 : i32, i32
  }
  func.func @transform_17(%arg0: i32, %arg1: i32) -> (i32, i32) {
    %c0_i32 = arith.constant 0 : i32
    %c0_i32_0 = arith.constant 0 : i32
    %c0_i32_1 = arith.constant 0 : i32
    return %c0_i32, %c0_i32_0 : i32, i32
  }
  func.func @transform_18(%arg0: i32, %arg1: i32) -> (i32, i32) {
    %c0_i32 = arith.constant 0 : i32
    %c0_i32_0 = arith.constant 0 : i32
    %c0_i32_1 = arith.constant 0 : i32
    return %c0_i32, %c0_i32_0 : i32, i32
  }
  func.func @transform_19(%arg0: i32, %arg1: i32) -> (i32, i32, i32) {
    %c0_i32 = arith.constant 0 : i32
    %c0_i32_0 = arith.constant 0 : i32
    return %arg0, %arg1, %c0_i32 : i32, i32, i32
  }
}

module attributes {stable_mosaic.version = 11 : i64} {
  func.func @encoder_layer_kernel(%arg0: i32, %arg1: i32, %arg2: memref<1x8x32xf32, #tpu.memory_space<vmem>>, %arg3: memref<1x8x32xbf16, #tpu.memory_space<vmem>>, %arg4: memref<1x8x8xf32, #tpu.memory_space<vmem>>, %arg5: memref<4x32x8xbf16, #tpu.memory_space<vmem>>, %arg6: memref<4x1x8xf32, #tpu.memory_space<vmem>>, %arg7: memref<4x32x8xbf16, #tpu.memory_space<vmem>>, %arg8: memref<4x1x8xf32, #tpu.memory_space<vmem>>, %arg9: memref<4x32x8xbf16, #tpu.memory_space<vmem>>, %arg10: memref<4x1x8xf32, #tpu.memory_space<vmem>>, %arg11: memref<4x8x32xbf16, #tpu.memory_space<vmem>>, %arg12: memref<1x32xf32, #tpu.memory_space<vmem>>, %arg13: memref<32x64xbf16, #tpu.memory_space<vmem>>, %arg14: memref<1x64xf32, #tpu.memory_space<vmem>>, %arg15: memref<64x32xbf16, #tpu.memory_space<vmem>>, %arg16: memref<1x32xf32, #tpu.memory_space<vmem>>, %arg17: memref<1x32xf32, #tpu.memory_space<vmem>>, %arg18: memref<1x32xf32, #tpu.memory_space<vmem>>, %arg19: memref<1x32xf32, #tpu.memory_space<vmem>>, %arg20: memref<1x32xf32, #tpu.memory_space<vmem>>, %arg21: memref<1x8x32xf32, #tpu.memory_space<vmem>>, %arg22: memref<4x8x8xbf16, #tpu.memory_space<vmem>>, %arg23: memref<4x8x8xbf16, #tpu.memory_space<vmem>>) attributes {dimension_semantics = [#tpu.dimension_semantics<parallel>, #tpu.dimension_semantics<arbitrary>], iteration_bounds = array<i64: 2, 1>, scalar_prefetch = 0 : i64, scratch_operands = 2 : i64, tpu.core_type = #tpu.core_type<tc>, window_params = [{transform_indices = @transform_0, window_bounds = array<i64: 1, 8, 32>}, {transform_indices = @transform_1, window_bounds = array<i64: 1, 8, 32>}, {transform_indices = @transform_2, window_bounds = array<i64: 1, 8, 8>}, {pipeline_mode = #tpu.pipeline_mode<synchronous>, transform_indices = @transform_3, window_bounds = array<i64: 4, 32, 8>}, {pipeline_mode = #tpu.pipeline_mode<synchronous>, transform_indices = @transform_4, window_bounds = array<i64: 4, 1, 8>}, {pipeline_mode = #tpu.pipeline_mode<synchronous>, transform_indices = @transform_5, window_bounds = array<i64: 4, 32, 8>}, {pipeline_mode = #tpu.pipeline_mode<synchronous>, transform_indices = @transform_6, window_bounds = array<i64: 4, 1, 8>}, {pipeline_mode = #tpu.pipeline_mode<synchronous>, transform_indices = @transform_7, window_bounds = array<i64: 4, 32, 8>}, {pipeline_mode = #tpu.pipeline_mode<synchronous>, transform_indices = @transform_8, window_bounds = array<i64: 4, 1, 8>}, {pipeline_mode = #tpu.pipeline_mode<synchronous>, transform_indices = @transform_9, window_bounds = array<i64: 4, 8, 32>}, {pipeline_mode = #tpu.pipeline_mode<synchronous>, transform_indices = @transform_10, window_bounds = array<i64: 1, 32>}, {pipeline_mode = #tpu.pipeline_mode<synchronous>, transform_indices = @transform_11, window_bounds = array<i64: 32, 64>}, {pipeline_mode = #tpu.pipeline_mode<synchronous>, transform_indices = @transform_12, window_bounds = array<i64: 1, 64>}, {pipeline_mode = #tpu.pipeline_mode<synchronous>, transform_indices = @transform_13, window_bounds = array<i64: 64, 32>}, {pipeline_mode = #tpu.pipeline_mode<synchronous>, transform_indices = @transform_14, window_bounds = array<i64: 1, 32>}, {pipeline_mode = #tpu.pipeline_mode<synchronous>, transform_indices = @transform_15, window_bounds = array<i64: 1, 32>}, {pipeline_mode = #tpu.pipeline_mode<synchronous>, transform_indices = @transform_16, window_bounds = array<i64: 1, 32>}, {pipeline_mode = #tpu.pipeline_mode<synchronous>, transform_indices = @transform_17, window_bounds = array<i64: 1, 32>}, {pipeline_mode = #tpu.pipeline_mode<synchronous>, transform_indices = @transform_18, window_bounds = array<i64: 1, 32>}, {transform_indices = @transform_19, window_bounds = array<i64: 1, 8, 32>}]} {
    %c0_i32 = arith.constant 0 : i32
    %0 = arith.cmpi eq, %arg1, %c0_i32 : i32
    %1 = arith.extui %0 : i1 to i32
    %c0_i32_0 = arith.constant 0 : i32
    %2 = arith.cmpi ne, %1, %c0_i32_0 : i32
    scf.if %2 {
      %c0_90 = arith.constant 0 : index
      %c0_91 = arith.constant 0 : index
      %c0_92 = arith.constant 0 : index
      %157 = vector.load %arg3[%c0_90, %c0_91, %c0_92] : memref<1x8x32xbf16, #tpu.memory_space<vmem>>, vector<1x8x32xbf16>
      %158 = vector.shape_cast %157 : vector<1x8x32xbf16> to vector<8x32xbf16>
      %c0_93 = arith.constant 0 : index
      %c0_94 = arith.constant 0 : index
      %c0_95 = arith.constant 0 : index
      %159 = vector.load %arg7[%c0_93, %c0_94, %c0_95] : memref<4x32x8xbf16, #tpu.memory_space<vmem>>, vector<1x32x8xbf16>
      %160 = vector.shape_cast %159 : vector<1x32x8xbf16> to vector<32x8xbf16>
      %cst_96 = arith.constant dense<0.000000e+00> : vector<8x8xf32>
      %161 = tpu.matmul %158, %160, %cst_96 {dimension_numbers = #tpu.dot_dimension_numbers<[1], [0], [0], [1], [0, 0, 1, 1], [], []>} : vector<8x32xbf16>, vector<32x8xbf16>, vector<8x8xf32> -> vector<8x8xf32>
      %c0_97 = arith.constant 0 : index
      %c0_98 = arith.constant 0 : index
      %c0_99 = arith.constant 0 : index
      %162 = vector.load %arg8[%c0_97, %c0_98, %c0_99] : memref<4x1x8xf32, #tpu.memory_space<vmem>>, vector<1x1x8xf32>
      %163 = vector.shape_cast %162 : vector<1x1x8xf32> to vector<1x8xf32>
      %164 = vector.broadcast %163 : vector<1x8xf32> to vector<8x8xf32>
      %165 = arith.addf %161, %164 : vector<8x8xf32>
      %166 = arith.truncf %165 : vector<8x8xf32> to vector<8x8xbf16>
      %c0_100 = arith.constant 0 : index
      %c0_101 = arith.constant 0 : index
      %c0_102 = arith.constant 0 : index
      %167 = vector.load %arg22[%c0_100, %c0_101, %c0_102] : memref<4x8x8xbf16, #tpu.memory_space<vmem>>, vector<1x8x8xbf16>
      %168 = vector.shape_cast %167 : vector<1x8x8xbf16> to vector<8x8xbf16>
      %169 = vector.shape_cast %166 : vector<8x8xbf16> to vector<1x8x8xbf16>
      tpu.vector_store %arg22[%c0_100, %c0_101, %c0_102], %169 {strides = array<i32>} : memref<4x8x8xbf16, #tpu.memory_space<vmem>>, vector<1x8x8xbf16>,
      %c0_103 = arith.constant 0 : index
      %c0_104 = arith.constant 0 : index
      %c0_105 = arith.constant 0 : index
      %170 = vector.load %arg9[%c0_103, %c0_104, %c0_105] : memref<4x32x8xbf16, #tpu.memory_space<vmem>>, vector<1x32x8xbf16>
      %171 = vector.shape_cast %170 : vector<1x32x8xbf16> to vector<32x8xbf16>
      %cst_106 = arith.constant dense<0.000000e+00> : vector<8x8xf32>
      %172 = tpu.matmul %158, %171, %cst_106 {dimension_numbers = #tpu.dot_dimension_numbers<[1], [0], [0], [1], [0, 0, 1, 1], [], []>} : vector<8x32xbf16>, vector<32x8xbf16>, vector<8x8xf32> -> vector<8x8xf32>
      %c0_107 = arith.constant 0 : index
      %c0_108 = arith.constant 0 : index
      %c0_109 = arith.constant 0 : index
      %173 = vector.load %arg10[%c0_107, %c0_108, %c0_109] : memref<4x1x8xf32, #tpu.memory_space<vmem>>, vector<1x1x8xf32>
      %174 = vector.shape_cast %173 : vector<1x1x8xf32> to vector<1x8xf32>
      %175 = vector.broadcast %174 : vector<1x8xf32> to vector<8x8xf32>
      %176 = arith.addf %172, %175 : vector<8x8xf32>
      %177 = arith.truncf %176 : vector<8x8xf32> to vector<8x8xbf16>
      %c0_110 = arith.constant 0 : index
      %c0_111 = arith.constant 0 : index
      %c0_112 = arith.constant 0 : index
      %178 = vector.load %arg23[%c0_110, %c0_111, %c0_112] : memref<4x8x8xbf16, #tpu.memory_space<vmem>>, vector<1x8x8xbf16>
      %179 = vector.shape_cast %178 : vector<1x8x8xbf16> to vector<8x8xbf16>
      %180 = vector.shape_cast %177 : vector<8x8xbf16> to vector<1x8x8xbf16>
      tpu.vector_store %arg23[%c0_110, %c0_111, %c0_112], %180 {strides = array<i32>} : memref<4x8x8xbf16, #tpu.memory_space<vmem>>, vector<1x8x8xbf16>,
      %c1_113 = arith.constant 1 : index
      %c0_114 = arith.constant 0 : index
      %c0_115 = arith.constant 0 : index
      %181 = vector.load %arg7[%c1_113, %c0_114, %c0_115] : memref<4x32x8xbf16, #tpu.memory_space<vmem>>, vector<1x32x8xbf16>
      %182 = vector.shape_cast %181 : vector<1x32x8xbf16> to vector<32x8xbf16>
      %cst_116 = arith.constant dense<0.000000e+00> : vector<8x8xf32>
      %183 = tpu.matmul %158, %182, %cst_116 {dimension_numbers = #tpu.dot_dimension_numbers<[1], [0], [0], [1], [0, 0, 1, 1], [], []>} : vector<8x32xbf16>, vector<32x8xbf16>, vector<8x8xf32> -> vector<8x8xf32>
      %c1_117 = arith.constant 1 : index
      %c0_118 = arith.constant 0 : index
      %c0_119 = arith.constant 0 : index
      %184 = vector.load %arg8[%c1_117, %c0_118, %c0_119] : memref<4x1x8xf32, #tpu.memory_space<vmem>>, vector<1x1x8xf32>
      %185 = vector.shape_cast %184 : vector<1x1x8xf32> to vector<1x8xf32>
      %186 = vector.broadcast %185 : vector<1x8xf32> to vector<8x8xf32>
      %187 = arith.addf %183, %186 : vector<8x8xf32>
      %188 = arith.truncf %187 : vector<8x8xf32> to vector<8x8xbf16>
      %c1_120 = arith.constant 1 : index
      %c0_121 = arith.constant 0 : index
      %c0_122 = arith.constant 0 : index
      %189 = vector.load %arg22[%c1_120, %c0_121, %c0_122] : memref<4x8x8xbf16, #tpu.memory_space<vmem>>, vector<1x8x8xbf16>
      %190 = vector.shape_cast %189 : vector<1x8x8xbf16> to vector<8x8xbf16>
      %191 = vector.shape_cast %188 : vector<8x8xbf16> to vector<1x8x8xbf16>
      tpu.vector_store %arg22[%c1_120, %c0_121, %c0_122], %191 {strides = array<i32>} : memref<4x8x8xbf16, #tpu.memory_space<vmem>>, vector<1x8x8xbf16>,
      %c1_123 = arith.constant 1 : index
      %c0_124 = arith.constant 0 : index
      %c0_125 = arith.constant 0 : index
      %192 = vector.load %arg9[%c1_123, %c0_124, %c0_125] : memref<4x32x8xbf16, #tpu.memory_space<vmem>>, vector<1x32x8xbf16>
      %193 = vector.shape_cast %192 : vector<1x32x8xbf16> to vector<32x8xbf16>
      %cst_126 = arith.constant dense<0.000000e+00> : vector<8x8xf32>
      %194 = tpu.matmul %158, %193, %cst_126 {dimension_numbers = #tpu.dot_dimension_numbers<[1], [0], [0], [1], [0, 0, 1, 1], [], []>} : vector<8x32xbf16>, vector<32x8xbf16>, vector<8x8xf32> -> vector<8x8xf32>
      %c1_127 = arith.constant 1 : index
      %c0_128 = arith.constant 0 : index
      %c0_129 = arith.constant 0 : index
      %195 = vector.load %arg10[%c1_127, %c0_128, %c0_129] : memref<4x1x8xf32, #tpu.memory_space<vmem>>, vector<1x1x8xf32>
      %196 = vector.shape_cast %195 : vector<1x1x8xf32> to vector<1x8xf32>
      %197 = vector.broadcast %196 : vector<1x8xf32> to vector<8x8xf32>
      %198 = arith.addf %194, %197 : vector<8x8xf32>
      %199 = arith.truncf %198 : vector<8x8xf32> to vector<8x8xbf16>
      %c1_130 = arith.constant 1 : index
      %c0_131 = arith.constant 0 : index
      %c0_132 = arith.constant 0 : index
      %200 = vector.load %arg23[%c1_130, %c0_131, %c0_132] : memref<4x8x8xbf16, #tpu.memory_space<vmem>>, vector<1x8x8xbf16>
      %201 = vector.shape_cast %200 : vector<1x8x8xbf16> to vector<8x8xbf16>
      %202 = vector.shape_cast %199 : vector<8x8xbf16> to vector<1x8x8xbf16>
      tpu.vector_store %arg23[%c1_130, %c0_131, %c0_132], %202 {strides = array<i32>} : memref<4x8x8xbf16, #tpu.memory_space<vmem>>, vector<1x8x8xbf16>,
      %c2_133 = arith.constant 2 : index
      %c0_134 = arith.constant 0 : index
      %c0_135 = arith.constant 0 : index
      %203 = vector.load %arg7[%c2_133, %c0_134, %c0_135] : memref<4x32x8xbf16, #tpu.memory_space<vmem>>, vector<1x32x8xbf16>
      %204 = vector.shape_cast %203 : vector<1x32x8xbf16> to vector<32x8xbf16>
      %cst_136 = arith.constant dense<0.000000e+00> : vector<8x8xf32>
      %205 = tpu.matmul %158, %204, %cst_136 {dimension_numbers = #tpu.dot_dimension_numbers<[1], [0], [0], [1], [0, 0, 1, 1], [], []>} : vector<8x32xbf16>, vector<32x8xbf16>, vector<8x8xf32> -> vector<8x8xf32>
      %c2_137 = arith.constant 2 : index
      %c0_138 = arith.constant 0 : index
      %c0_139 = arith.constant 0 : index
      %206 = vector.load %arg8[%c2_137, %c0_138, %c0_139] : memref<4x1x8xf32, #tpu.memory_space<vmem>>, vector<1x1x8xf32>
      %207 = vector.shape_cast %206 : vector<1x1x8xf32> to vector<1x8xf32>
      %208 = vector.broadcast %207 : vector<1x8xf32> to vector<8x8xf32>
      %209 = arith.addf %205, %208 : vector<8x8xf32>
      %210 = arith.truncf %209 : vector<8x8xf32> to vector<8x8xbf16>
      %c2_140 = arith.constant 2 : index
      %c0_141 = arith.constant 0 : index
      %c0_142 = arith.constant 0 : index
      %211 = vector.load %arg22[%c2_140, %c0_141, %c0_142] : memref<4x8x8xbf16, #tpu.memory_space<vmem>>, vector<1x8x8xbf16>
      %212 = vector.shape_cast %211 : vector<1x8x8xbf16> to vector<8x8xbf16>
      %213 = vector.shape_cast %210 : vector<8x8xbf16> to vector<1x8x8xbf16>
      tpu.vector_store %arg22[%c2_140, %c0_141, %c0_142], %213 {strides = array<i32>} : memref<4x8x8xbf16, #tpu.memory_space<vmem>>, vector<1x8x8xbf16>,
      %c2_143 = arith.constant 2 : index
      %c0_144 = arith.constant 0 : index
      %c0_145 = arith.constant 0 : index
      %214 = vector.load %arg9[%c2_143, %c0_144, %c0_145] : memref<4x32x8xbf16, #tpu.memory_space<vmem>>, vector<1x32x8xbf16>
      %215 = vector.shape_cast %214 : vector<1x32x8xbf16> to vector<32x8xbf16>
      %cst_146 = arith.constant dense<0.000000e+00> : vector<8x8xf32>
      %216 = tpu.matmul %158, %215, %cst_146 {dimension_numbers = #tpu.dot_dimension_numbers<[1], [0], [0], [1], [0, 0, 1, 1], [], []>} : vector<8x32xbf16>, vector<32x8xbf16>, vector<8x8xf32> -> vector<8x8xf32>
      %c2_147 = arith.constant 2 : index
      %c0_148 = arith.constant 0 : index
      %c0_149 = arith.constant 0 : index
      %217 = vector.load %arg10[%c2_147, %c0_148, %c0_149] : memref<4x1x8xf32, #tpu.memory_space<vmem>>, vector<1x1x8xf32>
      %218 = vector.shape_cast %217 : vector<1x1x8xf32> to vector<1x8xf32>
      %219 = vector.broadcast %218 : vector<1x8xf32> to vector<8x8xf32>
      %220 = arith.addf %216, %219 : vector<8x8xf32>
      %221 = arith.truncf %220 : vector<8x8xf32> to vector<8x8xbf16>
      %c2_150 = arith.constant 2 : index
      %c0_151 = arith.constant 0 : index
      %c0_152 = arith.constant 0 : index
      %222 = vector.load %arg23[%c2_150, %c0_151, %c0_152] : memref<4x8x8xbf16, #tpu.memory_space<vmem>>, vector<1x8x8xbf16>
      %223 = vector.shape_cast %222 : vector<1x8x8xbf16> to vector<8x8xbf16>
      %224 = vector.shape_cast %221 : vector<8x8xbf16> to vector<1x8x8xbf16>
      tpu.vector_store %arg23[%c2_150, %c0_151, %c0_152], %224 {strides = array<i32>} : memref<4x8x8xbf16, #tpu.memory_space<vmem>>, vector<1x8x8xbf16>,
      %c3_153 = arith.constant 3 : index
      %c0_154 = arith.constant 0 : index
      %c0_155 = arith.constant 0 : index
      %225 = vector.load %arg7[%c3_153, %c0_154, %c0_155] : memref<4x32x8xbf16, #tpu.memory_space<vmem>>, vector<1x32x8xbf16>
      %226 = vector.shape_cast %225 : vector<1x32x8xbf16> to vector<32x8xbf16>
      %cst_156 = arith.constant dense<0.000000e+00> : vector<8x8xf32>
      %227 = tpu.matmul %158, %226, %cst_156 {dimension_numbers = #tpu.dot_dimension_numbers<[1], [0], [0], [1], [0, 0, 1, 1], [], []>} : vector<8x32xbf16>, vector<32x8xbf16>, vector<8x8xf32> -> vector<8x8xf32>
      %c3_157 = arith.constant 3 : index
      %c0_158 = arith.constant 0 : index
      %c0_159 = arith.constant 0 : index
      %228 = vector.load %arg8[%c3_157, %c0_158, %c0_159] : memref<4x1x8xf32, #tpu.memory_space<vmem>>, vector<1x1x8xf32>
      %229 = vector.shape_cast %228 : vector<1x1x8xf32> to vector<1x8xf32>
      %230 = vector.broadcast %229 : vector<1x8xf32> to vector<8x8xf32>
      %231 = arith.addf %227, %230 : vector<8x8xf32>
      %232 = arith.truncf %231 : vector<8x8xf32> to vector<8x8xbf16>
      %c3_160 = arith.constant 3 : index
      %c0_161 = arith.constant 0 : index
      %c0_162 = arith.constant 0 : index
      %233 = vector.load %arg22[%c3_160, %c0_161, %c0_162] : memref<4x8x8xbf16, #tpu.memory_space<vmem>>, vector<1x8x8xbf16>
      %234 = vector.shape_cast %233 : vector<1x8x8xbf16> to vector<8x8xbf16>
      %235 = vector.shape_cast %232 : vector<8x8xbf16> to vector<1x8x8xbf16>
      tpu.vector_store %arg22[%c3_160, %c0_161, %c0_162], %235 {strides = array<i32>} : memref<4x8x8xbf16, #tpu.memory_space<vmem>>, vector<1x8x8xbf16>,
      %c3_163 = arith.constant 3 : index
      %c0_164 = arith.constant 0 : index
      %c0_165 = arith.constant 0 : index
      %236 = vector.load %arg9[%c3_163, %c0_164, %c0_165] : memref<4x32x8xbf16, #tpu.memory_space<vmem>>, vector<1x32x8xbf16>
      %237 = vector.shape_cast %236 : vector<1x32x8xbf16> to vector<32x8xbf16>
      %cst_166 = arith.constant dense<0.000000e+00> : vector<8x8xf32>
      %238 = tpu.matmul %158, %237, %cst_166 {dimension_numbers = #tpu.dot_dimension_numbers<[1], [0], [0], [1], [0, 0, 1, 1], [], []>} : vector<8x32xbf16>, vector<32x8xbf16>, vector<8x8xf32> -> vector<8x8xf32>
      %c3_167 = arith.constant 3 : index
      %c0_168 = arith.constant 0 : index
      %c0_169 = arith.constant 0 : index
      %239 = vector.load %arg10[%c3_167, %c0_168, %c0_169] : memref<4x1x8xf32, #tpu.memory_space<vmem>>, vector<1x1x8xf32>
      %240 = vector.shape_cast %239 : vector<1x1x8xf32> to vector<1x8xf32>
      %241 = vector.broadcast %240 : vector<1x8xf32> to vector<8x8xf32>
      %242 = arith.addf %238, %241 : vector<8x8xf32>
      %243 = arith.truncf %242 : vector<8x8xf32> to vector<8x8xbf16>
      %c3_170 = arith.constant 3 : index
      %c0_171 = arith.constant 0 : index
      %c0_172 = arith.constant 0 : index
      %244 = vector.load %arg23[%c3_170, %c0_171, %c0_172] : memref<4x8x8xbf16, #tpu.memory_space<vmem>>, vector<1x8x8xbf16>
      %245 = vector.shape_cast %244 : vector<1x8x8xbf16> to vector<8x8xbf16>
      %246 = vector.shape_cast %243 : vector<8x8xbf16> to vector<1x8x8xbf16>
      tpu.vector_store %arg23[%c3_170, %c0_171, %c0_172], %246 {strides = array<i32>} : memref<4x8x8xbf16, #tpu.memory_space<vmem>>, vector<1x8x8xbf16>,
    } else {
    }
    %c0 = arith.constant 0 : index
    %c0_1 = arith.constant 0 : index
    %c0_2 = arith.constant 0 : index
    %3 = vector.load %arg2[%c0, %c0_1, %c0_2] : memref<1x8x32xf32, #tpu.memory_space<vmem>>, vector<1x8x32xf32>
    %4 = vector.shape_cast %3 : vector<1x8x32xf32> to vector<8x32xf32>
    %5 = arith.truncf %4 : vector<8x32xf32> to vector<8x32xbf16>
    %c0_3 = arith.constant 0 : index
    %c0_4 = arith.constant 0 : index
    %c0_5 = arith.constant 0 : index
    %6 = vector.load %arg5[%c0_3, %c0_4, %c0_5] : memref<4x32x8xbf16, #tpu.memory_space<vmem>>, vector<1x32x8xbf16>
    %7 = vector.shape_cast %6 : vector<1x32x8xbf16> to vector<32x8xbf16>
    %cst = arith.constant dense<0.000000e+00> : vector<8x8xf32>
    %8 = tpu.matmul %5, %7, %cst {dimension_numbers = #tpu.dot_dimension_numbers<[1], [0], [0], [1], [0, 0, 1, 1], [], []>} : vector<8x32xbf16>, vector<32x8xbf16>, vector<8x8xf32> -> vector<8x8xf32>
    %c0_6 = arith.constant 0 : index
    %c0_7 = arith.constant 0 : index
    %c0_8 = arith.constant 0 : index
    %9 = vector.load %arg6[%c0_6, %c0_7, %c0_8] : memref<4x1x8xf32, #tpu.memory_space<vmem>>, vector<1x1x8xf32>
    %10 = vector.shape_cast %9 : vector<1x1x8xf32> to vector<1x8xf32>
    %11 = vector.broadcast %10 : vector<1x8xf32> to vector<8x8xf32>
    %12 = arith.addf %8, %11 : vector<8x8xf32>
    %13 = arith.truncf %12 : vector<8x8xf32> to vector<8x8xbf16>
    %c1 = arith.constant 1 : index
    %c0_9 = arith.constant 0 : index
    %c0_10 = arith.constant 0 : index
    %14 = vector.load %arg5[%c1, %c0_9, %c0_10] : memref<4x32x8xbf16, #tpu.memory_space<vmem>>, vector<1x32x8xbf16>
    %15 = vector.shape_cast %14 : vector<1x32x8xbf16> to vector<32x8xbf16>
    %cst_11 = arith.constant dense<0.000000e+00> : vector<8x8xf32>
    %16 = tpu.matmul %5, %15, %cst_11 {dimension_numbers = #tpu.dot_dimension_numbers<[1], [0], [0], [1], [0, 0, 1, 1], [], []>} : vector<8x32xbf16>, vector<32x8xbf16>, vector<8x8xf32> -> vector<8x8xf32>
    %c1_12 = arith.constant 1 : index
    %c0_13 = arith.constant 0 : index
    %c0_14 = arith.constant 0 : index
    %17 = vector.load %arg6[%c1_12, %c0_13, %c0_14] : memref<4x1x8xf32, #tpu.memory_space<vmem>>, vector<1x1x8xf32>
    %18 = vector.shape_cast %17 : vector<1x1x8xf32> to vector<1x8xf32>
    %19 = vector.broadcast %18 : vector<1x8xf32> to vector<8x8xf32>
    %20 = arith.addf %16, %19 : vector<8x8xf32>
    %21 = arith.truncf %20 : vector<8x8xf32> to vector<8x8xbf16>
    %c2 = arith.constant 2 : index
    %c0_15 = arith.constant 0 : index
    %c0_16 = arith.constant 0 : index
    %22 = vector.load %arg5[%c2, %c0_15, %c0_16] : memref<4x32x8xbf16, #tpu.memory_space<vmem>>, vector<1x32x8xbf16>
    %23 = vector.shape_cast %22 : vector<1x32x8xbf16> to vector<32x8xbf16>
    %cst_17 = arith.constant dense<0.000000e+00> : vector<8x8xf32>
    %24 = tpu.matmul %5, %23, %cst_17 {dimension_numbers = #tpu.dot_dimension_numbers<[1], [0], [0], [1], [0, 0, 1, 1], [], []>} : vector<8x32xbf16>, vector<32x8xbf16>, vector<8x8xf32> -> vector<8x8xf32>
    %c2_18 = arith.constant 2 : index
    %c0_19 = arith.constant 0 : index
    %c0_20 = arith.constant 0 : index
    %25 = vector.load %arg6[%c2_18, %c0_19, %c0_20] : memref<4x1x8xf32, #tpu.memory_space<vmem>>, vector<1x1x8xf32>
    %26 = vector.shape_cast %25 : vector<1x1x8xf32> to vector<1x8xf32>
    %27 = vector.broadcast %26 : vector<1x8xf32> to vector<8x8xf32>
    %28 = arith.addf %24, %27 : vector<8x8xf32>
    %29 = arith.truncf %28 : vector<8x8xf32> to vector<8x8xbf16>
    %c3 = arith.constant 3 : index
    %c0_21 = arith.constant 0 : index
    %c0_22 = arith.constant 0 : index
    %30 = vector.load %arg5[%c3, %c0_21, %c0_22] : memref<4x32x8xbf16, #tpu.memory_space<vmem>>, vector<1x32x8xbf16>
    %31 = vector.shape_cast %30 : vector<1x32x8xbf16> to vector<32x8xbf16>
    %cst_23 = arith.constant dense<0.000000e+00> : vector<8x8xf32>
    %32 = tpu.matmul %5, %31, %cst_23 {dimension_numbers = #tpu.dot_dimension_numbers<[1], [0], [0], [1], [0, 0, 1, 1], [], []>} : vector<8x32xbf16>, vector<32x8xbf16>, vector<8x8xf32> -> vector<8x8xf32>
    %c3_24 = arith.constant 3 : index
    %c0_25 = arith.constant 0 : index
    %c0_26 = arith.constant 0 : index
    %33 = vector.load %arg6[%c3_24, %c0_25, %c0_26] : memref<4x1x8xf32, #tpu.memory_space<vmem>>, vector<1x1x8xf32>
    %34 = vector.shape_cast %33 : vector<1x1x8xf32> to vector<1x8xf32>
    %35 = vector.broadcast %34 : vector<1x8xf32> to vector<8x8xf32>
    %36 = arith.addf %32, %35 : vector<8x8xf32>
    %37 = arith.truncf %36 : vector<8x8xf32> to vector<8x8xbf16>
    %38 = vector.shape_cast %13 : vector<8x8xbf16> to vector<1x8x8xbf16>
    %39 = vector.shape_cast %21 : vector<8x8xbf16> to vector<1x8x8xbf16>
    %40 = vector.shape_cast %29 : vector<8x8xbf16> to vector<1x8x8xbf16>
    %41 = vector.shape_cast %37 : vector<8x8xbf16> to vector<1x8x8xbf16>
    %42 = tpu.concatenate %38, %39, %40, %41 in 0 : vector<1x8x8xbf16>, vector<1x8x8xbf16>, vector<1x8x8xbf16>, vector<1x8x8xbf16> -> vector<4x8x8xbf16>
    %c0_27 = arith.constant 0 : index
    %c0_28 = arith.constant 0 : index
    %c0_29 = arith.constant 0 : index
    %43 = vector.load %arg22[%c0_27, %c0_28, %c0_29] : memref<4x8x8xbf16, #tpu.memory_space<vmem>>, vector<4x8x8xbf16>
    "tpu.trace_start"() <{level = 10 : i32, message = "hqd,hkd->hqk"}> : () -> ()
    %cst_30 = arith.constant dense<0.000000e+00> : vector<4x8x8xf32>
    %44 = tpu.matmul %42, %43, %cst_30 {dimension_numbers = #tpu.dot_dimension_numbers<[2], [2], [1], [1], [0, 0, 0, 1, 1, 1], [0], [0]>} : vector<4x8x8xbf16>, vector<4x8x8xbf16>, vector<4x8x8xf32> -> vector<4x8x8xf32>
    "tpu.trace_stop"() : () -> ()
    %c0_31 = arith.constant 0 : index
    %c0_32 = arith.constant 0 : index
    %c0_33 = arith.constant 0 : index
    %45 = vector.load %arg4[%c0_31, %c0_32, %c0_33] : memref<1x8x8xf32, #tpu.memory_space<vmem>>, vector<1x8x8xf32>
    %46 = vector.shape_cast %45 : vector<1x8x8xf32> to vector<8x8xf32>
    %47 = vector.shape_cast %46 : vector<8x8xf32> to vector<1x8x8xf32>
    %48 = vector.broadcast %47 : vector<1x8x8xf32> to vector<4x8x8xf32>
    %49 = arith.addf %44, %48 : vector<4x8x8xf32>
    %cst_34 = arith.constant dense<0xFF800000> : vector<4x8xf32>
    %50 = vector.multi_reduction <maximumf>, %49, %cst_34 [2] : vector<4x8x8xf32> to vector<4x8xf32>
    %51 = vector.shape_cast %50 : vector<4x8xf32> to vector<4x8x1xf32>
    %52 = vector.broadcast %51 : vector<4x8x1xf32> to vector<4x8x8xf32>
    %53 = arith.subf %49, %52 : vector<4x8x8xf32>
    %54 = math.exp %53 : vector<4x8x8xf32>
    %cst_35 = arith.constant dense<0.000000e+00> : vector<4x8xf32>
    %55 = vector.multi_reduction <add>, %54, %cst_35 [2] : vector<4x8x8xf32> to vector<4x8xf32>
    %56 = vector.shape_cast %55 : vector<4x8xf32> to vector<4x8x1xf32>
    %57 = tpu.reciprocal %56 {approx = true} : vector<4x8x1xf32> -> vector<4x8x1xf32>
    %58 = vector.broadcast %57 : vector<4x8x1xf32> to vector<4x8x8xf32>
    %59 = arith.mulf %54, %58 : vector<4x8x8xf32>
    %60 = arith.truncf %59 : vector<4x8x8xf32> to vector<4x8x8xbf16>
    %c0_36 = arith.constant 0 : index
    %c0_37 = arith.constant 0 : index
    %c0_38 = arith.constant 0 : index
    %61 = vector.load %arg23[%c0_36, %c0_37, %c0_38] : memref<4x8x8xbf16, #tpu.memory_space<vmem>>, vector<4x8x8xbf16>
    "tpu.trace_start"() <{level = 10 : i32, message = "hqk,hkd->hqd"}> : () -> ()
    %cst_39 = arith.constant dense<0.000000e+00> : vector<4x8x8xf32>
    %62 = tpu.matmul %60, %61, %cst_39 {dimension_numbers = #tpu.dot_dimension_numbers<[2], [1], [1], [2], [0, 0, 0, 1, 1, 2], [0], [0]>} : vector<4x8x8xbf16>, vector<4x8x8xbf16>, vector<4x8x8xf32> -> vector<4x8x8xf32>
    "tpu.trace_stop"() : () -> ()
    %63 = arith.truncf %62 : vector<4x8x8xf32> to vector<4x8x8xbf16>
    %64 = vector.extract_strided_slice %63 {offsets = [0, 0, 0], sizes = [1, 8, 8], strides = [1, 1, 1]} : vector<4x8x8xbf16> to vector<1x8x8xbf16>
    %65 = vector.shape_cast %64 : vector<1x8x8xbf16> to vector<8x8xbf16>
    %c0_40 = arith.constant 0 : index
    %c0_41 = arith.constant 0 : index
    %c0_42 = arith.constant 0 : index
    %66 = vector.load %arg11[%c0_40, %c0_41, %c0_42] : memref<4x8x32xbf16, #tpu.memory_space<vmem>>, vector<1x8x32xbf16>
    %67 = vector.shape_cast %66 : vector<1x8x32xbf16> to vector<8x32xbf16>
    %cst_43 = arith.constant dense<0.000000e+00> : vector<8x32xf32>
    %68 = tpu.matmul %65, %67, %cst_43 {dimension_numbers = #tpu.dot_dimension_numbers<[1], [0], [0], [1], [0, 0, 1, 1], [], []>} : vector<8x8xbf16>, vector<8x32xbf16>, vector<8x32xf32> -> vector<8x32xf32>
    %69 = vector.extract_strided_slice %63 {offsets = [1, 0, 0], sizes = [1, 8, 8], strides = [1, 1, 1]} : vector<4x8x8xbf16> to vector<1x8x8xbf16>
    %70 = vector.shape_cast %69 : vector<1x8x8xbf16> to vector<8x8xbf16>
    %c1_44 = arith.constant 1 : index
    %c0_45 = arith.constant 0 : index
    %c0_46 = arith.constant 0 : index
    %71 = vector.load %arg11[%c1_44, %c0_45, %c0_46] : memref<4x8x32xbf16, #tpu.memory_space<vmem>>, vector<1x8x32xbf16>
    %72 = vector.shape_cast %71 : vector<1x8x32xbf16> to vector<8x32xbf16>
    %cst_47 = arith.constant dense<0.000000e+00> : vector<8x32xf32>
    %73 = tpu.matmul %70, %72, %cst_47 {dimension_numbers = #tpu.dot_dimension_numbers<[1], [0], [0], [1], [0, 0, 1, 1], [], []>} : vector<8x8xbf16>, vector<8x32xbf16>, vector<8x32xf32> -> vector<8x32xf32>
    %74 = arith.addf %68, %73 : vector<8x32xf32>
    %75 = vector.extract_strided_slice %63 {offsets = [2, 0, 0], sizes = [1, 8, 8], strides = [1, 1, 1]} : vector<4x8x8xbf16> to vector<1x8x8xbf16>
    %76 = vector.shape_cast %75 : vector<1x8x8xbf16> to vector<8x8xbf16>
    %c2_48 = arith.constant 2 : index
    %c0_49 = arith.constant 0 : index
    %c0_50 = arith.constant 0 : index
    %77 = vector.load %arg11[%c2_48, %c0_49, %c0_50] : memref<4x8x32xbf16, #tpu.memory_space<vmem>>, vector<1x8x32xbf16>
    %78 = vector.shape_cast %77 : vector<1x8x32xbf16> to vector<8x32xbf16>
    %cst_51 = arith.constant dense<0.000000e+00> : vector<8x32xf32>
    %79 = tpu.matmul %76, %78, %cst_51 {dimension_numbers = #tpu.dot_dimension_numbers<[1], [0], [0], [1], [0, 0, 1, 1], [], []>} : vector<8x8xbf16>, vector<8x32xbf16>, vector<8x32xf32> -> vector<8x32xf32>
    %80 = arith.addf %74, %79 : vector<8x32xf32>
    %81 = vector.extract_strided_slice %63 {offsets = [3, 0, 0], sizes = [1, 8, 8], strides = [1, 1, 1]} : vector<4x8x8xbf16> to vector<1x8x8xbf16>
    %82 = vector.shape_cast %81 : vector<1x8x8xbf16> to vector<8x8xbf16>
    %c3_52 = arith.constant 3 : index
    %c0_53 = arith.constant 0 : index
    %c0_54 = arith.constant 0 : index
    %83 = vector.load %arg11[%c3_52, %c0_53, %c0_54] : memref<4x8x32xbf16, #tpu.memory_space<vmem>>, vector<1x8x32xbf16>
    %84 = vector.shape_cast %83 : vector<1x8x32xbf16> to vector<8x32xbf16>
    %cst_55 = arith.constant dense<0.000000e+00> : vector<8x32xf32>
    %85 = tpu.matmul %82, %84, %cst_55 {dimension_numbers = #tpu.dot_dimension_numbers<[1], [0], [0], [1], [0, 0, 1, 1], [], []>} : vector<8x8xbf16>, vector<8x32xbf16>, vector<8x32xf32> -> vector<8x32xf32>
    %86 = arith.addf %80, %85 : vector<8x32xf32>
    %c0_56 = arith.constant 0 : index
    %c0_57 = arith.constant 0 : index
    %87 = vector.load %arg12[%c0_56, %c0_57] : memref<1x32xf32, #tpu.memory_space<vmem>>, vector<1x32xf32>
    %88 = vector.broadcast %87 : vector<1x32xf32> to vector<8x32xf32>
    %89 = arith.addf %86, %88 : vector<8x32xf32>
    %90 = arith.addf %4, %89 : vector<8x32xf32>
    %c0_58 = arith.constant 0 : index
    %c0_59 = arith.constant 0 : index
    %91 = vector.load %arg17[%c0_58, %c0_59] : memref<1x32xf32, #tpu.memory_space<vmem>>, vector<1x32xf32>
    %c0_60 = arith.constant 0 : index
    %c0_61 = arith.constant 0 : index
    %92 = vector.load %arg18[%c0_60, %c0_61] : memref<1x32xf32, #tpu.memory_space<vmem>>, vector<1x32xf32>
    %cst_62 = arith.constant dense<0.000000e+00> : vector<8xf32>
    %93 = vector.multi_reduction <add>, %90, %cst_62 [1] : vector<8x32xf32> to vector<8xf32>
    %94 = vector.shape_cast %93 : vector<8xf32> to vector<8x1xf32>
    %cst_63 = arith.constant 3.200000e+01 : f32
    %95 = vector.broadcast %cst_63 : f32 to vector<8x1xf32>
    %96 = arith.divf %94, %95 : vector<8x1xf32>
    %97 = vector.broadcast %96 : vector<8x1xf32> to vector<8x32xf32>
    %98 = arith.subf %90, %97 : vector<8x32xf32>
    %99 = arith.mulf %98, %98 : vector<8x32xf32>
    %cst_64 = arith.constant dense<0.000000e+00> : vector<8xf32>
    %100 = vector.multi_reduction <add>, %99, %cst_64 [1] : vector<8x32xf32> to vector<8xf32>
    %101 = vector.shape_cast %100 : vector<8xf32> to vector<8x1xf32>
    %cst_65 = arith.constant 3.200000e+01 : f32
    %102 = vector.broadcast %cst_65 : f32 to vector<8x1xf32>
    %103 = arith.divf %101, %102 : vector<8x1xf32>
    %104 = vector.broadcast %96 : vector<8x1xf32> to vector<8x32xf32>
    %105 = arith.subf %90, %104 : vector<8x32xf32>
    %cst_66 = arith.constant 9.99999974E-6 : f32
    %106 = vector.broadcast %cst_66 : f32 to vector<8x1xf32>
    %107 = arith.addf %103, %106 : vector<8x1xf32>
    %108 = math.rsqrt %107 : vector<8x1xf32>
    %109 = vector.broadcast %108 : vector<8x1xf32> to vector<8x32xf32>
    %110 = arith.mulf %105, %109 : vector<8x32xf32>
    %111 = vector.broadcast %91 : vector<1x32xf32> to vector<8x32xf32>
    %112 = arith.mulf %110, %111 : vector<8x32xf32>
    %113 = vector.broadcast %92 : vector<1x32xf32> to vector<8x32xf32>
    %114 = arith.addf %112, %113 : vector<8x32xf32>
    %115 = arith.truncf %114 : vector<8x32xf32> to vector<8x32xbf16>
    %c0_67 = arith.constant 0 : index
    %c0_68 = arith.constant 0 : index
    %116 = vector.load %arg13[%c0_67, %c0_68] : memref<32x64xbf16, #tpu.memory_space<vmem>>, vector<32x64xbf16>
    %cst_69 = arith.constant dense<0.000000e+00> : vector<8x64xf32>
    %117 = tpu.matmul %115, %116, %cst_69 {dimension_numbers = #tpu.dot_dimension_numbers<[1], [0], [0], [1], [0, 0, 1, 1], [], []>} : vector<8x32xbf16>, vector<32x64xbf16>, vector<8x64xf32> -> vector<8x64xf32>
    %c0_70 = arith.constant 0 : index
    %c0_71 = arith.constant 0 : index
    %118 = vector.load %arg14[%c0_70, %c0_71] : memref<1x64xf32, #tpu.memory_space<vmem>>, vector<1x64xf32>
    %119 = vector.broadcast %118 : vector<1x64xf32> to vector<8x64xf32>
    %120 = arith.addf %117, %119 : vector<8x64xf32>
    %cst_72 = arith.constant 0.000000e+00 : f32
    %121 = vector.broadcast %cst_72 : f32 to vector<8x64xf32>
    %122 = arith.maximumf %120, %121 : vector<8x64xf32>
    %123 = arith.truncf %122 : vector<8x64xf32> to vector<8x64xbf16>
    %c0_73 = arith.constant 0 : index
    %c0_74 = arith.constant 0 : index
    %124 = vector.load %arg15[%c0_73, %c0_74] : memref<64x32xbf16, #tpu.memory_space<vmem>>, vector<64x32xbf16>
    %cst_75 = arith.constant dense<0.000000e+00> : vector<8x32xf32>
    %125 = tpu.matmul %123, %124, %cst_75 {dimension_numbers = #tpu.dot_dimension_numbers<[1], [0], [0], [1], [0, 0, 1, 1], [], []>} : vector<8x64xbf16>, vector<64x32xbf16>, vector<8x32xf32> -> vector<8x32xf32>
    %c0_76 = arith.constant 0 : index
    %c0_77 = arith.constant 0 : index
    %126 = vector.load %arg16[%c0_76, %c0_77] : memref<1x32xf32, #tpu.memory_space<vmem>>, vector<1x32xf32>
    %127 = vector.broadcast %126 : vector<1x32xf32> to vector<8x32xf32>
    %128 = arith.addf %125, %127 : vector<8x32xf32>
    %129 = arith.addf %114, %128 : vector<8x32xf32>
    %c0_78 = arith.constant 0 : index
    %c0_79 = arith.constant 0 : index
    %130 = vector.load %arg19[%c0_78, %c0_79] : memref<1x32xf32, #tpu.memory_space<vmem>>, vector<1x32xf32>
    %c0_80 = arith.constant 0 : index
    %c0_81 = arith.constant 0 : index
    %131 = vector.load %arg20[%c0_80, %c0_81] : memref<1x32xf32, #tpu.memory_space<vmem>>, vector<1x32xf32>
    %cst_82 = arith.constant dense<0.000000e+00> : vector<8xf32>
    %132 = vector.multi_reduction <add>, %129, %cst_82 [1] : vector<8x32xf32> to vector<8xf32>
    %133 = vector.shape_cast %132 : vector<8xf32> to vector<8x1xf32>
    %cst_83 = arith.constant 3.200000e+01 : f32
    %134 = vector.broadcast %cst_83 : f32 to vector<8x1xf32>
    %135 = arith.divf %133, %134 : vector<8x1xf32>
    %136 = vector.broadcast %135 : vector<8x1xf32> to vector<8x32xf32>
    %137 = arith.subf %129, %136 : vector<8x32xf32>
    %138 = arith.mulf %137, %137 : vector<8x32xf32>
    %cst_84 = arith.constant dense<0.000000e+00> : vector<8xf32>
    %139 = vector.multi_reduction <add>, %138, %cst_84 [1] : vector<8x32xf32> to vector<8xf32>
    %140 = vector.shape_cast %139 : vector<8xf32> to vector<8x1xf32>
    %cst_85 = arith.constant 3.200000e+01 : f32
    %141 = vector.broadcast %cst_85 : f32 to vector<8x1xf32>
    %142 = arith.divf %140, %141 : vector<8x1xf32>
    %143 = vector.broadcast %135 : vector<8x1xf32> to vector<8x32xf32>
    %144 = arith.subf %129, %143 : vector<8x32xf32>
    %cst_86 = arith.constant 9.99999974E-6 : f32
    %145 = vector.broadcast %cst_86 : f32 to vector<8x1xf32>
    %146 = arith.addf %142, %145 : vector<8x1xf32>
    %147 = math.rsqrt %146 : vector<8x1xf32>
    %148 = vector.broadcast %147 : vector<8x1xf32> to vector<8x32xf32>
    %149 = arith.mulf %144, %148 : vector<8x32xf32>
    %150 = vector.broadcast %130 : vector<1x32xf32> to vector<8x32xf32>
    %151 = arith.mulf %149, %150 : vector<8x32xf32>
    %152 = vector.broadcast %131 : vector<1x32xf32> to vector<8x32xf32>
    %153 = arith.addf %151, %152 : vector<8x32xf32>
    %c0_87 = arith.constant 0 : index
    %c0_88 = arith.constant 0 : index
    %c0_89 = arith.constant 0 : index
    %154 = vector.load %arg21[%c0_87, %c0_88, %c0_89] : memref<1x8x32xf32, #tpu.memory_space<vmem>>, vector<1x8x32xf32>
    %155 = vector.shape_cast %154 : vector<1x8x32xf32> to vector<8x32xf32>
    %156 = vector.shape_cast %153 : vector<8x32xf32> to vector<1x8x32xf32>
    tpu.vector_store %arg21[%c0_87, %c0_88, %c0_89], %156 {strides = array<i32>} : memref<1x8x32xf32, #tpu.memory_space<vmem>>, vector<1x8x32xf32>,
    return
  }
  func.func @transform_0(%arg0: i32, %arg1: i32) -> (i32, i32, i32) {
    %c0_i32 = arith.constant 0 : i32
    %c0_i32_0 = arith.constant 0 : i32
    return %arg0, %arg1, %c0_i32 : i32, i32, i32
  }
  func.func @transform_1(%arg0: i32, %arg1: i32) -> (i32, i32, i32) {
    %c0_i32 = arith.constant 0 : i32
    %c0_i32_0 = arith.constant 0 : i32
    %c0_i32_1 = arith.constant 0 : i32
    return %arg0, %c0_i32, %c0_i32_0 : i32, i32, i32
  }
  func.func @transform_2(%arg0: i32, %arg1: i32) -> (i32, i32, i32) {
    %c0_i32 = arith.constant 0 : i32
    %c0_i32_0 = arith.constant 0 : i32
    %c0_i32_1 = arith.constant 0 : i32
    return %c0_i32, %arg1, %c0_i32_0 : i32, i32, i32
  }
  func.func @transform_3(%arg0: i32, %arg1: i32) -> (i32, i32, i32) {
    %c0_i32 = arith.constant 0 : i32
    %c0_i32_0 = arith.constant 0 : i32
    %c0_i32_1 = arith.constant 0 : i32
    %c0_i32_2 = arith.constant 0 : i32
    return %c0_i32, %c0_i32_0, %c0_i32_1 : i32, i32, i32
  }
  func.func @transform_4(%arg0: i32, %arg1: i32) -> (i32, i32, i32) {
    %c0_i32 = arith.constant 0 : i32
    %c0_i32_0 = arith.constant 0 : i32
    %c0_i32_1 = arith.constant 0 : i32
    %c0_i32_2 = arith.constant 0 : i32
    return %c0_i32, %c0_i32_0, %c0_i32_1 : i32, i32, i32
  }
  func.func @transform_5(%arg0: i32, %arg1: i32) -> (i32, i32, i32) {
    %c0_i32 = arith.constant 0 : i32
    %c0_i32_0 = arith.constant 0 : i32
    %c0_i32_1 = arith.constant 0 : i32
    %c0_i32_2 = arith.constant 0 : i32
    return %c0_i32, %c0_i32_0, %c0_i32_1 : i32, i32, i32
  }
  func.func @transform_6(%arg0: i32, %arg1: i32) -> (i32, i32, i32) {
    %c0_i32 = arith.constant 0 : i32
    %c0_i32_0 = arith.constant 0 : i32
    %c0_i32_1 = arith.constant 0 : i32
    %c0_i32_2 = arith.constant 0 : i32
    return %c0_i32, %c0_i32_0, %c0_i32_1 : i32, i32, i32
  }
  func.func @transform_7(%arg0: i32, %arg1: i32) -> (i32, i32, i32) {
    %c0_i32 = arith.constant 0 : i32
    %c0_i32_0 = arith.constant 0 : i32
    %c0_i32_1 = arith.constant 0 : i32
    %c0_i32_2 = arith.constant 0 : i32
    return %c0_i32, %c0_i32_0, %c0_i32_1 : i32, i32, i32
  }
  func.func @transform_8(%arg0: i32, %arg1: i32) -> (i32, i32, i32) {
    %c0_i32 = arith.constant 0 : i32
    %c0_i32_0 = arith.constant 0 : i32
    %c0_i32_1 = arith.constant 0 : i32
    %c0_i32_2 = arith.constant 0 : i32
    return %c0_i32, %c0_i32_0, %c0_i32_1 : i32, i32, i32
  }
  func.func @transform_9(%arg0: i32, %arg1: i32) -> (i32, i32, i32) {
    %c0_i32 = arith.constant 0 : i32
    %c0_i32_0 = arith.constant 0 : i32
    %c0_i32_1 = arith.constant 0 : i32
    %c0_i32_2 = arith.constant 0 : i32
    return %c0_i32, %c0_i32_0, %c0_i32_1 : i32, i32, i32
  }
  func.func @transform_10(%arg0: i32, %arg1: i32) -> (i32, i32) {
    %c0_i32 = arith.constant 0 : i32
    %c0_i32_0 = arith.constant 0 : i32
    %c0_i32_1 = arith.constant 0 : i32
    return %c0_i32, %c0_i32_0 : i32, i32
  }
  func.func @transform_11(%arg0: i32, %arg1: i32) -> (i32, i32) {
    %c0_i32 = arith.constant 0 : i32
    %c0_i32_0 = arith.constant 0 : i32
    %c0_i32_1 = arith.constant 0 : i32
    return %c0_i32, %c0_i32_0 : i32, i32
  }
  func.func @transform_12(%arg0: i32, %arg1: i32) -> (i32, i32) {
    %c0_i32 = arith.constant 0 : i32
    %c0_i32_0 = arith.constant 0 : i32
    %c0_i32_1 = arith.constant 0 : i32
    return %c0_i32, %c0_i32_0 : i32, i32
  }
  func.func @transform_13(%arg0: i32, %arg1: i32) -> (i32, i32) {
    %c0_i32 = arith.constant 0 : i32
    %c0_i32_0 = arith.constant 0 : i32
    %c0_i32_1 = arith.constant 0 : i32
    return %c0_i32, %c0_i32_0 : i32, i32
  }
  func.func @transform_14(%arg0: i32, %arg1: i32) -> (i32, i32) {
    %c0_i32 = arith.constant 0 : i32
    %c0_i32_0 = arith.constant 0 : i32
    %c0_i32_1 = arith.constant 0 : i32
    return %c0_i32, %c0_i32_0 : i32, i32
  }
  func.func @transform_15(%arg0: i32, %arg1: i32) -> (i32, i32) {
    %c0_i32 = arith.constant 0 : i32
    %c0_i32_0 = arith.constant 0 : i32
    %c0_i32_1 = arith.constant 0 : i32
    return %c0_i32, %c0_i32_0 : i32, i32
  }
  func.func @transform_16(%arg0: i32, %arg1: i32) -> (i32, i32) {
    %c0_i32 = arith.constant 0 : i32
    %c0_i32_0 = arith.constant 0 : i32
    %c0_i32_1 = arith.constant 0 : i32
    return %c0_i32, %c0_i32_0 : i32, i32
  }
  func.func @transform_17(%arg0: i32, %arg1: i32) -> (i32, i32) {
    %c0_i32 = arith.constant 0 : i32
    %c0_i32_0 = arith.constant 0 : i32
    %c0_i32_1 = arith.constant 0 : i32
    return %c0_i32, %c0_i32_0 : i32, i32
  }
  func.func @transform_18(%arg0: i32, %arg1: i32) -> (i32, i32) {
    %c0_i32 = arith.constant 0 : i32
    %c0_i32_0 = arith.constant 0 : i32
    %c0_i32_1 = arith.constant 0 : i32
    return %c0_i32, %c0_i32_0 : i32, i32
  }
  func.func @transform_19(%arg0: i32, %arg1: i32) -> (i32, i32, i32) {
    %c0_i32 = arith.constant 0 : i32
    %c0_i32_0 = arith.constant 0 : i32
    return %arg0, %arg1, %c0_i32 : i32, i32, i32
  }
}

</mosaic_0001>

<bundles_post_ra>
// kernel: tpu_custom_call.1
= control target key start
LH: loop header
LB: loop body
LE: loop exit
PB: predicated region body
PF: predicated region fallthrough
CT: control target
= control target key end

     0   :  { %s3538_s0 = inlined_call_operand.vmem [shape: f32[2,8,32], index: 0, kind: input, shape index: {}]   ;;  %s3539_s1 = inlined_call_operand.vmem [shape: bf16[2,8,32], index: 1, kind: input, shape index: {}]   ;;  %s3540_s2 = inlined_call_operand.vmem [shape: f32[1,8,8], index: 2, kind: input, shape index: {}]   ;;  %s3541_s3 = inlined_call_operand.vmem [shape: bf16[4,32,8], index: 3, kind: input, shape index: {}]   ;;  %s3542_s4 = inlined_call_operand.vmem [shape: f32[4,1,8], index: 4, kind: input, shape index: {}]   ;;  %s3543_s5 = inlined_call_operand.vmem [shape: bf16[4,32,8], index: 5, kind: input, shape index: {}]   ;;  %s3544_s6 = inlined_call_operand.vmem [shape: f32[4,1,8], index: 6, kind: input, shape index: {}]   ;;  %s3545_s7 = inlined_call_operand.vmem [shape: bf16[4,32,8], index: 7, kind: input, shape index: {}]   ;;  %s3546_s8 = inlined_call_operand.vmem [shape: f32[4,1,8], index: 8, kind: input, shape index: {}]   ;;  %s3547_s9 = inlined_call_operand.vmem [shape: bf16[4,8,32], index: 9, kind: input, shape index: {}]   ;;  %s3548_s10 = inlined_call_operand.vmem [shape: f32[1,32], index: 10, kind: input, shape index: {}]   ;;  %s3549_s11 = inlined_call_operand.vmem [shape: bf16[32,64], index: 11, kind: input, shape index: {}]   ;;  %s3550_s12 = inlined_call_operand.vmem [shape: f32[1,64], index: 12, kind: input, shape index: {}]   ;;  %s3551_s13 = inlined_call_operand.vmem [shape: bf16[64,32], index: 13, kind: input, shape index: {}]   ;;  %s3552_s14 = inlined_call_operand.vmem [shape: f32[1,32], index: 14, kind: input, shape index: {}]   ;;  %s3553_s15 = inlined_call_operand.vmem [shape: f32[1,32], index: 15, kind: input, shape index: {}]   ;;  %s3554_s16 = inlined_call_operand.vmem [shape: f32[1,32], index: 16, kind: input, shape index: {}]   ;;  %s3555_s17 = inlined_call_operand.vmem [shape: f32[1,32], index: 17, kind: input, shape index: {}]   ;;  %s3556_s18 = inlined_call_operand.vmem [shape: f32[1,32], index: 18, kind: input, shape index: {}]   ;;  %s3557_s19 = inlined_call_operand.hbm [shape: f32[2,8,32], index: 19, kind: output, shape index: {}]  }
   0x1   :  { %3563 = sst [smem:[#allocation12_spill]] %s3538_s0 }
   0x2   :  { %3564 = sst [smem:[#allocation13_spill]] %s3539_s1 }
   0x3   :  { %3565 = sst [smem:[#allocation14_spill]] %s3540_s2 }
   0x4   :  { %3566 = sst [smem:[#allocation15_spill]] %s3541_s3 }
   0x5   :  { %3567 = sst [smem:[#allocation16_spill]] %s3542_s4 }
   0x6   :  { %3568 = sst [smem:[#allocation17_spill]] %s3543_s5 }
   0x7   :  { %3569 = sst [smem:[#allocation18_spill]] %s3544_s6 }
   0x8   :  { %3570 = sst [smem:[#allocation19_spill]] %s3545_s7 }
   0x9   :  { %24 = vsyncpa [#allocation5], 0 }
   0xa   :  { %26 = vsyncpa [#allocation5 + $0x1], 0  ;;  %s3113_s0 = smov 0   ;;  %s3115_s30 = smov 0  }
   0xb   :  { %s3117_s20 = smov 0   ;;  %s3119_s21 = smov 0  }
   0xc   :  { %s3121_s1 = smov 0   ;;  %s3123_s22 = smov 0  }
   0xd LB: > { %3571 = sst [smem:[#allocation7_spill]] %s2996_s20  ;;  %s2433_s2 = sadd.s32 4294967295, %s3008_s22   ;;  %s3008_s22 = sphi %s3123_s22, %s32_s22   ;;  %s3004_s1 = sphi %s3121_s1, %s3591_s1   ;;  %s3000_s21 = sphi %s3119_s21, %s3590_s21   ;;  %s2996_s20 = sphi %s3117_s20, %s3589_s20   ;;  %s2992_s30 = sphi %s3115_s30, %s3593_s30   ;;  %s2988_s0 = sphi %s3113_s0, %s3592_s0  }
   0xe   : > { %3572 = sst [smem:[#allocation8_spill]] %s3004_s1  ;;  %s2434_s23 = sadd.s32 4294967294, %s3008_s22  }
   0xf   : > { %s44_s24 = sadd.s32 1, %s3004_s1  ;;  %s469_s25 = sadd.s32 1, %s2996_s20 }
  0x10   : > { %p46_p0 = scmp.ge.s32.totalorder %s44_s24, 2  ;;  %p479_p1 = scmp.ne.s32.totalorder %s2996_s20, %s2992_s30 }
  0x11   : > { %p480_p2 = scmp.eq.s32.totalorder %s2433_s2, 1  ;;  %p485_p3 = scmp.ne.s32.totalorder %s2992_s30, %s2988_s0 }
  0x12   : > { %s3595_s24 = smov (%p46_p0, %s44_s24), 0  ;;  %p486_p5 = scmp.eq.s32.totalorder %s2434_s23, 1 }
  0x13   : > { %3573 = sst [smem:[#allocation9_spill]] %s3595_s24  ;;  %p3153_p4 = por %p480_p2, %p479_p1 }
  0x14   : > { %s464_s26 = ssub.s32 %s3004_s1, %s3595_s24  ;;  %p2438_p6 = scmp.ge.s32.totalorder %s3008_s22, 1 }
  0x15   : > { %p467_p7 = scmp.eq.s32.totalorder %s464_s26, 0  ;;  %p3160_p8 = por %p486_p5, %p485_p3 }
  0x16   : > { %p576_p9 = scmp.lt.s32.totalorder %s3008_s22, 3 }
  0x17   : > { %s3575_s27 = scalar_select %p3160_p8, 1, 0 }
  0x18   : > { %s3166_s28 = scalar_select %p467_p7, %s2996_s20, %s469_s25  }
  0x19   : > { %3576 = sst [smem:[#allocation10_spill]] %s3575_s27  ;;  %p577_p10 = pnand %p2438_p6, %p576_p9 }
  0x1a   : > { %3577 = sst [smem:[#allocation11_spill]] %s3166_s28  ;;  %p642_p11 = scmp.lt.s32.totalorder (!%p577_p10), %s3000_s21, 1 }
  0x1b   : > { %580 = sbr.rel (%p577_p10) target bundleno = 2214 (0x8a6), region = 96  ;;  %s3578_s5 = sld [smem:[#allocation17_spill]] (!%p577_p10) }
  0x1c   : > { %s3579_s7 = sld [smem:[#allocation19_spill]] (!%p577_p10) }
  0x1d   : > { %s3580_s29 = sld [smem:[#allocation13_spill]] (!%p577_p10) }
  0x1e   : > { %s3581_s20 = sld [smem:[#allocation15_spill]] (!%p577_p10) }
  0x1f   : > { %s3583_s1 = sld [smem:[#allocation12_spill]] (!%p577_p10) }
  0x20   : > { %v3010_v1 = vmov 0.0   ;;  %vm3011_vm0 = vmmov 0   ;;  %s3190_s23 = scalar_select %p642_p11, %s3000_s21, 1  ;;  %vm686_vm1 = vcmask 261120   ;;  %v2446_v29 = vld [vmem:[%s3546_s8] ss:$0 sm:$0xff] }
  0x21   : > { %v2882_v0 = vld [vmem:[%s3578_s5 + $0x8] sm:$0xff]   ;;  %2637 = vmatprep.subr.bf16.mxu0 %v3010_v1  ;;  %2645 = vmatprep.subr.bf16.mxu1 %v3010_v1  ;;  %v2884_v3 = vld [vmem:[%s3578_s5] sm:$0xff]   ;;  %v2886_v5 = vld [vmem:[%s3578_s5 + $0x18] sm:$0xff]   ;;  %s3584_s6 = sld [smem:[#allocation18_spill]]  ;;  %vm731_vm2 = vcmask 60416   ;;  %vm1479_vm3 = vcmask 64512  }
  0x22   : > { %v2883_v2 = vld [vmem:[%s3579_s7 + $0x8] sm:$0xff]   ;;  %2638 = vmatpush3.bf16.msra.mxu0 %v2882_v0  ;;  %2641 = vmatprep.mubr.msk.bf16.mxu0 %vm3011_vm0, %v3010_v1  ;;  %v2885_v4 = vld [vmem:[%s3579_s7] sm:$0xff]   ;;  %s2441_s24 = sshll.u32 %s3190_s23, 2  ;;  %v2887_v6 = vld [vmem:[%s3579_s7 + $0x18] sm:$0xff]   ;;  %s2440_s26 = sshll.u32 %s3190_s23, 3  ;;  %vm1719_vm4 = vcmask 1043456  }
  0x23   : > { %2646 = vmatpush3.bf16.msra.mxu1 %v2883_v2  ;;  %2639 = vmatprep.subr.bf16.mxu0 %v3010_v1  ;;  %s652_s2 = scalar_lea.vmem %s3580_s29, %s2441_s24  ;;  %v2888_v8 = vld [vmem:[%s3578_s5 + $0x10] sm:$0xff]   ;;  %v2890_v10 = vld [vmem:[%s3578_s5 + $0x28] sm:$0xff]   ;;  %v2892_v12 = vld [vmem:[%s3578_s5 + $0x20] sm:$0xff]   ;;  %s3585_s4 = sld [smem:[#allocation16_spill]]  ;;  %vm2245_vm5 = vcmask 523264  }
  0x24   : > { %2647 = vmatprep.subr.bf16.mxu1 %v3010_v1  ;;  %2649 = vmatprep.mubr.msk.bf16.mxu1 %vm3011_vm0, %v3010_v1  ;;  %v662_v7 = vld [vmem:[%s652_s2] sm:$0xf]  ;;  %v2889_v9 = vld [vmem:[%s3579_s7 + $0x10] sm:$0xff]   ;;  %v2891_v11 = vld [vmem:[%s3579_s7 + $0x28] sm:$0xff]   ;;  %s3582_s27 = smov %s3581_s20  ;;  %s3586_s25 = sld [smem:[#allocation14_spill]] }
  0x25   : > { %v2893_v13 = vld [vmem:[%s3579_s7 + $0x20] sm:$0xff]   ;;  %v2894_v14 = vld [vmem:[%s3578_s5 + $0x38] sm:$0xff]   ;;  %v2896_v16 = vld [vmem:[%s3578_s5 + $0x30] sm:$0xff]   ;;  %s648_s5 = scalar_lea.vmem %s3583_s1, %s2440_s26  ;;  %s639_s1 = sand.u32 1, %s2992_s30  }
  0x26   : > { %2640 = vmatpush3.bf16.msra.mxu0 %v2884_v3  ;;  %v2895_v15 = vld [vmem:[%s3579_s7 + $0x38] sm:$0xff]   ;;  %v2897_v17 = vld [vmem:[%s3579_s7 + $0x30] sm:$0xff]   ;;  %v2898_v18 = vld [vmem:[%s3581_s20 + $0x8] sm:$0xff]   ;;  %s2439_s23 = sshll.u32 %s639_s1, 3  ;;  %s2566_s26 = sshll.u32 %s3000_s21, 7 }
  0x27   : > { %2648 = vmatpush3.bf16.msra.mxu1 %v2885_v4  ;;  %2653 = vmatprep.subr.bf16.mxu0 %v3010_v1  ;;  %v2899_v19 = vld [vmem:[%s3582_s27 + $0x18] sm:$0xff]   ;;  %v2900_v20 = vld [vmem:[%s3582_s27] sm:$0xff]   ;;  %v2901_v22 = vld [vmem:[%s3582_s27 + $0x10] sm:$0xff]   ;;  %s641_s29 = scalar_lea.vmem [#allocation4], %s2439_s23  ;;  %s2321_s7 = scalar_lea.sflag [#allocation5], %s639_s1 }
  0x28   : > { %2661 = vmatprep.subr.bf16.mxu1 %v3010_v1  ;;  %v3279_v21 = vld [vmem:[%s648_s5] sm:$0xff]  ;;  %v2902_v24 = vld [vmem:[%s3582_s27 + $0x28] sm:$0xff]   ;;  %v2903_v25 = vld [vmem:[%s3582_s27 + $0x38] sm:$0xff]   ;;  %s2335_s2 = sshll.u32 %s641_s29, 4  ;;  %s3012_s20 = smov [#allocation4]   ;;  %s2336_s2 = int_to_ptr.vmem [resolvable:$true] %s2335_s2 }
  0x29   : > { %2642 = vmatmul.mubr.msk.bf16.vlgmr.msra.gmra.mxu0 %vm686_vm1, %v662_v7  ;;  %v1207_v23 = vpack.c.bf16 %v3279_v21, %v3279_v21  ;;  %v2904_v26 = vld [vmem:[%s3582_s27 + $0x20] sm:$0xff]   ;;  %v2905_v27 = vld [vmem:[%s3582_s27 + $0x30] sm:$0xff]   ;;  %s2932_s28 = scalar_lea.vmem %s2336_s2, 128  ;;  %s2936_s24 = sshll.u32 %s3012_s20, 4  ;;  %s2937_s24 = int_to_ptr.vmem [resolvable:$false] %s2936_s24 }
  0x2a   : > { %2650 = vmatmul.mubr.msk.bf16.vlgmr.msra.gmra.mxu1 %vm686_vm1, %v662_v7  ;;  %2654 = vmatpush3.bf16.msra.mxu0 %v2886_v5  ;;  %v2442_v28 = vld [vmem:[%s3584_s6] ss:$0 sm:$0xff]  ;;  %v2455_v41 = vld [vmem:[%s3584_s6 + $0x1] ss:$0 sm:$0xff]  ;;  %v2473_v57 = vld [vmem:[%s3584_s6 + $0x2] ss:$0 sm:$0xff]  ;;  %p2933_p12 = scmp.ne.s32.totalorder %s2336_s2, %s2932_s28  ;;  %p2939_p1 = scmp.lt.s32.totalorder %s2336_s2, %s2937_s24 }
  0x2b   : > { %2662 = vmatpush3.bf16.msra.mxu1 %v2887_v6  ;;  %2655 = vmatprep.subr.bf16.mxu0 %v3010_v1  ;;  %v2464_v43 = vld [vmem:[%s3546_s8 + $0x1] ss:$0 sm:$0xff]  ;;  %v2482_v59 = vld [vmem:[%s3546_s8 + $0x2] ss:$0 sm:$0xff]  ;;  %s2938_s21 = scalar_lea.vmem %s2937_s24, 256 }
  0x2c   : > { %2663 = vmatprep.subr.bf16.mxu1 %v3010_v1  ;;  %2657 = vmatprep.mubr.msk.bf16.mxu0 %vm3011_vm0, %v3010_v1  ;;  %p2934_p13 = pnand %p2933_p12, %p3153_p4  ;;  %p2940_p2 = scmp.lt.s32.totalorder %s2938_s21, %s2932_s28 }
  0x2d   : > { %2665 = vmatprep.mubr.msk.bf16.mxu1 %vm3011_vm0, %v3010_v1 }
  0x2e   : > { %2656 = vmatpush3.bf16.msra.mxu0 %v2888_v8  ;;  %p2935_p0 = pneg %p2934_p13  ;;  %p2941_p3 = por %p2940_p2, %p2939_p1 }
  0x2f   : > { %2664 = vmatpush3.bf16.msra.mxu1 %v2889_v9  ;;  %2669 = vmatprep.subr.bf16.mxu0 %v3010_v1 }
  0x30   : > { %2677 = vmatprep.subr.bf16.mxu1 %v3010_v1  ;;  %p2942_p5 = pnand %p2941_p3, %p2935_p0 }
  0x31   : > { %2658 = vmatmul.mubr.msk.bf16.vlgmr.msra.gmra.mxu0 %vm686_vm1, %v662_v7 }
  0x32   : > { %2666 = vmatmul.mubr.msk.bf16.vlgmr.msra.gmra.mxu1 %vm686_vm1, %v662_v7  ;;  %2670 = vmatpush3.bf16.msra.mxu0 %v2890_v10  ;;  %v2491_v10 = vld [vmem:[%s3584_s6 + $0x3] ss:$0 sm:$0xff]  ;;  %s2333_s6 = scalar_lea.hbm %s3557_s19, %s2566_s26 }
  0x33   : > { %2678 = vmatpush3.bf16.msra.mxu1 %v2891_v11  ;;  %2671 = vmatprep.subr.bf16.mxu0 %v3010_v1 }
  0x34   : > { %2679 = vmatprep.subr.bf16.mxu1 %v3010_v1  ;;  %2673 = vmatprep.mubr.msk.bf16.mxu0 %vm3011_vm0, %v3010_v1 }
  0x35   : > { %2681 = vmatprep.mubr.msk.bf16.mxu1 %vm3011_vm0, %v3010_v1 }
  0x36   : > { %2672 = vmatpush3.bf16.msra.mxu0 %v2892_v12  ;;  %v2500_v12 = vld [vmem:[%s3546_s8 + $0x3] ss:$0 sm:$0xff] }
  0x37   : > { %2680 = vmatpush3.bf16.msra.mxu1 %v2893_v13  ;;  %2685 = vmatprep.subr.bf16.mxu0 %v3010_v1 }
  0x38   : > { %2693 = vmatprep.subr.bf16.mxu1 %v3010_v1 }
  0x39   : > { %2674 = vmatmul.mubr.msk.bf16.vlgmr.msra.gmra.mxu0 %vm686_vm1, %v662_v7 }
  0x3a   : > { %2682 = vmatmul.mubr.msk.bf16.vlgmr.msra.gmra.mxu1 %vm686_vm1, %v662_v7  ;;  %2686 = vmatpush3.bf16.msra.mxu0 %v2894_v14 }
  0x3b   : > { %2694 = vmatpush3.bf16.msra.mxu1 %v2895_v15  ;;  %2687 = vmatprep.subr.bf16.mxu0 %v3010_v1 }
  0x3c   : > { %2695 = vmatprep.subr.bf16.mxu1 %v3010_v1  ;;  %2689 = vmatprep.mubr.msk.bf16.mxu0 %vm3011_vm0, %v3010_v1 }
  0x3d   : > { %2697 = vmatprep.mubr.msk.bf16.mxu1 %vm3011_vm0, %v3010_v1 }
  0x3e   : > { %2688 = vmatpush3.bf16.msra.mxu0 %v2896_v16 }
  0x3f   : > { %2696 = vmatpush3.bf16.msra.mxu1 %v2897_v17  ;;  %2701 = vmatprep.subr.bf16.mxu0 %v3010_v1 }
  0x40   : > { %2709 = vmatprep.subr.bf16.mxu1 %v3010_v1 }
  0x41   : > { %2690 = vmatmul.mubr.msk.bf16.vlgmr.msra.gmra.mxu0 %vm686_vm1, %v662_v7 }
  0x42   : > { %2698 = vmatmul.mubr.msk.bf16.vlgmr.msra.gmra.mxu1 %vm686_vm1, %v662_v7  ;;  %2702 = vmatpush3.bf16.msra.mxu0 %v2898_v18 }
  0x43   : > { %2710 = vmatpush3.bf16.msra.mxu1 %v2899_v19  ;;  %2703 = vmatprep.subr.bf16.mxu0 %v3010_v1 }
  0x44   : > { %2711 = vmatprep.subr.bf16.mxu1 %v3010_v1  ;;  %2705 = vmatprep.mubr.msk.bf16.mxu0 %vm3011_vm0, %v3010_v1 }
  0x45   : > { %2713 = vmatprep.mubr.msk.bf16.mxu1 %vm3011_vm0, %v3010_v1 }
  0x46   : > { %2704 = vmatpush3.bf16.msra.mxu0 %v2900_v20 }
  0x47   : > { %2712 = vmatpush3.bf16.msra.mxu1 %v2901_v22  ;;  %2717 = vmatprep.subr.bf16.mxu0 %v3010_v1 }
  0x48   : > { %2725 = vmatprep.subr.bf16.mxu1 %v3010_v1 }
  0x49   : > { %2706 = vmatmul.mubr.msk.bf16.vlgmr.msra.gmra.mxu0 %vm686_vm1, %v1207_v23 }
  0x4a   : > { %2714 = vmatmul.mubr.msk.bf16.vlgmr.msra.gmra.mxu1 %vm686_vm1, %v1207_v23  ;;  %2718 = vmatpush3.bf16.msra.mxu0 %v2902_v24 }
  0x4b   : > { %2726 = vmatpush3.bf16.msra.mxu1 %v2903_v25  ;;  %2719 = vmatprep.subr.bf16.mxu0 %v3010_v1  ;;  %v2504_v25 = vld [vmem:[%s3585_s4] ss:$0 sm:$0xff] }
  0x4c   : > { %2727 = vmatprep.subr.bf16.mxu1 %v3010_v1  ;;  %2721 = vmatprep.mubr.msk.bf16.mxu0 %vm3011_vm0, %v3010_v1 }
  0x4d   : > { %2729 = vmatprep.mubr.msk.bf16.mxu1 %vm3011_vm0, %v3010_v1 }
  0x4e   : > { %2720 = vmatpush3.bf16.msra.mxu0 %v2904_v26 }
  0x4f   : > { %2728 = vmatpush3.bf16.msra.mxu1 %v2905_v27  ;;  %2733 = vmatprep.subr.bf16.mxu0 %v3010_v1  ;;  %v2513_v27 = vld [vmem:[%s3585_s4 + $0x1] ss:$0 sm:$0xff] }
  0x50   : > { %2739 = vmatprep.subr.bf16.mxu1 %v3010_v1 }
  0x51   : > { %2722 = vmatmul.mubr.msk.bf16.vlgmr.msra.gmra.mxu0 %vm686_vm1, %v1207_v23 }
  0x52   : > { %2730 = vmatmul.mubr.msk.bf16.vlgmr.msra.gmra.mxu1 %vm686_vm1, %v1207_v23  ;;  %2735 = vmatprep.mubr.msk.bf16.mxu0 %vm3011_vm0, %v3010_v1 }
  0x53   : > { %2741 = vmatprep.mubr.msk.bf16.mxu1 %vm3011_vm0, %v3010_v1 }
  0xe9   : > { %v724_v30 = vpop.f32.mrf.mxu0 }
  0xea   : > { %v725_v31 = vadd.f32 %v2442_v28, %v724_v30  ;;  %v790_v32 = vpop.f32.mrf.mxu1 }
  0xeb   : > { %v791_v33 = vadd.f32 %v2446_v29, %v790_v32  ;;  %v2643_v34 = vpop.f32.mrf.mxu0 }
  0xec   : > { %v730_v35 = vpack.c.bf16 %v725_v31, %v725_v31  ;;  %v2651_v36 = vpop.f32.mrf.mxu1 }
  0xed   : > { %v796_v37 = vpack.c.bf16 %v791_v33, %v791_v33  ;;  %v727_v38 = vpop.f32.mrf.mxu0 }
  0xee   : > { %732 = vst.msk [vmem:[#allocation2] sm:$0xf] %vm731_vm2, %v730_v35  ;;  %v793_v39 = vpop.f32.mrf.mxu1 }
  0xef   : > { %797 = vst.msk [vmem:[#allocation3] sm:$0xf] %vm731_vm2, %v796_v37  ;;  %v2644_v40 = vpop.f32.mrf.mxu0 }
  0xf0   : > { %v2652_v42 = vpop.f32.mrf.mxu1 }
  0xf1   : > { %v857_v44 = vpop.f32.mrf.mxu0 }
  0xf2   : > { %v858_v45 = vadd.f32 %v2455_v41, %v857_v44  ;;  %v925_v46 = vpop.f32.mrf.mxu1 }
  0xf3   : > { %v926_v47 = vadd.f32 %v2464_v43, %v925_v46  ;;  %v2659_v48 = vpop.f32.mrf.mxu0  ;;  %v2522_v43 = vld [vmem:[%s3585_s4 + $0x2] ss:$0 sm:$0xff] }
  0xf4   : > { %v863_v49 = vpack.c.bf16 %v858_v45, %v858_v45  ;;  %v2667_v50 = vpop.f32.mrf.mxu1  ;;  %v2531_v45 = vld [vmem:[%s3585_s4 + $0x3] ss:$0 sm:$0xff] }
  0xf5   : > { %v931_v51 = vpack.c.bf16 %v926_v47, %v926_v47  ;;  %v860_v52 = vpop.f32.mrf.mxu0  ;;  %v1474_v53 = vld [vmem:[#allocation2] sm:$0xf] }
  0xf6   : > { %865 = vst.msk [vmem:[#allocation2 + $0x4] sm:$0xf] %vm731_vm2, %v863_v49  ;;  %v928_v54 = vpop.f32.mrf.mxu1  ;;  %v1484_v55 = vsel %vm1479_vm3, %v1474_v53, 0 }
  0xf7   : > { %933 = vst.msk [vmem:[#allocation3 + $0x4] sm:$0xf] %vm731_vm2, %v931_v51  ;;  %v2660_v56 = vpop.f32.mrf.mxu0  ;;  %2734 = vmatpush3.bf16.xpose.msra.mxu0 %v1484_v55  ;;  %v1712_v51 = vld [vmem:[#allocation3] sm:$0xf] }
  0xf8   : > { %v2668_v58 = vpop.f32.mrf.mxu1  ;;  %2745 = vmatprep.subr.bf16.mxu0 %v3010_v1 }
  0xf9   : > { %v993_v60 = vpop.f32.mrf.mxu0  ;;  %v1721_v58 = vsel %vm1719_vm4, %v1712_v51, 0 }
  0xfa   : > { %v994_v61 = vadd.f32 %v2473_v57, %v993_v60  ;;  %v1061_v62 = vpop.f32.mrf.mxu1 }
  0xfb   : > { %v1062_v63 = vadd.f32 %v2482_v59, %v1061_v62  ;;  %v2675_v0 = vpop.f32.mrf.mxu0  ;;  %v1478_v62 = vld [vmem:[%s3586_s25] sm:$0xff] }
  0xfc   : > { %v999_v2 = vpack.c.bf16 %v994_v61, %v994_v61  ;;  %v2683_v3 = vpop.f32.mrf.mxu1 }
  0xfd   : > { %v1067_v4 = vpack.c.bf16 %v1062_v63, %v1062_v63  ;;  %v996_v5 = vpop.f32.mrf.mxu0  ;;  %v1475_v6 = vld [vmem:[#allocation2 + $0x4] sm:$0xf] }
  0xfe   : > { %1001 = vst.msk [vmem:[#allocation2 + $0x8] sm:$0xf] %vm731_vm2, %v999_v2  ;;  %v1064_v7 = vpop.f32.mrf.mxu1  ;;  %v1530_v8 = vsel %vm1479_vm3, %v1475_v6, 0  ;;  %v1713_v54 = vld [vmem:[#allocation3 + $0x4] sm:$0xf] }
  0xff   : > { %1069 = vst.msk [vmem:[#allocation3 + $0x8] sm:$0xf] %vm731_vm2, %v1067_v4  ;;  %v2676_v9 = vpop.f32.mrf.mxu0  ;;  %2740 = vmatpush3.bf16.xpose.msra.mxu1 %v1530_v8  ;;  %v1767_v60 = vsel %vm1719_vm4, %v1713_v54, 0 }
 0x100   : > { %v2684_v11 = vpop.f32.mrf.mxu1  ;;  %2751 = vmatprep.subr.bf16.mxu1 %v3010_v1 }
 0x101   : > { %v1129_v13 = vpop.f32.mrf.mxu0 }
 0x102   : > { %v1130_v14 = vadd.f32 %v2491_v10, %v1129_v13  ;;  %v1197_v15 = vpop.f32.mrf.mxu1 }
 0x103   : > { %v1198_v16 = vadd.f32 %v2500_v12, %v1197_v15  ;;  %v2691_v17 = vpop.f32.mrf.mxu0 }
 0x104   : > { %v1135_v18 = vpack.c.bf16 %v1130_v14, %v1130_v14  ;;  %v2699_v19 = vpop.f32.mrf.mxu1 }
 0x105   : > { %v1203_v20 = vpack.c.bf16 %v1198_v16, %v1198_v16  ;;  %v1132_v22 = vpop.f32.mrf.mxu0  ;;  %v1476_v33 = vld [vmem:[#allocation2 + $0x8] sm:$0xf] }
 0x106   : > { %1137 = vst.msk [vmem:[#allocation2 + $0xc] sm:$0xf] %vm731_vm2, %v1135_v18  ;;  %v1200_v23 = vpop.f32.mrf.mxu1  ;;  %v1576_v40 = vsel %vm1479_vm3, %v1476_v33, 0  ;;  %v1714_v51 = vld [vmem:[#allocation3 + $0x8] sm:$0xf] }
 0x107   : > { %1205 = vst.msk [vmem:[#allocation3 + $0xc] sm:$0xf] %vm731_vm2, %v1203_v20  ;;  %v2692_v24 = vpop.f32.mrf.mxu0  ;;  %v1813_v54 = vsel %vm1719_vm4, %v1714_v51, 0 }
 0x108   : > { %v2700_v26 = vpop.f32.mrf.mxu1 }
 0x109   : > { %v1269_v28 = vpop.f32.mrf.mxu0 }
 0x10a   : > { %v1270_v29 = vadd.f32 %v2504_v25, %v1269_v28  ;;  %v1335_v30 = vpop.f32.mrf.mxu1 }
 0x10b   : > { %v1336_v31 = vadd.f32 %v2513_v27, %v1335_v30  ;;  %v2707_v32 = vpop.f32.mrf.mxu0 }
 0x10c   : > { %v1275_v34 = vpack.c.bf16 %v1270_v29, %v1270_v29  ;;  %v2715_v35 = vpop.f32.mrf.mxu1 }
 0x10d   : > { %v1341_v36 = vpack.c.bf16 %v1336_v31, %v1336_v31  ;;  %v1272_v37 = vpop.f32.mrf.mxu0  ;;  %v1477_v38 = vld [vmem:[#allocation2 + $0xc] sm:$0xf] }
 0x10e   : > { %v1338_v39 = vpop.f32.mrf.mxu1  ;;  %2736 = vmatmul.mubr.msk.bf16.vlgmr.msra.gmra.mxu0 %vm1479_vm3, %v1275_v34  ;;  %v1622_v41 = vsel %vm1479_vm3, %v1477_v38, 0 }
 0x10f   : > { %2742 = vmatmul.mubr.msk.bf16.vlgmr.msra.gmra.mxu1 %vm1479_vm3, %v1341_v36  ;;  %2746 = vmatpush3.bf16.xpose.msra.mxu0 %v1576_v40  ;;  %v2708_v42 = vpop.f32.mrf.mxu0 }
 0x110   : > { %v2716_v44 = vpop.f32.mrf.mxu1  ;;  %2752 = vmatpush3.bf16.xpose.msra.mxu1 %v1622_v41  ;;  %2747 = vmatprep.mubr.msk.bf16.mxu0 %vm3011_vm0, %v3010_v1 }
 0x111   : > { %v1401_v46 = vpop.f32.mrf.mxu0  ;;  %2757 = vmatprep.subr.bf16.mxu0 %v3010_v1  ;;  %2753 = vmatprep.mubr.msk.bf16.mxu1 %vm3011_vm0, %v3010_v1 }
 0x112   : > { %v1402_v47 = vadd.f32 %v2522_v43, %v1401_v46  ;;  %v1467_v48 = vpop.f32.mrf.mxu1  ;;  %2763 = vmatprep.subr.bf16.mxu1 %v3010_v1 }
 0x113   : > { %v1468_v49 = vadd.f32 %v2531_v45, %v1467_v48  ;;  %v2723_v50 = vpop.f32.mrf.mxu0 }
 0x114   : > { %v1407_v52 = vpack.c.bf16 %v1402_v47, %v1402_v47  ;;  %v2731_v53 = vpop.f32.mrf.mxu1 }
 0x115   : > { %v1473_v55 = vpack.c.bf16 %v1468_v49, %v1468_v49  ;;  %v1404_v56 = vpop.f32.mrf.mxu0 }
 0x116   : > { %v1470_v57 = vpop.f32.mrf.mxu1  ;;  %2748 = vmatmul.mubr.msk.bf16.vlgmr.msra.gmra.mxu0 %vm1479_vm3, %v1407_v52  ;;  %v1715_v56 = vld [vmem:[#allocation3 + $0xc] sm:$0xf] }
 0x117   : > { %2758 = vmatpush3.bf16.msra.mxu0 %v1721_v58  ;;  %v2724_v59 = vpop.f32.mrf.mxu0  ;;  %2754 = vmatmul.mubr.msk.bf16.vlgmr.msra.gmra.mxu1 %vm1479_vm3, %v1473_v55 }
 0x118   : > { %2764 = vmatpush3.bf16.msra.mxu1 %v1767_v60  ;;  %v2732_v61 = vpop.f32.mrf.mxu1  ;;  %2759 = vmatprep.mubr.msk.bf16.mxu0 %vm3011_vm0, %v3010_v1  ;;  %v1859_v59 = vsel %vm1719_vm4, %v1715_v56, 0 }
 0x119   : > { %2769 = vmatprep.subr.bf16.mxu0 %v3010_v1  ;;  %2765 = vmatprep.mubr.msk.bf16.mxu1 %vm3011_vm0, %v3010_v1 }
 0x11a   : > { %2775 = vmatprep.subr.bf16.mxu1 %v3010_v1 }
 0x1ce   : > { %v1520_v63 = vpop.f32.mrf.mxu0 }
 0x1cf   : > { %v1521_v0 = vadd.f32 %v1520_v63, %v1478_v62  ;;  %v1566_v2 = vpop.f32.mrf.mxu1 }
 0x1d0   : > { %v1567_v3 = vadd.f32 %v1566_v2, %v1478_v62  ;;  %v2737_v4 = vpop.f32.mrf.mxu0  ;;  %v1905_v2 = vld [vmem:[%s3547_s9] sm:$0xf] }
 0x1d1   : > { %v2743_v5 = vpop.f32.mrf.mxu1  ;;  %v1664_v6 = vsel %vm1479_vm3, %v1521_v0, -inf  ;;  %v2543_v4 = vld [vmem:[%s3547_s9 + $0x4] sm:$0xf] }
 0x1d2   : > { %1665 = vmax.xlane.f32.xlu0 %v1664_v6  ;;  %v1523_v7 = vpop.f32.mrf.mxu0  ;;  %v1667_v9 = vsel %vm1479_vm3, %v1567_v3, -inf  ;;  %v1912_v5 = vsel %vm1719_vm4, %v2543_v4, 0  ;;  %v2548_v6 = vld [vmem:[%s3547_s9 + $0xc] sm:$0xf] }
 0x1d3   : > { %v1569_v8 = vpop.f32.mrf.mxu1 }
 0x1d4   : > { %v2738_v10 = vpop.f32.mrf.mxu0 }
 0x1d5   : > { %v2744_v11 = vpop.f32.mrf.mxu1 }
 0x1d6   : > { %1668 = vmax.xlane.f32.xlu0 %v1667_v9  ;;  %v1612_v12 = vpop.f32.mrf.mxu0  ;;  %v2055_v9 = vsel %vm1719_vm4, %v2548_v6, 0  ;;  %v2546_v11 = vld [vmem:[%s3547_s9 + $0x8] sm:$0xf] }
 0x1d7   : > { %v1613_v13 = vadd.f32 %v1612_v12, %v1478_v62  ;;  %v1658_v14 = vpop.f32.mrf.mxu1 }
 0x1d8   : > { %v1659_v15 = vadd.f32 %v1658_v14, %v1478_v62  ;;  %v2749_v16 = vpop.f32.mrf.mxu0 }
 0x1d9   : > { %v2755_v17 = vpop.f32.mrf.mxu1  ;;  %v1670_v18 = vsel %vm1479_vm3, %v1613_v13, -inf }
 0x1da   : > { %1671 = vmax.xlane.f32.xlu1 %v1670_v18  ;;  %v1615_v19 = vpop.f32.mrf.mxu0  ;;  %v1673_v22 = vsel %vm1479_vm3, %v1659_v15, -inf }
 0x1db   : > { %v1661_v20 = vpop.f32.mrf.mxu1 }
 0x1dc   : > { %v2750_v23 = vpop.f32.mrf.mxu0 }
 0x1dd   : > { %v2756_v24 = vpop.f32.mrf.mxu1 }
 0x1de   : > { %1674 = vmax.xlane.f32.xlu1 %v1673_v22 }
 0x25b   : > { %v1666_v25 = vpop.xlane.xlu0 %1665 }
 0x25c   : > { %v1676_v26 = vsub.f32 %v1521_v0, %v1666_v25 }
 0x25e   : > { %v1680_v27 = vmul.f32 1.442695, %v1676_v26 }
 0x25f   : > { %v1669_v28 = vpop.xlane.xlu0 %1668 }
 0x260   : > { %2912 = vpow2.f32 %v1680_v27  ;;  %v1677_v29 = vsub.f32 %v1567_v3, %v1669_v28  ;;  %v1958_v3 = vsel %vm1719_vm4, %v1905_v2, 0 }
 0x262   : > { %v1682_v30 = vmul.f32 1.442695, %v1677_v29 }
 0x263   : > { %v1672_v31 = vpop.xlane.xlu1 %1671 }
 0x264   : > { %2914 = vpow2.f32 %v1682_v30  ;;  %v1678_v32 = vsub.f32 %v1613_v13, %v1672_v31 }
 0x266   : > { %v1684_v33 = vmul.f32 1.442695, %v1678_v32 }
 0x267   : > { %v1675_v34 = vpop.xlane.xlu1 %1674 }
 0x268   : > { %2916 = vpow2.f32 %v1684_v33  ;;  %v1679_v35 = vsub.f32 %v1659_v15, %v1675_v34  ;;  %v2006_v15 = vsel %vm1719_vm4, %v2546_v11, 0  ;;  %v2553_v11 = vld [vmem:[%s3550_s12] ss:$0 sm:$0xff] }
 0x26a   : > { %v1686_v36 = vmul.f32 1.442695, %v1679_v35 }
 0x26c   : > { %2918 = vpow2.f32 %v1686_v36 }
 0x26d   : > { %v2913_v37 = vpop.eup %2912 }
 0x26e   : > { %v1688_v38 = vsel %vm1479_vm3, %v2913_v37, 0.0 }
 0x26f   : > { %1689 = vadd.xlane.f32.xlu0 %v1688_v38 }
 0x271   : > { %v2915_v39 = vpop.eup %2914 }
 0x272   : > { %v1691_v40 = vsel %vm1479_vm3, %v2915_v39, 0.0 }
 0x273   : > { %1692 = vadd.xlane.f32.xlu1 %v1691_v40 }
 0x275   : > { %v2917_v41 = vpop.eup %2916 }
 0x276   : > { %v1694_v42 = vsel %vm1479_vm3, %v2917_v41, 0.0 }
 0x277   : > { %1695 = vadd.xlane.f32.xlu0 %v1694_v42 }
 0x279   : > { %v2919_v43 = vpop.eup %2918 }
 0x27a   : > { %v1697_v44 = vsel %vm1479_vm3, %v2919_v43, 0.0 }
 0x27b   : > { %1698 = vadd.xlane.f32.xlu1 %v1697_v44 }
 0x2f8   : > { %v1690_v45 = vpop.xlane.xlu0 %1689 }
 0x2f9   : > { %2920 = vrcp.f32 %v1690_v45 }
 0x2fc   : > { %v1693_v46 = vpop.xlane.xlu1 %1692 }
 0x2fd   : > { %2922 = vrcp.f32 %v1693_v46 }
 0x300   : > { %v1696_v47 = vpop.xlane.xlu0 %1695 }
 0x301   : > { %2924 = vrcp.f32 %v1696_v47 }
 0x304   : > { %v1699_v48 = vpop.xlane.xlu1 %1698 }
 0x305   : > { %2926 = vrcp.f32 %v1699_v48 }
 0x306   : > { %v2921_v49 = vpop.eup %2920 }
 0x307   : > { %v1704_v50 = vmul.f32 %v2921_v49, %v2913_v37 }
 0x309   : > { %v1708_v52 = vpack.c.bf16 %v1704_v50, %v1704_v50 }
 0x30a   : > { %v2923_v53 = vpop.eup %2922 }
 0x30b   : > { %2760 = vmatmul.mubr.msk.bf16.vlgmr.msra.gmra.mxu0 %vm1479_vm3, %v1708_v52  ;;  %v1705_v55 = vmul.f32 %v2923_v53, %v2915_v39 }
 0x30c   : > { %2770 = vmatpush3.bf16.msra.mxu0 %v1813_v54  ;;  %2771 = vmatprep.mubr.msk.bf16.mxu0 %vm3011_vm0, %v3010_v1 }
 0x30d   : > { %v1709_v57 = vpack.c.bf16 %v1705_v55, %v1705_v55  ;;  %2781 = vmatprep.subr.bf16.mxu0 %v3010_v1 }
 0x30e   : > { %v2925_v58 = vpop.eup %2924 }
 0x30f   : > { %2766 = vmatmul.mubr.msk.bf16.vlgmr.msra.gmra.mxu1 %vm1479_vm3, %v1709_v57  ;;  %v1706_v60 = vmul.f32 %v2925_v58, %v2917_v41 }
 0x310   : > { %2776 = vmatpush3.bf16.msra.mxu1 %v1859_v59  ;;  %2777 = vmatprep.mubr.msk.bf16.mxu1 %vm3011_vm0, %v3010_v1  ;;  %v2906_v59 = vld [vmem:[%s3549_s11 + $0x8] sm:$0xff]  }
 0x311   : > { %v1710_v61 = vpack.c.bf16 %v1706_v60, %v1706_v60  ;;  %2787 = vmatprep.subr.bf16.mxu1 %v3010_v1  ;;  %v2907_v60 = vld [vmem:[%s3549_s11] sm:$0xff]  }
 0x312   : > { %v2927_v62 = vpop.eup %2926 }
 0x313   : > { %2772 = vmatmul.mubr.msk.bf16.vlgmr.msra.gmra.mxu0 %vm1479_vm3, %v1710_v61  ;;  %v1707_v63 = vmul.f32 %v2927_v62, %v2919_v43  ;;  %v2550_v43 = vld [vmem:[%s3548_s10] ss:$0 sm:$0xff]  ;;  %v2909_v61 = vld [vmem:[%s3551_s13 + $0x10] sm:$0xff]  }
 0x314   : > { %2783 = vmatprep.mubr.msk.bf16.mxu0 %vm3011_vm0, %v3010_v1  ;;  %2782 = vmatpush3.bf16.msra.mxu0 %v1912_v5  ;;  %v2552_v5 = vld [vmem:[%s3554_s16] ss:$0 sm:$0xff] }
 0x315   : > { %v1711_v0 = vpack.c.bf16 %v1707_v63, %v1707_v63  ;;  %2793 = vmatprep.subr.bf16.mxu0 %v3010_v1 }
 0x317   : > { %2778 = vmatmul.mubr.msk.bf16.vlgmr.msra.gmra.mxu1 %vm1479_vm3, %v1711_v0 }
 0x318   : > { %2789 = vmatprep.mubr.msk.bf16.mxu1 %vm3011_vm0, %v3010_v1  ;;  %2788 = vmatpush3.bf16.msra.mxu1 %v1958_v3  ;;  %v2551_v3 = vld [vmem:[%s3553_s15] ss:$0 sm:$0xff] }
 0x319   : > { %2799 = vmatprep.subr.bf16.mxu1 %v3010_v1 }
 0x3cb   : > { %v1757_v7 = vpop.f32.mrf.mxu0 }
 0x3cc   : > { %v1901_v8 = vpack.c.bf16 %v1757_v7, %v1757_v7 }
 0x3cd   : > { %v2761_v10 = vpop.f32.mrf.mxu0 }
 0x3ce   : > { %2790 = vmatmul.mubr.msk.bf16.vlgmr.msra.gmra.mxu1 %vm1479_vm3, %v1901_v8  ;;  %v2911_v10 = vld [vmem:[%s3551_s13] sm:$0xff]  }
 0x3cf   : > { %v1760_v12 = vpop.f32.mrf.mxu0  ;;  %v1803_v13 = vpop.f32.mrf.mxu1  ;;  %2800 = vmatpush3.bf16.msra.mxu1 %v2055_v9  ;;  %2801 = vmatprep.mubr.msk.bf16.mxu1 %vm3011_vm0, %v3010_v1  ;;  %v2910_v9 = vld [vmem:[%s3551_s13 + $0x8] sm:$0xff]  }
 0x3d0   : > { %v1902_v14 = vpack.c.bf16 %v1803_v13, %v1803_v13  ;;  %2813 = vmatprep.subr.bf16.mxu1 %v3010_v1 }
 0x3d1   : > { %v2762_v16 = vpop.f32.mrf.mxu0  ;;  %v2767_v17 = vpop.f32.mrf.mxu1 }
 0x3d2   : > { %2784 = vmatmul.mubr.msk.bf16.vlgmr.msra.gmra.mxu0 %vm1479_vm3, %v1902_v14 }
 0x3d3   : > { %v1806_v18 = vpop.f32.mrf.mxu1  ;;  %v1849_v19 = vpop.f32.mrf.mxu0  ;;  %2794 = vmatpush3.bf16.msra.mxu0 %v2006_v15  ;;  %2795 = vmatprep.mubr.msk.bf16.mxu0 %vm3011_vm0, %v3010_v1 }
 0x3d4   : > { %2805 = vmatprep.subr.bf16.mxu0 %v3010_v1  ;;  %v1903_v25 = vpack.c.bf16 %v1849_v19, %v1849_v19 }
 0x3d5   : > { %v2768_v20 = vpop.f32.mrf.mxu1  ;;  %v2773_v22 = vpop.f32.mrf.mxu0 }
 0x3d7   : > { %v1852_v23 = vpop.f32.mrf.mxu0  ;;  %v1895_v24 = vpop.f32.mrf.mxu1 }
 0x3d8   : > { %v1904_v26 = vpack.c.bf16 %v1895_v24, %v1895_v24 }
 0x3d9   : > { %v2774_v27 = vpop.f32.mrf.mxu0  ;;  %v2779_v28 = vpop.f32.mrf.mxu1 }
 0x3da   : > { %2796 = vmatmul.mubr.msk.bf16.vlgmr.msra.gmra.mxu0 %vm1479_vm3, %v1903_v25  ;;  %2802 = vmatmul.mubr.msk.bf16.vlgmr.msra.gmra.mxu1 %vm1479_vm3, %v1904_v26 }
 0x3db   : > { %v1898_v29 = vpop.f32.mrf.mxu1  ;;  %2809 = vmatprep.mubr.msk.bf16.mxu0 %vm3011_vm0, %v3010_v1  ;;  %2821 = vmatprep.mubr.msk.bf16.mxu1 %vm3011_vm0, %v3010_v1 }
 0x3dc   : > { %2806 = vmatpush3.bf16.msra.mxu0 %v2906_v59 }
 0x3dd   : > { %v2780_v30 = vpop.f32.mrf.mxu1  ;;  %2807 = vmatprep.subr.bf16.mxu0 %v3010_v1 }
 0x3e0   : > { %2808 = vmatpush3.bf16.msra.mxu0 %v2907_v60 }
 0x48e   : > { %v1994_v31 = vpop.f32.mrf.mxu1 }
 0x490   : > { %v2791_v32 = vpop.f32.mrf.mxu1 }
 0x492   : > { %v1948_v33 = vpop.f32.mrf.mxu0  ;;  %v1997_v34 = vpop.f32.mrf.mxu1 }
 0x493   : > { %v1995_v39 = vadd.f32 %v1994_v31, %v1948_v33 }
 0x494   : > { %v2785_v35 = vpop.f32.mrf.mxu0  ;;  %v2792_v36 = vpop.f32.mrf.mxu1 }
 0x495   : > { %v2563_v36 = vld [vmem:[%s3555_s17] ss:$0 sm:$0xff] }
 0x496   : > { %v1951_v37 = vpop.f32.mrf.mxu0 }
 0x498   : > { %v2786_v38 = vpop.f32.mrf.mxu0 }
 0x499   : > { %v2564_v38 = vld [vmem:[%s3556_s18] ss:$0 sm:$0xff] }
 0x49a   : > { %v2042_v40 = vpop.f32.mrf.mxu0  ;;  %v2091_v41 = vpop.f32.mrf.mxu1 }
 0x49b   : > { %v2048_v42 = vadd.f32 %v2042_v40, %v1995_v39 }
 0x49c   : > { %v2797_v44 = vpop.f32.mrf.mxu0  ;;  %v2803_v45 = vpop.f32.mrf.mxu1 }
 0x49d   : > { %v2097_v46 = vadd.f32 %v2091_v41, %v2048_v42 }
 0x49e   : > { %v2045_v47 = vpop.f32.mrf.mxu0  ;;  %v2094_v48 = vpop.f32.mrf.mxu1 }
 0x49f   : > { %v2105_v49 = vadd.f32 %v2550_v43, %v2097_v46 }
 0x4a0   : > { %v2798_v50 = vpop.f32.mrf.mxu0  ;;  %v2804_v51 = vpop.f32.mrf.mxu1 }
 0x4a1   : > { %v2106_v52 = vadd.f32 %v2105_v49, %v3279_v21  ;;  %v2908_v21 = vld [vmem:[%s3551_s13 + $0x18] sm:$0xff]  }
 0x4a2   : > { %2814 = vmatpush3.bf16.msra.mxu1 %v2908_v21 }
 0x4a3   : > { %v2109_v53 = vsel %vm686_vm1, %v2106_v52, 0.0  ;;  %2815 = vmatprep.subr.bf16.mxu1 %v3010_v1 }
 0x4a4   : > { %2110 = vadd.xlane.f32.xlu0 %v2109_v53 }
 0x4a6   : > { %2816 = vmatpush3.bf16.msra.mxu1 %v2909_v61 }
 0x4a7   : > { %2817 = vmatprep.subr.bf16.mxu1 %v3010_v1 }
 0x4aa   : > { %2818 = vmatpush3.bf16.msra.mxu1 %v2910_v9 }
 0x4ab   : > { %2819 = vmatprep.subr.bf16.mxu1 %v3010_v1  ;;  %v2557_v1 = vld [vmem:[%s3552_s14] ss:$0 sm:$0xff] }
 0x4ae   : > { %2820 = vmatpush3.bf16.msra.mxu1 %v2911_v10 }
 0x52d   : > { %v2111_v54 = vpop.xlane.xlu0 %2110 }
 0x52e   : > { %v2113_v55 = vmul.f32 0.03125, %v2111_v54 }
 0x530   : > { %v2114_v56 = vsub.f32 %v2106_v52, %v2113_v55 }
 0x532   : > { %v2115_v57 = vmul.f32 %v2114_v56, %v2114_v56 }
 0x534   : > { %v2116_v58 = vsel %vm686_vm1, %v2115_v57, 0.0 }
 0x535   : > { %2117 = vadd.xlane.f32.xlu1 %v2116_v58 }
 0x5be   : > { %v2118_v62 = vpop.xlane.xlu1 %2117 }
 0x5bf   : > { %v2119_v63 = vmul.f32 0.03125, %v2118_v62 }
 0x5c1   : > { %v2120_v0 = vadd.f32 1e-05, %v2119_v63 }
 0x5c3   : > { %2928 = vrsqrt.f32 %v2120_v0 }
 0x5d0   : > { %v2929_v2 = vpop.eup %2928 }
 0x5d1   : > { %v2122_v4 = vmul.f32 %v2929_v2, %v2114_v56 }
 0x5d3   : > { %v2129_v6 = vmul.f32 %v2551_v3, %v2122_v4 }
 0x5d5   : > { %v2136_v7 = vadd.f32 %v2552_v5, %v2129_v6 }
 0x5d7   : > { %v2137_v8 = vpack.c.bf16 %v2136_v7, %v2136_v7 }
 0x5d9   : > { %2810 = vmatmul.mubr.msk.bf16.vlgmr.msra.gmra.mxu0 %vm686_vm1, %v2137_v8 }
 0x699   : > { %v2198_v12 = vpop.f32.mrf.mxu0 }
 0x69a   : > { %v2199_v13 = vadd.f32 %v2553_v11, %v2198_v12 }
 0x69b   : > { %v2811_v14 = vpop.f32.mrf.mxu0 }
 0x69c   : > { %v2204_v15 = vmax.f32 %v2199_v13, 0.0 }
 0x69d   : > { %v2201_v16 = vpop.f32.mrf.mxu0 }
 0x69e   : > { %v2205_v17 = vpack.c.bf16 %v2204_v15, %v2204_v15 }
 0x69f   : > { %v2812_v18 = vpop.f32.mrf.mxu0 }
 0x6a0   : > { %2822 = vmatmul.mubr.msk.bf16.vlgmr.msra.gmra.mxu1 %vm2245_vm5, %v2205_v17 }
 0x760   : > { %v2283_v19 = vpop.f32.mrf.mxu1 }
 0x761   : > { %v2284_v20 = vadd.f32 %v2557_v1, %v2283_v19 }
 0x762   : > { %v2823_v22 = vpop.f32.mrf.mxu1 }
 0x763   : > { %v2289_v23 = vadd.f32 %v2284_v20, %v2136_v7 }
 0x764   : > { %v2286_v24 = vpop.f32.mrf.mxu1 }
 0x765   : > { %v2292_v25 = vsel %vm686_vm1, %v2289_v23, 0.0 }
 0x766   : > { %2293 = vadd.xlane.f32.xlu0 %v2292_v25  ;;  %v2824_v26 = vpop.f32.mrf.mxu1 }
 0x7ef   : > { %v2294_v27 = vpop.xlane.xlu0 %2293 }
 0x7f0   : > { %v2295_v28 = vmul.f32 0.03125, %v2294_v27 }
 0x7f2   : > { %v2296_v29 = vsub.f32 %v2289_v23, %v2295_v28 }
 0x7f4   : > { %v2297_v30 = vmul.f32 %v2296_v29, %v2296_v29 }
 0x7f6   : > { %v2298_v31 = vsel %vm686_vm1, %v2297_v30, 0.0 }
 0x7f7   : > { %2299 = vadd.xlane.f32.xlu1 %v2298_v31 }
 0x880   : > { %v2300_v32 = vpop.xlane.xlu1 %2299 }
 0x881   : > { %v2301_v33 = vmul.f32 0.03125, %v2300_v32 }
 0x883   : > { %v2302_v34 = vadd.f32 1e-05, %v2301_v33 }
 0x885   : > { %2930 = vrsqrt.f32 %v2302_v34 }
 0x892   : > { %v2931_v35 = vpop.eup %2930 }
 0x893   : > { %v2304_v37 = vmul.f32 %v2931_v35, %v2296_v29 }
 0x895   : > { %v2311_v39 = vmul.f32 %v2563_v36, %v2304_v37 }
 0x897   : > { %v2318_v40 = vadd.f32 %v2564_v38, %v2311_v39 }
 0x899   : > { %2319 = vst.msk [vmem:[%s641_s29] sm:$0xff] %vm686_vm1, %v2318_v40 }
 0x89a   : > { %2945 = shalt.err (!%p2942_p5)
}
 0x89b   : > { %s2946_s4 = scalar_lea.hbm %s2333_s6, 128  ;;  %s2950_s5 = scalar_lea.hbm %s3557_s19, 256 }
 0x89c   : > { %p2947_p6 = scmp.ne.s32.totalorder %s2333_s6, %s2946_s4  ;;  %p2951_p10 = scmp.lt.s32.totalorder %s2333_s6, %s3557_s19 }
 0x89d   : > { %p2952_p11 = scmp.lt.s32.totalorder %s2950_s5, %s2946_s4 }
 0x89e   : > { %p2948_p7 = pnand %p2947_p6, %p3153_p4 }
 0x89f   : > { %p2953_p12 = por %p2952_p11, %p2951_p10 }
 0x8a0   : > { %p2949_p9 = pneg %p2948_p7 }
 0x8a2   : > { %p2954_p13 = pnand %p2953_p12, %p2949_p9 }
 0x8a4   : > { %2957 = shalt.err (!%p2954_p13)
}
 0x8a5   : > { %2825 = dma.vmem_to_hbm [thread:$0]  (%p3153_p4), %s2336_s2, 128, %s2333_s6, %s2321_s7  }
 0x8a6 PF: > { %p2831_p0 = scmp.ge.s32.totalorder %s3008_s22, 2  ;;  %s2347_s28 = sand.u32 1, %s2988_s0  }
 0x8a7   : > { %s2348_s20 = scalar_lea.sflag [#allocation5], %s2347_s28 }
 0x8a8   : > { %p2828_p1 = pnand %p2831_p0, %p3160_p8 }
 0x8aa   : > { %p2829_p2 = pneg %p2828_p1 }
 0x8ac   : > { %2983 = dma.done.wait (%p2829_p2), %s2348_s20, 128  }
 0x8ad   : > { %2985 = vsyncadd (%p2829_p2), %s2348_s20, 4294967168  ;;  %s32_s22 = sadd.s32 1, %s3008_s22   ;;  %s3588_s24 = sld [smem:[#allocation7_spill]] }
 0x8ae   : > { %p29_p3 = scmp.ge.s32.totalorder %s32_s22, 4   ;;  %s3589_s20 = sld [smem:[#allocation11_spill]] }
 0x8af   : > { %s3590_s21 = sld [smem:[#allocation8_spill]]  ;;  %s3592_s0 = smov %s2992_s30 }
 0x8b0   : > { %s3591_s1 = sld [smem:[#allocation9_spill]]  ;;  %31 = sbr.rel (!%p29_p3) target bundleno = 13 (0xd), region = 168 }
 0x8b3   : > { %s3593_s30 = smov %s3588_s24 }
 0x8b5   :  { %2353 = vsyncpa [#allocation5], 1 }
 0x8b6   :  { %2355 = vsyncpa [#allocation5 + $0x1], 1 }

// kernel: tpu_custom_call.1
= control target key start
LH: loop header
LB: loop body
LE: loop exit
PB: predicated region body
PF: predicated region fallthrough
CT: control target
= control target key end

     0   :  { %s3538_s0 = inlined_call_operand.vmem [shape: f32[2,8,32], index: 0, kind: input, shape index: {}]   ;;  %s3539_s1 = inlined_call_operand.vmem [shape: bf16[2,8,32], index: 1, kind: input, shape index: {}]   ;;  %s3540_s2 = inlined_call_operand.vmem [shape: f32[1,8,8], index: 2, kind: input, shape index: {}]   ;;  %s3541_s3 = inlined_call_operand.vmem [shape: bf16[4,32,8], index: 3, kind: input, shape index: {}]   ;;  %s3542_s4 = inlined_call_operand.vmem [shape: f32[4,1,8], index: 4, kind: input, shape index: {}]   ;;  %s3543_s5 = inlined_call_operand.vmem [shape: bf16[4,32,8], index: 5, kind: input, shape index: {}]   ;;  %s3544_s6 = inlined_call_operand.vmem [shape: f32[4,1,8], index: 6, kind: input, shape index: {}]   ;;  %s3545_s7 = inlined_call_operand.vmem [shape: bf16[4,32,8], index: 7, kind: input, shape index: {}]   ;;  %s3546_s8 = inlined_call_operand.vmem [shape: f32[4,1,8], index: 8, kind: input, shape index: {}]   ;;  %s3547_s9 = inlined_call_operand.vmem [shape: bf16[4,8,32], index: 9, kind: input, shape index: {}]   ;;  %s3548_s10 = inlined_call_operand.vmem [shape: f32[1,32], index: 10, kind: input, shape index: {}]   ;;  %s3549_s11 = inlined_call_operand.vmem [shape: bf16[32,64], index: 11, kind: input, shape index: {}]   ;;  %s3550_s12 = inlined_call_operand.vmem [shape: f32[1,64], index: 12, kind: input, shape index: {}]   ;;  %s3551_s13 = inlined_call_operand.vmem [shape: bf16[64,32], index: 13, kind: input, shape index: {}]   ;;  %s3552_s14 = inlined_call_operand.vmem [shape: f32[1,32], index: 14, kind: input, shape index: {}]   ;;  %s3553_s15 = inlined_call_operand.vmem [shape: f32[1,32], index: 15, kind: input, shape index: {}]   ;;  %s3554_s16 = inlined_call_operand.vmem [shape: f32[1,32], index: 16, kind: input, shape index: {}]   ;;  %s3555_s17 = inlined_call_operand.vmem [shape: f32[1,32], index: 17, kind: input, shape index: {}]   ;;  %s3556_s18 = inlined_call_operand.vmem [shape: f32[1,32], index: 18, kind: input, shape index: {}]   ;;  %s3557_s19 = inlined_call_operand.hbm [shape: f32[2,8,32], index: 19, kind: output, shape index: {}]  }
   0x1   :  { %3563 = sst [smem:[#allocation12_spill]] %s3538_s0 }
   0x2   :  { %3564 = sst [smem:[#allocation13_spill]] %s3539_s1 }
   0x3   :  { %3565 = sst [smem:[#allocation14_spill]] %s3540_s2 }
   0x4   :  { %3566 = sst [smem:[#allocation15_spill]] %s3541_s3 }
   0x5   :  { %3567 = sst [smem:[#allocation16_spill]] %s3542_s4 }
   0x6   :  { %3568 = sst [smem:[#allocation17_spill]] %s3543_s5 }
   0x7   :  { %3569 = sst [smem:[#allocation18_spill]] %s3544_s6 }
   0x8   :  { %3570 = sst [smem:[#allocation19_spill]] %s3545_s7 }
   0x9   :  { %24 = vsyncpa [#allocation5], 0 }
   0xa   :  { %26 = vsyncpa [#allocation5 + $0x1], 0  ;;  %s3113_s0 = smov 0   ;;  %s3115_s30 = smov 0  }
   0xb   :  { %s3117_s20 = smov 0   ;;  %s3119_s21 = smov 0  }
   0xc   :  { %s3121_s1 = smov 0   ;;  %s3123_s22 = smov 0  }
   0xd LB: > { %3571 = sst [smem:[#allocation7_spill]] %s2996_s20  ;;  %s2433_s2 = sadd.s32 4294967295, %s3008_s22   ;;  %s3008_s22 = sphi %s3123_s22, %s32_s22   ;;  %s3004_s1 = sphi %s3121_s1, %s3591_s1   ;;  %s3000_s21 = sphi %s3119_s21, %s3590_s21   ;;  %s2996_s20 = sphi %s3117_s20, %s3589_s20   ;;  %s2992_s30 = sphi %s3115_s30, %s3593_s30   ;;  %s2988_s0 = sphi %s3113_s0, %s3592_s0  }
   0xe   : > { %3572 = sst [smem:[#allocation8_spill]] %s3004_s1  ;;  %s2434_s23 = sadd.s32 4294967294, %s3008_s22  }
   0xf   : > { %s44_s24 = sadd.s32 1, %s3004_s1  ;;  %s469_s25 = sadd.s32 1, %s2996_s20 }
  0x10   : > { %p46_p0 = scmp.ge.s32.totalorder %s44_s24, 2  ;;  %p479_p1 = scmp.ne.s32.totalorder %s2996_s20, %s2992_s30 }
  0x11   : > { %p480_p2 = scmp.eq.s32.totalorder %s2433_s2, 1  ;;  %p485_p3 = scmp.ne.s32.totalorder %s2992_s30, %s2988_s0 }
  0x12   : > { %s3595_s24 = smov (%p46_p0, %s44_s24), 0  ;;  %p486_p5 = scmp.eq.s32.totalorder %s2434_s23, 1 }
  0x13   : > { %3573 = sst [smem:[#allocation9_spill]] %s3595_s24  ;;  %p3153_p4 = por %p480_p2, %p479_p1 }
  0x14   : > { %s464_s26 = ssub.s32 %s3004_s1, %s3595_s24  ;;  %p2438_p6 = scmp.ge.s32.totalorder %s3008_s22, 1 }
  0x15   : > { %p467_p7 = scmp.eq.s32.totalorder %s464_s26, 0  ;;  %p3160_p8 = por %p486_p5, %p485_p3 }
  0x16   : > { %p576_p9 = scmp.lt.s32.totalorder %s3008_s22, 3 }
  0x17   : > { %s3575_s27 = scalar_select %p3160_p8, 1, 0 }
  0x18   : > { %s3166_s28 = scalar_select %p467_p7, %s2996_s20, %s469_s25  }
  0x19   : > { %3576 = sst [smem:[#allocation10_spill]] %s3575_s27  ;;  %p577_p10 = pnand %p2438_p6, %p576_p9 }
  0x1a   : > { %3577 = sst [smem:[#allocation11_spill]] %s3166_s28  ;;  %p642_p11 = scmp.lt.s32.totalorder (!%p577_p10), %s3000_s21, 1 }
  0x1b   : > { %580 = sbr.rel (%p577_p10) target bundleno = 2214 (0x8a6), region = 96  ;;  %s3578_s5 = sld [smem:[#allocation17_spill]] (!%p577_p10) }
  0x1c   : > { %s3579_s7 = sld [smem:[#allocation19_spill]] (!%p577_p10) }
  0x1d   : > { %s3580_s29 = sld [smem:[#allocation13_spill]] (!%p577_p10) }
  0x1e   : > { %s3581_s20 = sld [smem:[#allocation15_spill]] (!%p577_p10) }
  0x1f   : > { %s3583_s1 = sld [smem:[#allocation12_spill]] (!%p577_p10) }
  0x20   : > { %v3010_v1 = vmov 0.0   ;;  %vm3011_vm0 = vmmov 0   ;;  %s3190_s23 = scalar_select %p642_p11, %s3000_s21, 1  ;;  %vm686_vm1 = vcmask 261120   ;;  %v2446_v29 = vld [vmem:[%s3546_s8] ss:$0 sm:$0xff] }
  0x21   : > { %v2882_v0 = vld [vmem:[%s3578_s5 + $0x8] sm:$0xff]   ;;  %2637 = vmatprep.subr.bf16.mxu0 %v3010_v1  ;;  %2645 = vmatprep.subr.bf16.mxu1 %v3010_v1  ;;  %v2884_v3 = vld [vmem:[%s3578_s5] sm:$0xff]   ;;  %v2886_v5 = vld [vmem:[%s3578_s5 + $0x18] sm:$0xff]   ;;  %s3584_s6 = sld [smem:[#allocation18_spill]]  ;;  %vm731_vm2 = vcmask 60416   ;;  %vm1479_vm3 = vcmask 64512  }
  0x22   : > { %v2883_v2 = vld [vmem:[%s3579_s7 + $0x8] sm:$0xff]   ;;  %2638 = vmatpush3.bf16.msra.mxu0 %v2882_v0  ;;  %2641 = vmatprep.mubr.msk.bf16.mxu0 %vm3011_vm0, %v3010_v1  ;;  %v2885_v4 = vld [vmem:[%s3579_s7] sm:$0xff]   ;;  %s2441_s24 = sshll.u32 %s3190_s23, 2  ;;  %v2887_v6 = vld [vmem:[%s3579_s7 + $0x18] sm:$0xff]   ;;  %s2440_s26 = sshll.u32 %s3190_s23, 3  ;;  %vm1719_vm4 = vcmask 1043456  }
  0x23   : > { %2646 = vmatpush3.bf16.msra.mxu1 %v2883_v2  ;;  %2639 = vmatprep.subr.bf16.mxu0 %v3010_v1  ;;  %s652_s2 = scalar_lea.vmem %s3580_s29, %s2441_s24  ;;  %v2888_v8 = vld [vmem:[%s3578_s5 + $0x10] sm:$0xff]   ;;  %v2890_v10 = vld [vmem:[%s3578_s5 + $0x28] sm:$0xff]   ;;  %v2892_v12 = vld [vmem:[%s3578_s5 + $0x20] sm:$0xff]   ;;  %s3585_s4 = sld [smem:[#allocation16_spill]]  ;;  %vm2245_vm5 = vcmask 523264  }
  0x24   : > { %2647 = vmatprep.subr.bf16.mxu1 %v3010_v1  ;;  %2649 = vmatprep.mubr.msk.bf16.mxu1 %vm3011_vm0, %v3010_v1  ;;  %v662_v7 = vld [vmem:[%s652_s2] sm:$0xf]  ;;  %v2889_v9 = vld [vmem:[%s3579_s7 + $0x10] sm:$0xff]   ;;  %v2891_v11 = vld [vmem:[%s3579_s7 + $0x28] sm:$0xff]   ;;  %s3582_s27 = smov %s3581_s20  ;;  %s3586_s25 = sld [smem:[#allocation14_spill]] }
  0x25   : > { %v2893_v13 = vld [vmem:[%s3579_s7 + $0x20] sm:$0xff]   ;;  %v2894_v14 = vld [vmem:[%s3578_s5 + $0x38] sm:$0xff]   ;;  %v2896_v16 = vld [vmem:[%s3578_s5 + $0x30] sm:$0xff]   ;;  %s648_s5 = scalar_lea.vmem %s3583_s1, %s2440_s26  ;;  %s639_s1 = sand.u32 1, %s2992_s30  }
  0x26   : > { %2640 = vmatpush3.bf16.msra.mxu0 %v2884_v3  ;;  %v2895_v15 = vld [vmem:[%s3579_s7 + $0x38] sm:$0xff]   ;;  %v2897_v17 = vld [vmem:[%s3579_s7 + $0x30] sm:$0xff]   ;;  %v2898_v18 = vld [vmem:[%s3581_s20 + $0x8] sm:$0xff]   ;;  %s2439_s23 = sshll.u32 %s639_s1, 3  ;;  %s2566_s26 = sshll.u32 %s3000_s21, 7 }
  0x27   : > { %2648 = vmatpush3.bf16.msra.mxu1 %v2885_v4  ;;  %2653 = vmatprep.subr.bf16.mxu0 %v3010_v1  ;;  %v2899_v19 = vld [vmem:[%s3582_s27 + $0x18] sm:$0xff]   ;;  %v2900_v20 = vld [vmem:[%s3582_s27] sm:$0xff]   ;;  %v2901_v22 = vld [vmem:[%s3582_s27 + $0x10] sm:$0xff]   ;;  %s641_s29 = scalar_lea.vmem [#allocation4], %s2439_s23  ;;  %s2321_s7 = scalar_lea.sflag [#allocation5], %s639_s1 }
  0x28   : > { %2661 = vmatprep.subr.bf16.mxu1 %v3010_v1  ;;  %v3279_v21 = vld [vmem:[%s648_s5] sm:$0xff]  ;;  %v2902_v24 = vld [vmem:[%s3582_s27 + $0x28] sm:$0xff]   ;;  %v2903_v25 = vld [vmem:[%s3582_s27 + $0x38] sm:$0xff]   ;;  %s2335_s2 = sshll.u32 %s641_s29, 4  ;;  %s3012_s20 = smov [#allocation4]   ;;  %s2336_s2 = int_to_ptr.vmem [resolvable:$true] %s2335_s2 }
  0x29   : > { %2642 = vmatmul.mubr.msk.bf16.vlgmr.msra.gmra.mxu0 %vm686_vm1, %v662_v7  ;;  %v1207_v23 = vpack.c.bf16 %v3279_v21, %v3279_v21  ;;  %v2904_v26 = vld [vmem:[%s3582_s27 + $0x20] sm:$0xff]   ;;  %v2905_v27 = vld [vmem:[%s3582_s27 + $0x30] sm:$0xff]   ;;  %s2932_s28 = scalar_lea.vmem %s2336_s2, 128  ;;  %s2936_s24 = sshll.u32 %s3012_s20, 4  ;;  %s2937_s24 = int_to_ptr.vmem [resolvable:$false] %s2936_s24 }
  0x2a   : > { %2650 = vmatmul.mubr.msk.bf16.vlgmr.msra.gmra.mxu1 %vm686_vm1, %v662_v7  ;;  %2654 = vmatpush3.bf16.msra.mxu0 %v2886_v5  ;;  %v2442_v28 = vld [vmem:[%s3584_s6] ss:$0 sm:$0xff]  ;;  %v2455_v41 = vld [vmem:[%s3584_s6 + $0x1] ss:$0 sm:$0xff]  ;;  %v2473_v57 = vld [vmem:[%s3584_s6 + $0x2] ss:$0 sm:$0xff]  ;;  %p2933_p12 = scmp.ne.s32.totalorder %s2336_s2, %s2932_s28  ;;  %p2939_p1 = scmp.lt.s32.totalorder %s2336_s2, %s2937_s24 }
  0x2b   : > { %2662 = vmatpush3.bf16.msra.mxu1 %v2887_v6  ;;  %2655 = vmatprep.subr.bf16.mxu0 %v3010_v1  ;;  %v2464_v43 = vld [vmem:[%s3546_s8 + $0x1] ss:$0 sm:$0xff]  ;;  %v2482_v59 = vld [vmem:[%s3546_s8 + $0x2] ss:$0 sm:$0xff]  ;;  %s2938_s21 = scalar_lea.vmem %s2937_s24, 256 }
  0x2c   : > { %2663 = vmatprep.subr.bf16.mxu1 %v3010_v1  ;;  %2657 = vmatprep.mubr.msk.bf16.mxu0 %vm3011_vm0, %v3010_v1  ;;  %p2934_p13 = pnand %p2933_p12, %p3153_p4  ;;  %p2940_p2 = scmp.lt.s32.totalorder %s2938_s21, %s2932_s28 }
  0x2d   : > { %2665 = vmatprep.mubr.msk.bf16.mxu1 %vm3011_vm0, %v3010_v1 }
  0x2e   : > { %2656 = vmatpush3.bf16.msra.mxu0 %v2888_v8  ;;  %p2935_p0 = pneg %p2934_p13  ;;  %p2941_p3 = por %p2940_p2, %p2939_p1 }
  0x2f   : > { %2664 = vmatpush3.bf16.msra.mxu1 %v2889_v9  ;;  %2669 = vmatprep.subr.bf16.mxu0 %v3010_v1 }
  0x30   : > { %2677 = vmatprep.subr.bf16.mxu1 %v3010_v1  ;;  %p2942_p5 = pnand %p2941_p3, %p2935_p0 }
  0x31   : > { %2658 = vmatmul.mubr.msk.bf16.vlgmr.msra.gmra.mxu0 %vm686_vm1, %v662_v7 }
  0x32   : > { %2666 = vmatmul.mubr.msk.bf16.vlgmr.msra.gmra.mxu1 %vm686_vm1, %v662_v7  ;;  %2670 = vmatpush3.bf16.msra.mxu0 %v2890_v10  ;;  %v2491_v10 = vld [vmem:[%s3584_s6 + $0x3] ss:$0 sm:$0xff]  ;;  %s2333_s6 = scalar_lea.hbm %s3557_s19, %s2566_s26 }
  0x33   : > { %2678 = vmatpush3.bf16.msra.mxu1 %v2891_v11  ;;  %2671 = vmatprep.subr.bf16.mxu0 %v3010_v1 }
  0x34   : > { %2679 = vmatprep.subr.bf16.mxu1 %v3010_v1  ;;  %2673 = vmatprep.mubr.msk.bf16.mxu0 %vm3011_vm0, %v3010_v1 }
  0x35   : > { %2681 = vmatprep.mubr.msk.bf16.mxu1 %vm3011_vm0, %v3010_v1 }
  0x36   : > { %2672 = vmatpush3.bf16.msra.mxu0 %v2892_v12  ;;  %v2500_v12 = vld [vmem:[%s3546_s8 + $0x3] ss:$0 sm:$0xff] }
  0x37   : > { %2680 = vmatpush3.bf16.msra.mxu1 %v2893_v13  ;;  %2685 = vmatprep.subr.bf16.mxu0 %v3010_v1 }
  0x38   : > { %2693 = vmatprep.subr.bf16.mxu1 %v3010_v1 }
  0x39   : > { %2674 = vmatmul.mubr.msk.bf16.vlgmr.msra.gmra.mxu0 %vm686_vm1, %v662_v7 }
  0x3a   : > { %2682 = vmatmul.mubr.msk.bf16.vlgmr.msra.gmra.mxu1 %vm686_vm1, %v662_v7  ;;  %2686 = vmatpush3.bf16.msra.mxu0 %v2894_v14 }
  0x3b   : > { %2694 = vmatpush3.bf16.msra.mxu1 %v2895_v15  ;;  %2687 = vmatprep.subr.bf16.mxu0 %v3010_v1 }
  0x3c   : > { %2695 = vmatprep.subr.bf16.mxu1 %v3010_v1  ;;  %2689 = vmatprep.mubr.msk.bf16.mxu0 %vm3011_vm0, %v3010_v1 }
  0x3d   : > { %2697 = vmatprep.mubr.msk.bf16.mxu1 %vm3011_vm0, %v3010_v1 }
  0x3e   : > { %2688 = vmatpush3.bf16.msra.mxu0 %v2896_v16 }
  0x3f   : > { %2696 = vmatpush3.bf16.msra.mxu1 %v2897_v17  ;;  %2701 = vmatprep.subr.bf16.mxu0 %v3010_v1 }
  0x40   : > { %2709 = vmatprep.subr.bf16.mxu1 %v3010_v1 }
  0x41   : > { %2690 = vmatmul.mubr.msk.bf16.vlgmr.msra.gmra.mxu0 %vm686_vm1, %v662_v7 }
  0x42   : > { %2698 = vmatmul.mubr.msk.bf16.vlgmr.msra.gmra.mxu1 %vm686_vm1, %v662_v7  ;;  %2702 = vmatpush3.bf16.msra.mxu0 %v2898_v18 }
  0x43   : > { %2710 = vmatpush3.bf16.msra.mxu1 %v2899_v19  ;;  %2703 = vmatprep.subr.bf16.mxu0 %v3010_v1 }
  0x44   : > { %2711 = vmatprep.subr.bf16.mxu1 %v3010_v1  ;;  %2705 = vmatprep.mubr.msk.bf16.mxu0 %vm3011_vm0, %v3010_v1 }
  0x45   : > { %2713 = vmatprep.mubr.msk.bf16.mxu1 %vm3011_vm0, %v3010_v1 }
  0x46   : > { %2704 = vmatpush3.bf16.msra.mxu0 %v2900_v20 }
  0x47   : > { %2712 = vmatpush3.bf16.msra.mxu1 %v2901_v22  ;;  %2717 = vmatprep.subr.bf16.mxu0 %v3010_v1 }
  0x48   : > { %2725 = vmatprep.subr.bf16.mxu1 %v3010_v1 }
  0x49   : > { %2706 = vmatmul.mubr.msk.bf16.vlgmr.msra.gmra.mxu0 %vm686_vm1, %v1207_v23 }
  0x4a   : > { %2714 = vmatmul.mubr.msk.bf16.vlgmr.msra.gmra.mxu1 %vm686_vm1, %v1207_v23  ;;  %2718 = vmatpush3.bf16.msra.mxu0 %v2902_v24 }
  0x4b   : > { %2726 = vmatpush3.bf16.msra.mxu1 %v2903_v25  ;;  %2719 = vmatprep.subr.bf16.mxu0 %v3010_v1  ;;  %v2504_v25 = vld [vmem:[%s3585_s4] ss:$0 sm:$0xff] }
  0x4c   : > { %2727 = vmatprep.subr.bf16.mxu1 %v3010_v1  ;;  %2721 = vmatprep.mubr.msk.bf16.mxu0 %vm3011_vm0, %v3010_v1 }
  0x4d   : > { %2729 = vmatprep.mubr.msk.bf16.mxu1 %vm3011_vm0, %v3010_v1 }
  0x4e   : > { %2720 = vmatpush3.bf16.msra.mxu0 %v2904_v26 }
  0x4f   : > { %2728 = vmatpush3.bf16.msra.mxu1 %v2905_v27  ;;  %2733 = vmatprep.subr.bf16.mxu0 %v3010_v1  ;;  %v2513_v27 = vld [vmem:[%s3585_s4 + $0x1] ss:$0 sm:$0xff] }
  0x50   : > { %2739 = vmatprep.subr.bf16.mxu1 %v3010_v1 }
  0x51   : > { %2722 = vmatmul.mubr.msk.bf16.vlgmr.msra.gmra.mxu0 %vm686_vm1, %v1207_v23 }
  0x52   : > { %2730 = vmatmul.mubr.msk.bf16.vlgmr.msra.gmra.mxu1 %vm686_vm1, %v1207_v23  ;;  %2735 = vmatprep.mubr.msk.bf16.mxu0 %vm3011_vm0, %v3010_v1 }
  0x53   : > { %2741 = vmatprep.mubr.msk.bf16.mxu1 %vm3011_vm0, %v3010_v1 }
  0xe9   : > { %v724_v30 = vpop.f32.mrf.mxu0 }
  0xea   : > { %v725_v31 = vadd.f32 %v2442_v28, %v724_v30  ;;  %v790_v32 = vpop.f32.mrf.mxu1 }
  0xeb   : > { %v791_v33 = vadd.f32 %v2446_v29, %v790_v32  ;;  %v2643_v34 = vpop.f32.mrf.mxu0 }
  0xec   : > { %v730_v35 = vpack.c.bf16 %v725_v31, %v725_v31  ;;  %v2651_v36 = vpop.f32.mrf.mxu1 }
  0xed   : > { %v796_v37 = vpack.c.bf16 %v791_v33, %v791_v33  ;;  %v727_v38 = vpop.f32.mrf.mxu0 }
  0xee   : > { %732 = vst.msk [vmem:[#allocation2] sm:$0xf] %vm731_vm2, %v730_v35  ;;  %v793_v39 = vpop.f32.mrf.mxu1 }
  0xef   : > { %797 = vst.msk [vmem:[#allocation3] sm:$0xf] %vm731_vm2, %v796_v37  ;;  %v2644_v40 = vpop.f32.mrf.mxu0 }
  0xf0   : > { %v2652_v42 = vpop.f32.mrf.mxu1 }
  0xf1   : > { %v857_v44 = vpop.f32.mrf.mxu0 }
  0xf2   : > { %v858_v45 = vadd.f32 %v2455_v41, %v857_v44  ;;  %v925_v46 = vpop.f32.mrf.mxu1 }
  0xf3   : > { %v926_v47 = vadd.f32 %v2464_v43, %v925_v46  ;;  %v2659_v48 = vpop.f32.mrf.mxu0  ;;  %v2522_v43 = vld [vmem:[%s3585_s4 + $0x2] ss:$0 sm:$0xff] }
  0xf4   : > { %v863_v49 = vpack.c.bf16 %v858_v45, %v858_v45  ;;  %v2667_v50 = vpop.f32.mrf.mxu1  ;;  %v2531_v45 = vld [vmem:[%s3585_s4 + $0x3] ss:$0 sm:$0xff] }
  0xf5   : > { %v931_v51 = vpack.c.bf16 %v926_v47, %v926_v47  ;;  %v860_v52 = vpop.f32.mrf.mxu0  ;;  %v1474_v53 = vld [vmem:[#allocation2] sm:$0xf] }
  0xf6   : > { %865 = vst.msk [vmem:[#allocation2 + $0x4] sm:$0xf] %vm731_vm2, %v863_v49  ;;  %v928_v54 = vpop.f32.mrf.mxu1  ;;  %v1484_v55 = vsel %vm1479_vm3, %v1474_v53, 0 }
  0xf7   : > { %933 = vst.msk [vmem:[#allocation3 + $0x4] sm:$0xf] %vm731_vm2, %v931_v51  ;;  %v2660_v56 = vpop.f32.mrf.mxu0  ;;  %2734 = vmatpush3.bf16.xpose.msra.mxu0 %v1484_v55  ;;  %v1712_v51 = vld [vmem:[#allocation3] sm:$0xf] }
  0xf8   : > { %v2668_v58 = vpop.f32.mrf.mxu1  ;;  %2745 = vmatprep.subr.bf16.mxu0 %v3010_v1 }
  0xf9   : > { %v993_v60 = vpop.f32.mrf.mxu0  ;;  %v1721_v58 = vsel %vm1719_vm4, %v1712_v51, 0 }
  0xfa   : > { %v994_v61 = vadd.f32 %v2473_v57, %v993_v60  ;;  %v1061_v62 = vpop.f32.mrf.mxu1 }
  0xfb   : > { %v1062_v63 = vadd.f32 %v2482_v59, %v1061_v62  ;;  %v2675_v0 = vpop.f32.mrf.mxu0  ;;  %v1478_v62 = vld [vmem:[%s3586_s25] sm:$0xff] }
  0xfc   : > { %v999_v2 = vpack.c.bf16 %v994_v61, %v994_v61  ;;  %v2683_v3 = vpop.f32.mrf.mxu1 }
  0xfd   : > { %v1067_v4 = vpack.c.bf16 %v1062_v63, %v1062_v63  ;;  %v996_v5 = vpop.f32.mrf.mxu0  ;;  %v1475_v6 = vld [vmem:[#allocation2 + $0x4] sm:$0xf] }
  0xfe   : > { %1001 = vst.msk [vmem:[#allocation2 + $0x8] sm:$0xf] %vm731_vm2, %v999_v2  ;;  %v1064_v7 = vpop.f32.mrf.mxu1  ;;  %v1530_v8 = vsel %vm1479_vm3, %v1475_v6, 0  ;;  %v1713_v54 = vld [vmem:[#allocation3 + $0x4] sm:$0xf] }
  0xff   : > { %1069 = vst.msk [vmem:[#allocation3 + $0x8] sm:$0xf] %vm731_vm2, %v1067_v4  ;;  %v2676_v9 = vpop.f32.mrf.mxu0  ;;  %2740 = vmatpush3.bf16.xpose.msra.mxu1 %v1530_v8  ;;  %v1767_v60 = vsel %vm1719_vm4, %v1713_v54, 0 }
 0x100   : > { %v2684_v11 = vpop.f32.mrf.mxu1  ;;  %2751 = vmatprep.subr.bf16.mxu1 %v3010_v1 }
 0x101   : > { %v1129_v13 = vpop.f32.mrf.mxu0 }
 0x102   : > { %v1130_v14 = vadd.f32 %v2491_v10, %v1129_v13  ;;  %v1197_v15 = vpop.f32.mrf.mxu1 }
 0x103   : > { %v1198_v16 = vadd.f32 %v2500_v12, %v1197_v15  ;;  %v2691_v17 = vpop.f32.mrf.mxu0 }
 0x104   : > { %v1135_v18 = vpack.c.bf16 %v1130_v14, %v1130_v14  ;;  %v2699_v19 = vpop.f32.mrf.mxu1 }
 0x105   : > { %v1203_v20 = vpack.c.bf16 %v1198_v16, %v1198_v16  ;;  %v1132_v22 = vpop.f32.mrf.mxu0  ;;  %v1476_v33 = vld [vmem:[#allocation2 + $0x8] sm:$0xf] }
 0x106   : > { %1137 = vst.msk [vmem:[#allocation2 + $0xc] sm:$0xf] %vm731_vm2, %v1135_v18  ;;  %v1200_v23 = vpop.f32.mrf.mxu1  ;;  %v1576_v40 = vsel %vm1479_vm3, %v1476_v33, 0  ;;  %v1714_v51 = vld [vmem:[#allocation3 + $0x8] sm:$0xf] }
 0x107   : > { %1205 = vst.msk [vmem:[#allocation3 + $0xc] sm:$0xf] %vm731_vm2, %v1203_v20  ;;  %v2692_v24 = vpop.f32.mrf.mxu0  ;;  %v1813_v54 = vsel %vm1719_vm4, %v1714_v51, 0 }
 0x108   : > { %v2700_v26 = vpop.f32.mrf.mxu1 }
 0x109   : > { %v1269_v28 = vpop.f32.mrf.mxu0 }
 0x10a   : > { %v1270_v29 = vadd.f32 %v2504_v25, %v1269_v28  ;;  %v1335_v30 = vpop.f32.mrf.mxu1 }
 0x10b   : > { %v1336_v31 = vadd.f32 %v2513_v27, %v1335_v30  ;;  %v2707_v32 = vpop.f32.mrf.mxu0 }
 0x10c   : > { %v1275_v34 = vpack.c.bf16 %v1270_v29, %v1270_v29  ;;  %v2715_v35 = vpop.f32.mrf.mxu1 }
 0x10d   : > { %v1341_v36 = vpack.c.bf16 %v1336_v31, %v1336_v31  ;;  %v1272_v37 = vpop.f32.mrf.mxu0  ;;  %v1477_v38 = vld [vmem:[#allocation2 + $0xc] sm:$0xf] }
 0x10e   : > { %v1338_v39 = vpop.f32.mrf.mxu1  ;;  %2736 = vmatmul.mubr.msk.bf16.vlgmr.msra.gmra.mxu0 %vm1479_vm3, %v1275_v34  ;;  %v1622_v41 = vsel %vm1479_vm3, %v1477_v38, 0 }
 0x10f   : > { %2742 = vmatmul.mubr.msk.bf16.vlgmr.msra.gmra.mxu1 %vm1479_vm3, %v1341_v36  ;;  %2746 = vmatpush3.bf16.xpose.msra.mxu0 %v1576_v40  ;;  %v2708_v42 = vpop.f32.mrf.mxu0 }
 0x110   : > { %v2716_v44 = vpop.f32.mrf.mxu1  ;;  %2752 = vmatpush3.bf16.xpose.msra.mxu1 %v1622_v41  ;;  %2747 = vmatprep.mubr.msk.bf16.mxu0 %vm3011_vm0, %v3010_v1 }
 0x111   : > { %v1401_v46 = vpop.f32.mrf.mxu0  ;;  %2757 = vmatprep.subr.bf16.mxu0 %v3010_v1  ;;  %2753 = vmatprep.mubr.msk.bf16.mxu1 %vm3011_vm0, %v3010_v1 }
 0x112   : > { %v1402_v47 = vadd.f32 %v2522_v43, %v1401_v46  ;;  %v1467_v48 = vpop.f32.mrf.mxu1  ;;  %2763 = vmatprep.subr.bf16.mxu1 %v3010_v1 }
 0x113   : > { %v1468_v49 = vadd.f32 %v2531_v45, %v1467_v48  ;;  %v2723_v50 = vpop.f32.mrf.mxu0 }
 0x114   : > { %v1407_v52 = vpack.c.bf16 %v1402_v47, %v1402_v47  ;;  %v2731_v53 = vpop.f32.mrf.mxu1 }
 0x115   : > { %v1473_v55 = vpack.c.bf16 %v1468_v49, %v1468_v49  ;;  %v1404_v56 = vpop.f32.mrf.mxu0 }
 0x116   : > { %v1470_v57 = vpop.f32.mrf.mxu1  ;;  %2748 = vmatmul.mubr.msk.bf16.vlgmr.msra.gmra.mxu0 %vm1479_vm3, %v1407_v52  ;;  %v1715_v56 = vld [vmem:[#allocation3 + $0xc] sm:$0xf] }
 0x117   : > { %2758 = vmatpush3.bf16.msra.mxu0 %v1721_v58  ;;  %v2724_v59 = vpop.f32.mrf.mxu0  ;;  %2754 = vmatmul.mubr.msk.bf16.vlgmr.msra.gmra.mxu1 %vm1479_vm3, %v1473_v55 }
 0x118   : > { %2764 = vmatpush3.bf16.msra.mxu1 %v1767_v60  ;;  %v2732_v61 = vpop.f32.mrf.mxu1  ;;  %2759 = vmatprep.mubr.msk.bf16.mxu0 %vm3011_vm0, %v3010_v1  ;;  %v1859_v59 = vsel %vm1719_vm4, %v1715_v56, 0 }
 0x119   : > { %2769 = vmatprep.subr.bf16.mxu0 %v3010_v1  ;;  %2765 = vmatprep.mubr.msk.bf16.mxu1 %vm3011_vm0, %v3010_v1 }
 0x11a   : > { %2775 = vmatprep.subr.bf16.mxu1 %v3010_v1 }
 0x1ce   : > { %v1520_v63 = vpop.f32.mrf.mxu0 }
 0x1cf   : > { %v1521_v0 = vadd.f32 %v1520_v63, %v1478_v62  ;;  %v1566_v2 = vpop.f32.mrf.mxu1 }
 0x1d0   : > { %v1567_v3 = vadd.f32 %v1566_v2, %v1478_v62  ;;  %v2737_v4 = vpop.f32.mrf.mxu0  ;;  %v1905_v2 = vld [vmem:[%s3547_s9] sm:$0xf] }
 0x1d1   : > { %v2743_v5 = vpop.f32.mrf.mxu1  ;;  %v1664_v6 = vsel %vm1479_vm3, %v1521_v0, -inf  ;;  %v2543_v4 = vld [vmem:[%s3547_s9 + $0x4] sm:$0xf] }
 0x1d2   : > { %1665 = vmax.xlane.f32.xlu0 %v1664_v6  ;;  %v1523_v7 = vpop.f32.mrf.mxu0  ;;  %v1667_v9 = vsel %vm1479_vm3, %v1567_v3, -inf  ;;  %v1912_v5 = vsel %vm1719_vm4, %v2543_v4, 0  ;;  %v2548_v6 = vld [vmem:[%s3547_s9 + $0xc] sm:$0xf] }
 0x1d3   : > { %v1569_v8 = vpop.f32.mrf.mxu1 }
 0x1d4   : > { %v2738_v10 = vpop.f32.mrf.mxu0 }
 0x1d5   : > { %v2744_v11 = vpop.f32.mrf.mxu1 }
 0x1d6   : > { %1668 = vmax.xlane.f32.xlu0 %v1667_v9  ;;  %v1612_v12 = vpop.f32.mrf.mxu0  ;;  %v2055_v9 = vsel %vm1719_vm4, %v2548_v6, 0  ;;  %v2546_v11 = vld [vmem:[%s3547_s9 + $0x8] sm:$0xf] }
 0x1d7   : > { %v1613_v13 = vadd.f32 %v1612_v12, %v1478_v62  ;;  %v1658_v14 = vpop.f32.mrf.mxu1 }
 0x1d8   : > { %v1659_v15 = vadd.f32 %v1658_v14, %v1478_v62  ;;  %v2749_v16 = vpop.f32.mrf.mxu0 }
 0x1d9   : > { %v2755_v17 = vpop.f32.mrf.mxu1  ;;  %v1670_v18 = vsel %vm1479_vm3, %v1613_v13, -inf }
 0x1da   : > { %1671 = vmax.xlane.f32.xlu1 %v1670_v18  ;;  %v1615_v19 = vpop.f32.mrf.mxu0  ;;  %v1673_v22 = vsel %vm1479_vm3, %v1659_v15, -inf }
 0x1db   : > { %v1661_v20 = vpop.f32.mrf.mxu1 }
 0x1dc   : > { %v2750_v23 = vpop.f32.mrf.mxu0 }
 0x1dd   : > { %v2756_v24 = vpop.f32.mrf.mxu1 }
 0x1de   : > { %1674 = vmax.xlane.f32.xlu1 %v1673_v22 }
 0x25b   : > { %v1666_v25 = vpop.xlane.xlu0 %1665 }
 0x25c   : > { %v1676_v26 = vsub.f32 %v1521_v0, %v1666_v25 }
 0x25e   : > { %v1680_v27 = vmul.f32 1.442695, %v1676_v26 }
 0x25f   : > { %v1669_v28 = vpop.xlane.xlu0 %1668 }
 0x260   : > { %2912 = vpow2.f32 %v1680_v27  ;;  %v1677_v29 = vsub.f32 %v1567_v3, %v1669_v28  ;;  %v1958_v3 = vsel %vm1719_vm4, %v1905_v2, 0 }
 0x262   : > { %v1682_v30 = vmul.f32 1.442695, %v1677_v29 }
 0x263   : > { %v1672_v31 = vpop.xlane.xlu1 %1671 }
 0x264   : > { %2914 = vpow2.f32 %v1682_v30  ;;  %v1678_v32 = vsub.f32 %v1613_v13, %v1672_v31 }
 0x266   : > { %v1684_v33 = vmul.f32 1.442695, %v1678_v32 }
 0x267   : > { %v1675_v34 = vpop.xlane.xlu1 %1674 }
 0x268   : > { %2916 = vpow2.f32 %v1684_v33  ;;  %v1679_v35 = vsub.f32 %v1659_v15, %v1675_v34  ;;  %v2006_v15 = vsel %vm1719_vm4, %v2546_v11, 0  ;;  %v2553_v11 = vld [vmem:[%s3550_s12] ss:$0 sm:$0xff] }
 0x26a   : > { %v1686_v36 = vmul.f32 1.442695, %v1679_v35 }
 0x26c   : > { %2918 = vpow2.f32 %v1686_v36 }
 0x26d   : > { %v2913_v37 = vpop.eup %2912 }
 0x26e   : > { %v1688_v38 = vsel %vm1479_vm3, %v2913_v37, 0.0 }
 0x26f   : > { %1689 = vadd.xlane.f32.xlu0 %v1688_v38 }
 0x271   : > { %v2915_v39 = vpop.eup %2914 }
 0x272   : > { %v1691_v40 = vsel %vm1479_vm3, %v2915_v39, 0.0 }
 0x273   : > { %1692 = vadd.xlane.f32.xlu1 %v1691_v40 }
 0x275   : > { %v2917_v41 = vpop.eup %2916 }
 0x276   : > { %v1694_v42 = vsel %vm1479_vm3, %v2917_v41, 0.0 }
 0x277   : > { %1695 = vadd.xlane.f32.xlu0 %v1694_v42 }
 0x279   : > { %v2919_v43 = vpop.eup %2918 }
 0x27a   : > { %v1697_v44 = vsel %vm1479_vm3, %v2919_v43, 0.0 }
 0x27b   : > { %1698 = vadd.xlane.f32.xlu1 %v1697_v44 }
 0x2f8   : > { %v1690_v45 = vpop.xlane.xlu0 %1689 }
 0x2f9   : > { %2920 = vrcp.f32 %v1690_v45 }
 0x2fc   : > { %v1693_v46 = vpop.xlane.xlu1 %1692 }
 0x2fd   : > { %2922 = vrcp.f32 %v1693_v46 }
 0x300   : > { %v1696_v47 = vpop.xlane.xlu0 %1695 }
 0x301   : > { %2924 = vrcp.f32 %v1696_v47 }
 0x304   : > { %v1699_v48 = vpop.xlane.xlu1 %1698 }
 0x305   : > { %2926 = vrcp.f32 %v1699_v48 }
 0x306   : > { %v2921_v49 = vpop.eup %2920 }
 0x307   : > { %v1704_v50 = vmul.f32 %v2921_v49, %v2913_v37 }
 0x309   : > { %v1708_v52 = vpack.c.bf16 %v1704_v50, %v1704_v50 }
 0x30a   : > { %v2923_v53 = vpop.eup %2922 }
 0x30b   : > { %2760 = vmatmul.mubr.msk.bf16.vlgmr.msra.gmra.mxu0 %vm1479_vm3, %v1708_v52  ;;  %v1705_v55 = vmul.f32 %v2923_v53, %v2915_v39 }
 0x30c   : > { %2770 = vmatpush3.bf16.msra.mxu0 %v1813_v54  ;;  %2771 = vmatprep.mubr.msk.bf16.mxu0 %vm3011_vm0, %v3010_v1 }
 0x30d   : > { %v1709_v57 = vpack.c.bf16 %v1705_v55, %v1705_v55  ;;  %2781 = vmatprep.subr.bf16.mxu0 %v3010_v1 }
 0x30e   : > { %v2925_v58 = vpop.eup %2924 }
 0x30f   : > { %2766 = vmatmul.mubr.msk.bf16.vlgmr.msra.gmra.mxu1 %vm1479_vm3, %v1709_v57  ;;  %v1706_v60 = vmul.f32 %v2925_v58, %v2917_v41 }
 0x310   : > { %2776 = vmatpush3.bf16.msra.mxu1 %v1859_v59  ;;  %2777 = vmatprep.mubr.msk.bf16.mxu1 %vm3011_vm0, %v3010_v1  ;;  %v2906_v59 = vld [vmem:[%s3549_s11 + $0x8] sm:$0xff]  }
 0x311   : > { %v1710_v61 = vpack.c.bf16 %v1706_v60, %v1706_v60  ;;  %2787 = vmatprep.subr.bf16.mxu1 %v3010_v1  ;;  %v2907_v60 = vld [vmem:[%s3549_s11] sm:$0xff]  }
 0x312   : > { %v2927_v62 = vpop.eup %2926 }
 0x313   : > { %2772 = vmatmul.mubr.msk.bf16.vlgmr.msra.gmra.mxu0 %vm1479_vm3, %v1710_v61  ;;  %v1707_v63 = vmul.f32 %v2927_v62, %v2919_v43  ;;  %v2550_v43 = vld [vmem:[%s3548_s10] ss:$0 sm:$0xff]  ;;  %v2909_v61 = vld [vmem:[%s3551_s13 + $0x10] sm:$0xff]  }
 0x314   : > { %2783 = vmatprep.mubr.msk.bf16.mxu0 %vm3011_vm0, %v3010_v1  ;;  %2782 = vmatpush3.bf16.msra.mxu0 %v1912_v5  ;;  %v2552_v5 = vld [vmem:[%s3554_s16] ss:$0 sm:$0xff] }
 0x315   : > { %v1711_v0 = vpack.c.bf16 %v1707_v63, %v1707_v63  ;;  %2793 = vmatprep.subr.bf16.mxu0 %v3010_v1 }
 0x317   : > { %2778 = vmatmul.mubr.msk.bf16.vlgmr.msra.gmra.mxu1 %vm1479_vm3, %v1711_v0 }
 0x318   : > { %2789 = vmatprep.mubr.msk.bf16.mxu1 %vm3011_vm0, %v3010_v1  ;;  %2788 = vmatpush3.bf16.msra.mxu1 %v1958_v3  ;;  %v2551_v3 = vld [vmem:[%s3553_s15] ss:$0 sm:$0xff] }
 0x319   : > { %2799 = vmatprep.subr.bf16.mxu1 %v3010_v1 }
 0x3cb   : > { %v1757_v7 = vpop.f32.mrf.mxu0 }
 0x3cc   : > { %v1901_v8 = vpack.c.bf16 %v1757_v7, %v1757_v7 }
 0x3cd   : > { %v2761_v10 = vpop.f32.mrf.mxu0 }
 0x3ce   : > { %2790 = vmatmul.mubr.msk.bf16.vlgmr.msra.gmra.mxu1 %vm1479_vm3, %v1901_v8  ;;  %v2911_v10 = vld [vmem:[%s3551_s13] sm:$0xff]  }
 0x3cf   : > { %v1760_v12 = vpop.f32.mrf.mxu0  ;;  %v1803_v13 = vpop.f32.mrf.mxu1  ;;  %2800 = vmatpush3.bf16.msra.mxu1 %v2055_v9  ;;  %2801 = vmatprep.mubr.msk.bf16.mxu1 %vm3011_vm0, %v3010_v1  ;;  %v2910_v9 = vld [vmem:[%s3551_s13 + $0x8] sm:$0xff]  }
 0x3d0   : > { %v1902_v14 = vpack.c.bf16 %v1803_v13, %v1803_v13  ;;  %2813 = vmatprep.subr.bf16.mxu1 %v3010_v1 }
 0x3d1   : > { %v2762_v16 = vpop.f32.mrf.mxu0  ;;  %v2767_v17 = vpop.f32.mrf.mxu1 }
 0x3d2   : > { %2784 = vmatmul.mubr.msk.bf16.vlgmr.msra.gmra.mxu0 %vm1479_vm3, %v1902_v14 }
 0x3d3   : > { %v1806_v18 = vpop.f32.mrf.mxu1  ;;  %v1849_v19 = vpop.f32.mrf.mxu0  ;;  %2794 = vmatpush3.bf16.msra.mxu0 %v2006_v15  ;;  %2795 = vmatprep.mubr.msk.bf16.mxu0 %vm3011_vm0, %v3010_v1 }
 0x3d4   : > { %2805 = vmatprep.subr.bf16.mxu0 %v3010_v1  ;;  %v1903_v25 = vpack.c.bf16 %v1849_v19, %v1849_v19 }
 0x3d5   : > { %v2768_v20 = vpop.f32.mrf.mxu1  ;;  %v2773_v22 = vpop.f32.mrf.mxu0 }
 0x3d7   : > { %v1852_v23 = vpop.f32.mrf.mxu0  ;;  %v1895_v24 = vpop.f32.mrf.mxu1 }
 0x3d8   : > { %v1904_v26 = vpack.c.bf16 %v1895_v24, %v1895_v24 }
 0x3d9   : > { %v2774_v27 = vpop.f32.mrf.mxu0  ;;  %v2779_v28 = vpop.f32.mrf.mxu1 }
 0x3da   : > { %2796 = vmatmul.mubr.msk.bf16.vlgmr.msra.gmra.mxu0 %vm1479_vm3, %v1903_v25  ;;  %2802 = vmatmul.mubr.msk.bf16.vlgmr.msra.gmra.mxu1 %vm1479_vm3, %v1904_v26 }
 0x3db   : > { %v1898_v29 = vpop.f32.mrf.mxu1  ;;  %2809 = vmatprep.mubr.msk.bf16.mxu0 %vm3011_vm0, %v3010_v1  ;;  %2821 = vmatprep.mubr.msk.bf16.mxu1 %vm3011_vm0, %v3010_v1 }
 0x3dc   : > { %2806 = vmatpush3.bf16.msra.mxu0 %v2906_v59 }
 0x3dd   : > { %v2780_v30 = vpop.f32.mrf.mxu1  ;;  %2807 = vmatprep.subr.bf16.mxu0 %v3010_v1 }
 0x3e0   : > { %2808 = vmatpush3.bf16.msra.mxu0 %v2907_v60 }
 0x48e   : > { %v1994_v31 = vpop.f32.mrf.mxu1 }
 0x490   : > { %v2791_v32 = vpop.f32.mrf.mxu1 }
 0x492   : > { %v1948_v33 = vpop.f32.mrf.mxu0  ;;  %v1997_v34 = vpop.f32.mrf.mxu1 }
 0x493   : > { %v1995_v39 = vadd.f32 %v1994_v31, %v1948_v33 }
 0x494   : > { %v2785_v35 = vpop.f32.mrf.mxu0  ;;  %v2792_v36 = vpop.f32.mrf.mxu1 }
 0x495   : > { %v2563_v36 = vld [vmem:[%s3555_s17] ss:$0 sm:$0xff] }
 0x496   : > { %v1951_v37 = vpop.f32.mrf.mxu0 }
 0x498   : > { %v2786_v38 = vpop.f32.mrf.mxu0 }
 0x499   : > { %v2564_v38 = vld [vmem:[%s3556_s18] ss:$0 sm:$0xff] }
 0x49a   : > { %v2042_v40 = vpop.f32.mrf.mxu0  ;;  %v2091_v41 = vpop.f32.mrf.mxu1 }
 0x49b   : > { %v2048_v42 = vadd.f32 %v2042_v40, %v1995_v39 }
 0x49c   : > { %v2797_v44 = vpop.f32.mrf.mxu0  ;;  %v2803_v45 = vpop.f32.mrf.mxu1 }
 0x49d   : > { %v2097_v46 = vadd.f32 %v2091_v41, %v2048_v42 }
 0x49e   : > { %v2045_v47 = vpop.f32.mrf.mxu0  ;;  %v2094_v48 = vpop.f32.mrf.mxu1 }
 0x49f   : > { %v2105_v49 = vadd.f32 %v2550_v43, %v2097_v46 }
 0x4a0   : > { %v2798_v50 = vpop.f32.mrf.mxu0  ;;  %v2804_v51 = vpop.f32.mrf.mxu1 }
 0x4a1   : > { %v2106_v52 = vadd.f32 %v2105_v49, %v3279_v21  ;;  %v2908_v21 = vld [vmem:[%s3551_s13 + $0x18] sm:$0xff]  }
 0x4a2   : > { %2814 = vmatpush3.bf16.msra.mxu1 %v2908_v21 }
 0x4a3   : > { %v2109_v53 = vsel %vm686_vm1, %v2106_v52, 0.0  ;;  %2815 = vmatprep.subr.bf16.mxu1 %v3010_v1 }
 0x4a4   : > { %2110 = vadd.xlane.f32.xlu0 %v2109_v53 }
 0x4a6   : > { %2816 = vmatpush3.bf16.msra.mxu1 %v2909_v61 }
 0x4a7   : > { %2817 = vmatprep.subr.bf16.mxu1 %v3010_v1 }
 0x4aa   : > { %2818 = vmatpush3.bf16.msra.mxu1 %v2910_v9 }
 0x4ab   : > { %2819 = vmatprep.subr.bf16.mxu1 %v3010_v1  ;;  %v2557_v1 = vld [vmem:[%s3552_s14] ss:$0 sm:$0xff] }
 0x4ae   : > { %2820 = vmatpush3.bf16.msra.mxu1 %v2911_v10 }
 0x52d   : > { %v2111_v54 = vpop.xlane.xlu0 %2110 }
 0x52e   : > { %v2113_v55 = vmul.f32 0.03125, %v2111_v54 }
 0x530   : > { %v2114_v56 = vsub.f32 %v2106_v52, %v2113_v55 }
 0x532   : > { %v2115_v57 = vmul.f32 %v2114_v56, %v2114_v56 }
 0x534   : > { %v2116_v58 = vsel %vm686_vm1, %v2115_v57, 0.0 }
 0x535   : > { %2117 = vadd.xlane.f32.xlu1 %v2116_v58 }
 0x5be   : > { %v2118_v62 = vpop.xlane.xlu1 %2117 }
 0x5bf   : > { %v2119_v63 = vmul.f32 0.03125, %v2118_v62 }
 0x5c1   : > { %v2120_v0 = vadd.f32 1e-05, %v2119_v63 }
 0x5c3   : > { %2928 = vrsqrt.f32 %v2120_v0 }
 0x5d0   : > { %v2929_v2 = vpop.eup %2928 }
 0x5d1   : > { %v2122_v4 = vmul.f32 %v2929_v2, %v2114_v56 }
 0x5d3   : > { %v2129_v6 = vmul.f32 %v2551_v3, %v2122_v4 }
 0x5d5   : > { %v2136_v7 = vadd.f32 %v2552_v5, %v2129_v6 }
 0x5d7   : > { %v2137_v8 = vpack.c.bf16 %v2136_v7, %v2136_v7 }
 0x5d9   : > { %2810 = vmatmul.mubr.msk.bf16.vlgmr.msra.gmra.mxu0 %vm686_vm1, %v2137_v8 }
 0x699   : > { %v2198_v12 = vpop.f32.mrf.mxu0 }
 0x69a   : > { %v2199_v13 = vadd.f32 %v2553_v11, %v2198_v12 }
 0x69b   : > { %v2811_v14 = vpop.f32.mrf.mxu0 }
 0x69c   : > { %v2204_v15 = vmax.f32 %v2199_v13, 0.0 }
 0x69d   : > { %v2201_v16 = vpop.f32.mrf.mxu0 }
 0x69e   : > { %v2205_v17 = vpack.c.bf16 %v2204_v15, %v2204_v15 }
 0x69f   : > { %v2812_v18 = vpop.f32.mrf.mxu0 }
 0x6a0   : > { %2822 = vmatmul.mubr.msk.bf16.vlgmr.msra.gmra.mxu1 %vm2245_vm5, %v2205_v17 }
 0x760   : > { %v2283_v19 = vpop.f32.mrf.mxu1 }
 0x761   : > { %v2284_v20 = vadd.f32 %v2557_v1, %v2283_v19 }
 0x762   : > { %v2823_v22 = vpop.f32.mrf.mxu1 }
 0x763   : > { %v2289_v23 = vadd.f32 %v2284_v20, %v2136_v7 }
 0x764   : > { %v2286_v24 = vpop.f32.mrf.mxu1 }
 0x765   : > { %v2292_v25 = vsel %vm686_vm1, %v2289_v23, 0.0 }
 0x766   : > { %2293 = vadd.xlane.f32.xlu0 %v2292_v25  ;;  %v2824_v26 = vpop.f32.mrf.mxu1 }
 0x7ef   : > { %v2294_v27 = vpop.xlane.xlu0 %2293 }
 0x7f0   : > { %v2295_v28 = vmul.f32 0.03125, %v2294_v27 }
 0x7f2   : > { %v2296_v29 = vsub.f32 %v2289_v23, %v2295_v28 }
 0x7f4   : > { %v2297_v30 = vmul.f32 %v2296_v29, %v2296_v29 }
 0x7f6   : > { %v2298_v31 = vsel %vm686_vm1, %v2297_v30, 0.0 }
 0x7f7   : > { %2299 = vadd.xlane.f32.xlu1 %v2298_v31 }
 0x880   : > { %v2300_v32 = vpop.xlane.xlu1 %2299 }
 0x881   : > { %v2301_v33 = vmul.f32 0.03125, %v2300_v32 }
 0x883   : > { %v2302_v34 = vadd.f32 1e-05, %v2301_v33 }
 0x885   : > { %2930 = vrsqrt.f32 %v2302_v34 }
 0x892   : > { %v2931_v35 = vpop.eup %2930 }
 0x893   : > { %v2304_v37 = vmul.f32 %v2931_v35, %v2296_v29 }
 0x895   : > { %v2311_v39 = vmul.f32 %v2563_v36, %v2304_v37 }
 0x897   : > { %v2318_v40 = vadd.f32 %v2564_v38, %v2311_v39 }
 0x899   : > { %2319 = vst.msk [vmem:[%s641_s29] sm:$0xff] %vm686_vm1, %v2318_v40 }
 0x89a   : > { %2945 = shalt.err (!%p2942_p5)
}
 0x89b   : > { %s2946_s4 = scalar_lea.hbm %s2333_s6, 128  ;;  %s2950_s5 = scalar_lea.hbm %s3557_s19, 256 }
 0x89c   : > { %p2947_p6 = scmp.ne.s32.totalorder %s2333_s6, %s2946_s4  ;;  %p2951_p10 = scmp.lt.s32.totalorder %s2333_s6, %s3557_s19 }
 0x89d   : > { %p2952_p11 = scmp.lt.s32.totalorder %s2950_s5, %s2946_s4 }
 0x89e   : > { %p2948_p7 = pnand %p2947_p6, %p3153_p4 }
 0x89f   : > { %p2953_p12 = por %p2952_p11, %p2951_p10 }
 0x8a0   : > { %p2949_p9 = pneg %p2948_p7 }
 0x8a2   : > { %p2954_p13 = pnand %p2953_p12, %p2949_p9 }
 0x8a4   : > { %2957 = shalt.err (!%p2954_p13)
}
 0x8a5   : > { %2825 = dma.vmem_to_hbm [thread:$0]  (%p3153_p4), %s2336_s2, 128, %s2333_s6, %s2321_s7  }
 0x8a6 PF: > { %p2831_p0 = scmp.ge.s32.totalorder %s3008_s22, 2  ;;  %s2347_s28 = sand.u32 1, %s2988_s0  }
 0x8a7   : > { %s2348_s20 = scalar_lea.sflag [#allocation5], %s2347_s28 }
 0x8a8   : > { %p2828_p1 = pnand %p2831_p0, %p3160_p8 }
 0x8aa   : > { %p2829_p2 = pneg %p2828_p1 }
 0x8ac   : > { %2983 = dma.done.wait (%p2829_p2), %s2348_s20, 128  }
 0x8ad   : > { %2985 = vsyncadd (%p2829_p2), %s2348_s20, 4294967168  ;;  %s32_s22 = sadd.s32 1, %s3008_s22   ;;  %s3588_s24 = sld [smem:[#allocation7_spill]] }
 0x8ae   : > { %p29_p3 = scmp.ge.s32.totalorder %s32_s22, 4   ;;  %s3589_s20 = sld [smem:[#allocation11_spill]] }
 0x8af   : > { %s3590_s21 = sld [smem:[#allocation8_spill]]  ;;  %s3592_s0 = smov %s2992_s30 }
 0x8b0   : > { %s3591_s1 = sld [smem:[#allocation9_spill]]  ;;  %31 = sbr.rel (!%p29_p3) target bundleno = 13 (0xd), region = 168 }
 0x8b3   : > { %s3593_s30 = smov %s3588_s24 }
 0x8b5   :  { %2353 = vsyncpa [#allocation5], 1 }
 0x8b6   :  { %2355 = vsyncpa [#allocation5 + $0x1], 1 }

</bundles_post_ra>
